<compile_context>
chip_gen: v7x
topology: tpu7x:2x2x1
jax: 0.10.0
libtpu: 0.0.40
codegen_flags: <defaults>
</compile_context>

<pallas_src>
import functools

import numpy as np
import jax
import jax.numpy as jnp
from jax.experimental import pallas as pl
from jax.experimental.pallas import tpu as pltpu


# ----------------------------------------------------------------------------
# Border masks for the 9 taps of a 3x3 / pad=1 convolution (flattened spatial).
# ----------------------------------------------------------------------------
def _make_tap_masks(H, W):
    h = np.arange(H).reshape(H, 1)
    w = np.arange(W).reshape(1, W)
    masks = []
    for kh in range(3):
        for kw in range(3):
            dh, dw = kh - 1, kw - 1
            valid = ((h + dh >= 0) & (h + dh < H) &
                     (w + dw >= 0) & (w + dw < W))
            masks.append(valid.reshape(H * W))
    return jnp.asarray(np.stack(masks, 0).astype(np.float32))       # (9, H*W)


# ----------------------------------------------------------------------------
# Pallas kernel: fused {concat -> 3x3 conv (pad=1) -> BN (scale/bias) -> ReLU}
# ----------------------------------------------------------------------------
def _make_conv_bn_relu_kernel(num_srcs, W, HW):
    def kernel(mask_ref, scale_ref, bias_ref, *refs):
        # mask_ref:  (9, HW)        f32   per-tap border mask
        # scale_ref: (Cout, 1)      f32   gamma / sqrt(var + eps)
        # bias_ref:  (Cout, 1)      f32   beta - mean * scale
        # refs:  num_srcs weight refs (9, Cout, C_j) bf16,
        #        num_srcs source refs (1, C_j, HW)   bf16,
        #        output ref           (1, Cout, HW)  bf16
        w_refs = refs[:num_srcs]
        x_refs = refs[num_srcs:2 * num_srcs]
        o_ref = refs[2 * num_srcs]
        Cout = o_ref.shape[1]

        # Load each linked source once; reused by all 9 taps (no relayout).
        xs = [x_refs[j][0] for j in range(num_srcs)]        # (C_j, HW) bf16

        acc = jnp.zeros((Cout, HW), jnp.float32)
        for kh in range(3):
            for kw in range(3):
                t = kh * 3 + kw
                delta = (kh - 1) * W + (kw - 1)
                # z[co, l] = sum_j sum_ci w_j[t, co, ci] * x_j[ci, l]   (MXU, f32 acc)
                z = jnp.dot(w_refs[0][t], xs[0],
                            preferred_element_type=jnp.float32)
                for j in range(1, num_srcs):
                    z = z + jnp.dot(w_refs[j][t], xs[j],
                                    preferred_element_type=jnp.float32)
                if delta == 0:
                    acc = acc + z                     # center tap: always valid
                else:
                    # out[:, l] needs z[:, l + delta]; lane-roll (XLU) and mask
                    # the wrapped / out-of-image border positions to zero.
                    z = pltpu.roll(z, shift=(-delta) % HW, axis=1)
                    acc = acc + z * mask_ref[t:t + 1, :]

        y = acc * scale_ref[...] + bias_ref[...]      # BN affine (f32)
        y = jnp.maximum(y, 0.0)                       # ReLU
        o_ref[0] = y.astype(o_ref.dtype)
    return kernel


def conv_bn_relu_fused(srcs, w_splits, scale, bias, masks, W):
    """One HarDBlock ConvLayer.

    srcs:     list of linked feature maps, each (N, C_j, H*W) bf16
    w_splits: list of per-source weights, each (9, Cout, C_j) bf16
    scale:    (Cout, 1) f32,   bias: (Cout, 1) f32,   masks: (9, H*W) f32
    """
    N, _, HW = srcs[0].shape
    Cout = scale.shape[0]
    num_srcs = len(srcs)
    kernel = _make_conv_bn_relu_kernel(num_srcs, W, HW)

    in_specs = [
        pl.BlockSpec(masks.shape, lambda n: (0, 0)),
        pl.BlockSpec((Cout, 1), lambda n: (0, 0)),
        pl.BlockSpec((Cout, 1), lambda n: (0, 0)),
    ]
    for wj in w_splits:
        in_specs.append(pl.BlockSpec(wj.shape, lambda n: (0, 0, 0)))
    for xj in srcs:
        in_specs.append(pl.BlockSpec((1, xj.shape[1], HW), lambda n: (n, 0, 0)))

    return pl.pallas_call(
        kernel,
        out_shape=jax.ShapeDtypeStruct((N, Cout, HW), jnp.bfloat16),
        grid=(N,),
        in_specs=in_specs,
        out_specs=pl.BlockSpec((1, Cout, HW), lambda n: (n, 0, 0)),
        compiler_params=pltpu.CompilerParams(
            dimension_semantics=("parallel",)),
    )(masks, scale, bias, *w_splits, *srcs)


# ----------------------------------------------------------------------------
# Plain-JAX reference (independent lax.conv path, same bf16 operands)
# ----------------------------------------------------------------------------
def conv_bn_relu_ref(srcs, w_splits, scale, bias, masks, W):
    del masks
    N, _, HW = srcs[0].shape
    H = HW // W
    Cout = scale.shape[0]
    xin = jnp.concatenate(srcs, axis=1).astype(jnp.float32).reshape(N, -1, H, W)
    w_full = jnp.concatenate(
        [wj.reshape(3, 3, Cout, wj.shape[2]).transpose(2, 3, 0, 1)
         for wj in w_splits], axis=1).astype(jnp.float32)          # (Cout,Cin,3,3)
    y = jax.lax.conv_general_dilated(
        xin, w_full, window_strides=(1, 1), padding="SAME",
        dimension_numbers=("NCHW", "OIHW", "NCHW"))
    y = y * scale.reshape(1, Cout, 1, 1) + bias.reshape(1, Cout, 1, 1)
    y = jnp.maximum(y, 0.0)
    return y.reshape(N, Cout, HW).astype(jnp.bfloat16)


# ----------------------------------------------------------------------------
# HarDBlock graph construction (pure Python, mirrors the PyTorch module)
# ----------------------------------------------------------------------------
def get_link(layer, base_ch, growth_rate, grmul):
    if layer == 0:
        return base_ch, 0, []
    out_channels = growth_rate
    link = []
    for i in range(10):
        dv = 2 ** i
        if layer % dv == 0:
            k = layer - dv
            link.append(k)
            if i > 0:
                out_channels *= grmul
    out_channels = int(int(out_channels + 1) / 2) * 2
    in_channels = 0
    for i in link:
        ch, _, _ = get_link(i, base_ch, growth_rate, grmul)
        in_channels += ch
    return out_channels, in_channels, link


def make_hardblock_params(key, in_channels, growth_rate, grmul, n_layers):
    """Deterministic synthetic parameters for every ConvLayer in the block.

    BatchNorm2d is folded to inference-mode scale/bias.  Conv weights are
    pre-split along Cin per linked source and laid out as (9, Cout, C_j) bf16.
    """
    eps = 1e-5
    links, params = [], []
    out_channels_total = 0
    for i in range(n_layers):
        outch, inch, link = get_link(i + 1, in_channels, growth_rate, grmul)
        links.append(link)
        key, kw_, kg, kb, km, kv = jax.random.split(key, 6)
        # Conv2d weight in PyTorch layout (Cout, Cin, 3, 3), no bias.
        w_oihw = 0.1 * jax.random.normal(kw_, (outch, inch, 3, 3), jnp.float32)
        # BatchNorm2d running stats folded into scale/bias.
        gamma = 1.0 + 0.1 * jax.random.normal(kg, (outch,), jnp.float32)
        beta = 0.1 * jax.random.normal(kb, (outch,), jnp.float32)
        mean = 0.1 * jax.random.normal(km, (outch,), jnp.float32)
        var = 0.5 + jax.random.uniform(kv, (outch,), jnp.float32)
        scale1 = gamma / jnp.sqrt(var + eps)                    # (Cout,)
        bias1 = beta - mean * scale1                            # (Cout,)
        scale = scale1.reshape(outch, 1)
        bias = bias1.reshape(outch, 1)
        # Split the weight along Cin in link order (matches torch.cat order).
        src_chs = [get_link(k, in_channels, growth_rate, grmul)[0] for k in link]
        w_splits, off = [], 0
        for cj in src_chs:
            wj = w_oihw[:, off:off + cj, :, :]                  # (Cout, Cj, 3, 3)
            wj = jnp.transpose(wj, (2, 3, 0, 1)).reshape(9, outch, cj)
            w_splits.append(wj.astype(jnp.bfloat16))
            off += cj
        assert off == inch
        params.append((w_splits, scale, bias))
        if i % 2 == 0 or i == n_layers - 1:
            out_channels_total += outch
    return params, links, out_channels_total


def hardblock_forward(x_nchw, params, links, keep_base=False, conv_fn=None):
    """Forward pass; input/output are NCHW like the PyTorch module."""
    N, Cin, H, W = x_nchw.shape
    masks = _make_tap_masks(H, W)
    # Flatten spatial onto the lane axis once; bf16 activations for the MXU.
    layers_ = [x_nchw.reshape(N, Cin, H * W).astype(jnp.bfloat16)]
    for layer_idx, (w_splits, scale, bias) in enumerate(params):
        link = links[layer_idx]
        srcs = [layers_[i] for i in link]        # fused concat: pass separately
        layers_.append(conv_fn(srcs, w_splits, scale, bias, masks, W))
    t = len(layers_)
    out_ = []
    for i in range(t):
        if (i == 0 and keep_base) or i == t - 1 or i % 2 == 1:
            out_.append(layers_[i])
    out = jnp.concatenate(out_, axis=1)
    # TODO(synk): this final (single, cheap) concat could also be fused by
    # letting each selected layer write straight into a preallocated slab via
    # input_output_aliases + channel-offset out_specs.
    return out.astype(jnp.float32).reshape(N, out.shape[1], H, W)


# ----------------------------------------------------------------------------
if __name__ == "__main__":
    key = jax.random.PRNGKey(0)
    key, kx, kp = jax.random.split(key, 3)

    # Small HarDBlock config: HarDBlock(in_channels=4, growth_rate=6,
    #                                   grmul=1.7, n_layers=4)
    in_channels, growth_rate, grmul, n_layers = 4, 6, 1.7, 4
    N, H, W = 2, 16, 16

    x = jax.random.normal(kx, (N, in_channels, H, W), jnp.float32)  # NCHW input

    params, links, out_ch = make_hardblock_params(
        kp, in_channels, growth_rate, grmul, n_layers)

    fwd = jax.jit(functools.partial(hardblock_forward,
                                    params=params, links=links,
                                    keep_base=False,
                                    conv_fn=conv_bn_relu_fused))
    out = jax.block_until_ready(fwd(x))
    assert out.shape == (N, out_ch, H, W), (out.shape, out_ch)

    # Reference check against an independent lax.conv path (same bf16 operands,
    # f32 accumulation -> tolerance covers bf16 rounding at layer boundaries).
    ref = hardblock_forward(x, params, links, keep_base=False,
                            conv_fn=conv_bn_relu_ref)
    ref = jax.block_until_ready(ref)
    assert jnp.allclose(out, ref, rtol=2e-2, atol=2e-2), (
        float(jnp.max(jnp.abs(out - ref))))

    print("KERNEL_OK")
</pallas_src>

<mosaic_0001>
module attributes {stable_mosaic.version = 11 : i64} {
  func.func @kernel(%arg0: i32, %arg1: memref<9x256xf32, #tpu.memory_space<vmem>>, %arg2: memref<6x1xf32, #tpu.memory_space<vmem>>, %arg3: memref<6x1xf32, #tpu.memory_space<vmem>>, %arg4: memref<9x6x4xbf16, #tpu.memory_space<vmem>>, %arg5: memref<1x4x256xbf16, #tpu.memory_space<vmem>>, %arg6: memref<1x6x256xbf16, #tpu.memory_space<vmem>>) attributes {dimension_semantics = [#tpu.dimension_semantics<parallel>], iteration_bounds = array<i64: 2>, scalar_prefetch = 0 : i64, scratch_operands = 0 : i64, tpu.core_type = #tpu.core_type<tc>, window_params = [{pipeline_mode = #tpu.pipeline_mode<synchronous>, transform_indices = @transform_0, window_bounds = array<i64: 9, 256>}, {pipeline_mode = #tpu.pipeline_mode<synchronous>, transform_indices = @transform_1, window_bounds = array<i64: 6, 1>}, {pipeline_mode = #tpu.pipeline_mode<synchronous>, transform_indices = @transform_2, window_bounds = array<i64: 6, 1>}, {pipeline_mode = #tpu.pipeline_mode<synchronous>, transform_indices = @transform_3, window_bounds = array<i64: 9, 6, 4>}, {transform_indices = @transform_4, window_bounds = array<i64: 1, 4, 256>}, {transform_indices = @transform_5, window_bounds = array<i64: 1, 6, 256>}]} {
    %c0 = arith.constant 0 : index
    %c0_0 = arith.constant 0 : index
    %c0_1 = arith.constant 0 : index
    %0 = vector.load %arg5[%c0, %c0_0, %c0_1] : memref<1x4x256xbf16, #tpu.memory_space<vmem>>, vector<1x4x256xbf16>
    %1 = vector.shape_cast %0 : vector<1x4x256xbf16> to vector<4x256xbf16>
    %cst = arith.constant 0.000000e+00 : f32
    %2 = vector.broadcast %cst : f32 to vector<6x256xf32>
    %c0_2 = arith.constant 0 : index
    %c0_3 = arith.constant 0 : index
    %c0_4 = arith.constant 0 : index
    %3 = vector.load %arg4[%c0_2, %c0_3, %c0_4] : memref<9x6x4xbf16, #tpu.memory_space<vmem>>, vector<1x6x4xbf16>
    %4 = vector.shape_cast %3 : vector<1x6x4xbf16> to vector<6x4xbf16>
    %cst_5 = arith.constant dense<0.000000e+00> : vector<6x256xf32>
    %5 = tpu.matmul %4, %1, %cst_5 {dimension_numbers = #tpu.dot_dimension_numbers<[1], [0], [0], [1], [0, 0, 1, 1], [], []>} : vector<6x4xbf16>, vector<4x256xbf16>, vector<6x256xf32> -> vector<6x256xf32>
    %c17_i32 = arith.constant 17 : i32
    %6 = tpu.dynamic_rotate %5 by %c17_i32 dim 1 : vector<6x256xf32>, i32 -> vector<6x256xf32>
    %c0_6 = arith.constant 0 : index
    %c0_7 = arith.constant 0 : index
    %7 = vector.load %arg1[%c0_6, %c0_7] : memref<9x256xf32, #tpu.memory_space<vmem>>, vector<1x256xf32>
    %8 = vector.broadcast %7 : vector<1x256xf32> to vector<6x256xf32>
    %9 = arith.mulf %6, %8 : vector<6x256xf32>
    %10 = arith.addf %2, %9 : vector<6x256xf32>
    %c1 = arith.constant 1 : index
    %c0_8 = arith.constant 0 : index
    %c0_9 = arith.constant 0 : index
    %11 = vector.load %arg4[%c1, %c0_8, %c0_9] : memref<9x6x4xbf16, #tpu.memory_space<vmem>>, vector<1x6x4xbf16>
    %12 = vector.shape_cast %11 : vector<1x6x4xbf16> to vector<6x4xbf16>
    %cst_10 = arith.constant dense<0.000000e+00> : vector<6x256xf32>
    %13 = tpu.matmul %12, %1, %cst_10 {dimension_numbers = #tpu.dot_dimension_numbers<[1], [0], [0], [1], [0, 0, 1, 1], [], []>} : vector<6x4xbf16>, vector<4x256xbf16>, vector<6x256xf32> -> vector<6x256xf32>
    %c16_i32 = arith.constant 16 : i32
    %14 = tpu.dynamic_rotate %13 by %c16_i32 dim 1 : vector<6x256xf32>, i32 -> vector<6x256xf32>
    %c1_11 = arith.constant 1 : index
    %c0_12 = arith.constant 0 : index
    %15 = vector.load %arg1[%c1_11, %c0_12] : memref<9x256xf32, #tpu.memory_space<vmem>>, vector<1x256xf32>
    %16 = vector.broadcast %15 : vector<1x256xf32> to vector<6x256xf32>
    %17 = arith.mulf %14, %16 : vector<6x256xf32>
    %18 = arith.addf %10, %17 : vector<6x256xf32>
    %c2 = arith.constant 2 : index
    %c0_13 = arith.constant 0 : index
    %c0_14 = arith.constant 0 : index
    %19 = vector.load %arg4[%c2, %c0_13, %c0_14] : memref<9x6x4xbf16, #tpu.memory_space<vmem>>, vector<1x6x4xbf16>
    %20 = vector.shape_cast %19 : vector<1x6x4xbf16> to vector<6x4xbf16>
    %cst_15 = arith.constant dense<0.000000e+00> : vector<6x256xf32>
    %21 = tpu.matmul %20, %1, %cst_15 {dimension_numbers = #tpu.dot_dimension_numbers<[1], [0], [0], [1], [0, 0, 1, 1], [], []>} : vector<6x4xbf16>, vector<4x256xbf16>, vector<6x256xf32> -> vector<6x256xf32>
    %c15_i32 = arith.constant 15 : i32
    %22 = tpu.dynamic_rotate %21 by %c15_i32 dim 1 : vector<6x256xf32>, i32 -> vector<6x256xf32>
    %c2_16 = arith.constant 2 : index
    %c0_17 = arith.constant 0 : index
    %23 = vector.load %arg1[%c2_16, %c0_17] : memref<9x256xf32, #tpu.memory_space<vmem>>, vector<1x256xf32>
    %24 = vector.broadcast %23 : vector<1x256xf32> to vector<6x256xf32>
    %25 = arith.mulf %22, %24 : vector<6x256xf32>
    %26 = arith.addf %18, %25 : vector<6x256xf32>
    %c3 = arith.constant 3 : index
    %c0_18 = arith.constant 0 : index
    %c0_19 = arith.constant 0 : index
    %27 = vector.load %arg4[%c3, %c0_18, %c0_19] : memref<9x6x4xbf16, #tpu.memory_space<vmem>>, vector<1x6x4xbf16>
    %28 = vector.shape_cast %27 : vector<1x6x4xbf16> to vector<6x4xbf16>
    %cst_20 = arith.constant dense<0.000000e+00> : vector<6x256xf32>
    %29 = tpu.matmul %28, %1, %cst_20 {dimension_numbers = #tpu.dot_dimension_numbers<[1], [0], [0], [1], [0, 0, 1, 1], [], []>} : vector<6x4xbf16>, vector<4x256xbf16>, vector<6x256xf32> -> vector<6x256xf32>
    %c1_i32 = arith.constant 1 : i32
    %30 = tpu.dynamic_rotate %29 by %c1_i32 dim 1 : vector<6x256xf32>, i32 -> vector<6x256xf32>
    %c3_21 = arith.constant 3 : index
    %c0_22 = arith.constant 0 : index
    %31 = vector.load %arg1[%c3_21, %c0_22] : memref<9x256xf32, #tpu.memory_space<vmem>>, vector<1x256xf32>
    %32 = vector.broadcast %31 : vector<1x256xf32> to vector<6x256xf32>
    %33 = arith.mulf %30, %32 : vector<6x256xf32>
    %34 = arith.addf %26, %33 : vector<6x256xf32>
    %c4 = arith.constant 4 : index
    %c0_23 = arith.constant 0 : index
    %c0_24 = arith.constant 0 : index
    %35 = vector.load %arg4[%c4, %c0_23, %c0_24] : memref<9x6x4xbf16, #tpu.memory_space<vmem>>, vector<1x6x4xbf16>
    %36 = vector.shape_cast %35 : vector<1x6x4xbf16> to vector<6x4xbf16>
    %cst_25 = arith.constant dense<0.000000e+00> : vector<6x256xf32>
    %37 = tpu.matmul %36, %1, %cst_25 {dimension_numbers = #tpu.dot_dimension_numbers<[1], [0], [0], [1], [0, 0, 1, 1], [], []>} : vector<6x4xbf16>, vector<4x256xbf16>, vector<6x256xf32> -> vector<6x256xf32>
    %38 = arith.addf %34, %37 : vector<6x256xf32>
    %c5 = arith.constant 5 : index
    %c0_26 = arith.constant 0 : index
    %c0_27 = arith.constant 0 : index
    %39 = vector.load %arg4[%c5, %c0_26, %c0_27] : memref<9x6x4xbf16, #tpu.memory_space<vmem>>, vector<1x6x4xbf16>
    %40 = vector.shape_cast %39 : vector<1x6x4xbf16> to vector<6x4xbf16>
    %cst_28 = arith.constant dense<0.000000e+00> : vector<6x256xf32>
    %41 = tpu.matmul %40, %1, %cst_28 {dimension_numbers = #tpu.dot_dimension_numbers<[1], [0], [0], [1], [0, 0, 1, 1], [], []>} : vector<6x4xbf16>, vector<4x256xbf16>, vector<6x256xf32> -> vector<6x256xf32>
    %c255_i32 = arith.constant 255 : i32
    %42 = tpu.dynamic_rotate %41 by %c255_i32 dim 1 : vector<6x256xf32>, i32 -> vector<6x256xf32>
    %c5_29 = arith.constant 5 : index
    %c0_30 = arith.constant 0 : index
    %43 = vector.load %arg1[%c5_29, %c0_30] : memref<9x256xf32, #tpu.memory_space<vmem>>, vector<1x256xf32>
    %44 = vector.broadcast %43 : vector<1x256xf32> to vector<6x256xf32>
    %45 = arith.mulf %42, %44 : vector<6x256xf32>
    %46 = arith.addf %38, %45 : vector<6x256xf32>
    %c6 = arith.constant 6 : index
    %c0_31 = arith.constant 0 : index
    %c0_32 = arith.constant 0 : index
    %47 = vector.load %arg4[%c6, %c0_31, %c0_32] : memref<9x6x4xbf16, #tpu.memory_space<vmem>>, vector<1x6x4xbf16>
    %48 = vector.shape_cast %47 : vector<1x6x4xbf16> to vector<6x4xbf16>
    %cst_33 = arith.constant dense<0.000000e+00> : vector<6x256xf32>
    %49 = tpu.matmul %48, %1, %cst_33 {dimension_numbers = #tpu.dot_dimension_numbers<[1], [0], [0], [1], [0, 0, 1, 1], [], []>} : vector<6x4xbf16>, vector<4x256xbf16>, vector<6x256xf32> -> vector<6x256xf32>
    %c241_i32 = arith.constant 241 : i32
    %50 = tpu.dynamic_rotate %49 by %c241_i32 dim 1 : vector<6x256xf32>, i32 -> vector<6x256xf32>
    %c6_34 = arith.constant 6 : index
    %c0_35 = arith.constant 0 : index
    %51 = vector.load %arg1[%c6_34, %c0_35] : memref<9x256xf32, #tpu.memory_space<vmem>>, vector<1x256xf32>
    %52 = vector.broadcast %51 : vector<1x256xf32> to vector<6x256xf32>
    %53 = arith.mulf %50, %52 : vector<6x256xf32>
    %54 = arith.addf %46, %53 : vector<6x256xf32>
    %c7 = arith.constant 7 : index
    %c0_36 = arith.constant 0 : index
    %c0_37 = arith.constant 0 : index
    %55 = vector.load %arg4[%c7, %c0_36, %c0_37] : memref<9x6x4xbf16, #tpu.memory_space<vmem>>, vector<1x6x4xbf16>
    %56 = vector.shape_cast %55 : vector<1x6x4xbf16> to vector<6x4xbf16>
    %cst_38 = arith.constant dense<0.000000e+00> : vector<6x256xf32>
    %57 = tpu.matmul %56, %1, %cst_38 {dimension_numbers = #tpu.dot_dimension_numbers<[1], [0], [0], [1], [0, 0, 1, 1], [], []>} : vector<6x4xbf16>, vector<4x256xbf16>, vector<6x256xf32> -> vector<6x256xf32>
    %c240_i32 = arith.constant 240 : i32
    %58 = tpu.dynamic_rotate %57 by %c240_i32 dim 1 : vector<6x256xf32>, i32 -> vector<6x256xf32>
    %c7_39 = arith.constant 7 : index
    %c0_40 = arith.constant 0 : index
    %59 = vector.load %arg1[%c7_39, %c0_40] : memref<9x256xf32, #tpu.memory_space<vmem>>, vector<1x256xf32>
    %60 = vector.broadcast %59 : vector<1x256xf32> to vector<6x256xf32>
    %61 = arith.mulf %58, %60 : vector<6x256xf32>
    %62 = arith.addf %54, %61 : vector<6x256xf32>
    %c8 = arith.constant 8 : index
    %c0_41 = arith.constant 0 : index
    %c0_42 = arith.constant 0 : index
    %63 = vector.load %arg4[%c8, %c0_41, %c0_42] : memref<9x6x4xbf16, #tpu.memory_space<vmem>>, vector<1x6x4xbf16>
    %64 = vector.shape_cast %63 : vector<1x6x4xbf16> to vector<6x4xbf16>
    %cst_43 = arith.constant dense<0.000000e+00> : vector<6x256xf32>
    %65 = tpu.matmul %64, %1, %cst_43 {dimension_numbers = #tpu.dot_dimension_numbers<[1], [0], [0], [1], [0, 0, 1, 1], [], []>} : vector<6x4xbf16>, vector<4x256xbf16>, vector<6x256xf32> -> vector<6x256xf32>
    %c239_i32 = arith.constant 239 : i32
    %66 = tpu.dynamic_rotate %65 by %c239_i32 dim 1 : vector<6x256xf32>, i32 -> vector<6x256xf32>
    %c8_44 = arith.constant 8 : index
    %c0_45 = arith.constant 0 : index
    %67 = vector.load %arg1[%c8_44, %c0_45] : memref<9x256xf32, #tpu.memory_space<vmem>>, vector<1x256xf32>
    %68 = vector.broadcast %67 : vector<1x256xf32> to vector<6x256xf32>
    %69 = arith.mulf %66, %68 : vector<6x256xf32>
    %70 = arith.addf %62, %69 : vector<6x256xf32>
    %c0_46 = arith.constant 0 : index
    %c0_47 = arith.constant 0 : index
    %71 = vector.load %arg2[%c0_46, %c0_47] : memref<6x1xf32, #tpu.memory_space<vmem>>, vector<6x1xf32>
    %72 = vector.broadcast %71 : vector<6x1xf32> to vector<6x256xf32>
    %73 = arith.mulf %70, %72 : vector<6x256xf32>
    %c0_48 = arith.constant 0 : index
    %c0_49 = arith.constant 0 : index
    %74 = vector.load %arg3[%c0_48, %c0_49] : memref<6x1xf32, #tpu.memory_space<vmem>>, vector<6x1xf32>
    %75 = vector.broadcast %74 : vector<6x1xf32> to vector<6x256xf32>
    %76 = arith.addf %73, %75 : vector<6x256xf32>
    %cst_50 = arith.constant 0.000000e+00 : f32
    %77 = vector.broadcast %cst_50 : f32 to vector<6x256xf32>
    %78 = arith.maximumf %76, %77 : vector<6x256xf32>
    %79 = arith.truncf %78 : vector<6x256xf32> to vector<6x256xbf16>
    %c0_51 = arith.constant 0 : index
    %c0_52 = arith.constant 0 : index
    %c0_53 = arith.constant 0 : index
    %80 = vector.load %arg6[%c0_51, %c0_52, %c0_53] : memref<1x6x256xbf16, #tpu.memory_space<vmem>>, vector<1x6x256xbf16>
    %81 = vector.shape_cast %80 : vector<1x6x256xbf16> to vector<6x256xbf16>
    %82 = vector.shape_cast %79 : vector<6x256xbf16> to vector<1x6x256xbf16>
    tpu.vector_store %arg6[%c0_51, %c0_52, %c0_53], %82 {strides = array<i32>} : memref<1x6x256xbf16, #tpu.memory_space<vmem>>, vector<1x6x256xbf16>,
    return
  }
  func.func @transform_0(%arg0: i32) -> (i32, i32) {
    %c0_i32 = arith.constant 0 : i32
    %c0_i32_0 = arith.constant 0 : i32
    %c0_i32_1 = arith.constant 0 : i32
    return %c0_i32, %c0_i32_0 : i32, i32
  }
  func.func @transform_1(%arg0: i32) -> (i32, i32) {
    %c0_i32 = arith.constant 0 : i32
    %c0_i32_0 = arith.constant 0 : i32
    %c0_i32_1 = arith.constant 0 : i32
    return %c0_i32, %c0_i32_0 : i32, i32
  }
  func.func @transform_2(%arg0: i32) -> (i32, i32) {
    %c0_i32 = arith.constant 0 : i32
    %c0_i32_0 = arith.constant 0 : i32
    %c0_i32_1 = arith.constant 0 : i32
    return %c0_i32, %c0_i32_0 : i32, i32
  }
  func.func @transform_3(%arg0: i32) -> (i32, i32, i32) {
    %c0_i32 = arith.constant 0 : i32
    %c0_i32_0 = arith.constant 0 : i32
    %c0_i32_1 = arith.constant 0 : i32
    %c0_i32_2 = arith.constant 0 : i32
    return %c0_i32, %c0_i32_0, %c0_i32_1 : i32, i32, i32
  }
  func.func @transform_4(%arg0: i32) -> (i32, i32, i32) {
    %c0_i32 = arith.constant 0 : i32
    %c0_i32_0 = arith.constant 0 : i32
    %c0_i32_1 = arith.constant 0 : i32
    return %arg0, %c0_i32, %c0_i32_0 : i32, i32, i32
  }
  func.func @transform_5(%arg0: i32) -> (i32, i32, i32) {
    %c0_i32 = arith.constant 0 : i32
    %c0_i32_0 = arith.constant 0 : i32
    %c0_i32_1 = arith.constant 0 : i32
    return %arg0, %c0_i32, %c0_i32_0 : i32, i32, i32
  }
}

module attributes {stable_mosaic.version = 11 : i64} {
  func.func @kernel(%arg0: i32, %arg1: memref<9x256xf32, #tpu.memory_space<vmem>>, %arg2: memref<10x1xf32, #tpu.memory_space<vmem>>, %arg3: memref<10x1xf32, #tpu.memory_space<vmem>>, %arg4: memref<9x10x6xbf16, #tpu.memory_space<vmem>>, %arg5: memref<9x10x4xbf16, #tpu.memory_space<vmem>>, %arg6: memref<1x6x256xbf16, #tpu.memory_space<vmem>>, %arg7: memref<1x4x256xbf16, #tpu.memory_space<vmem>>, %arg8: memref<1x10x256xbf16, #tpu.memory_space<vmem>>) attributes {dimension_semantics = [#tpu.dimension_semantics<parallel>], iteration_bounds = array<i64: 2>, scalar_prefetch = 0 : i64, scratch_operands = 0 : i64, tpu.core_type = #tpu.core_type<tc>, window_params = [{pipeline_mode = #tpu.pipeline_mode<synchronous>, transform_indices = @transform_0, window_bounds = array<i64: 9, 256>}, {pipeline_mode = #tpu.pipeline_mode<synchronous>, transform_indices = @transform_1, window_bounds = array<i64: 10, 1>}, {pipeline_mode = #tpu.pipeline_mode<synchronous>, transform_indices = @transform_2, window_bounds = array<i64: 10, 1>}, {pipeline_mode = #tpu.pipeline_mode<synchronous>, transform_indices = @transform_3, window_bounds = array<i64: 9, 10, 6>}, {pipeline_mode = #tpu.pipeline_mode<synchronous>, transform_indices = @transform_4, window_bounds = array<i64: 9, 10, 4>}, {transform_indices = @transform_5, window_bounds = array<i64: 1, 6, 256>}, {transform_indices = @transform_6, window_bounds = array<i64: 1, 4, 256>}, {transform_indices = @transform_7, window_bounds = array<i64: 1, 10, 256>}]} {
    %c0 = arith.constant 0 : index
    %c0_0 = arith.constant 0 : index
    %c0_1 = arith.constant 0 : index
    %0 = vector.load %arg6[%c0, %c0_0, %c0_1] : memref<1x6x256xbf16, #tpu.memory_space<vmem>>, vector<1x6x256xbf16>
    %1 = vector.shape_cast %0 : vector<1x6x256xbf16> to vector<6x256xbf16>
    %c0_2 = arith.constant 0 : index
    %c0_3 = arith.constant 0 : index
    %c0_4 = arith.constant 0 : index
    %2 = vector.load %arg7[%c0_2, %c0_3, %c0_4] : memref<1x4x256xbf16, #tpu.memory_space<vmem>>, vector<1x4x256xbf16>
    %3 = vector.shape_cast %2 : vector<1x4x256xbf16> to vector<4x256xbf16>
    %cst = arith.constant 0.000000e+00 : f32
    %4 = vector.broadcast %cst : f32 to vector<10x256xf32>
    %c0_5 = arith.constant 0 : index
    %c0_6 = arith.constant 0 : index
    %c0_7 = arith.constant 0 : index
    %5 = vector.load %arg4[%c0_5, %c0_6, %c0_7] : memref<9x10x6xbf16, #tpu.memory_space<vmem>>, vector<1x10x6xbf16>
    %6 = vector.shape_cast %5 : vector<1x10x6xbf16> to vector<10x6xbf16>
    %cst_8 = arith.constant dense<0.000000e+00> : vector<10x256xf32>
    %7 = tpu.matmul %6, %1, %cst_8 {dimension_numbers = #tpu.dot_dimension_numbers<[1], [0], [0], [1], [0, 0, 1, 1], [], []>} : vector<10x6xbf16>, vector<6x256xbf16>, vector<10x256xf32> -> vector<10x256xf32>
    %c0_9 = arith.constant 0 : index
    %c0_10 = arith.constant 0 : index
    %c0_11 = arith.constant 0 : index
    %8 = vector.load %arg5[%c0_9, %c0_10, %c0_11] : memref<9x10x4xbf16, #tpu.memory_space<vmem>>, vector<1x10x4xbf16>
    %9 = vector.shape_cast %8 : vector<1x10x4xbf16> to vector<10x4xbf16>
    %cst_12 = arith.constant dense<0.000000e+00> : vector<10x256xf32>
    %10 = tpu.matmul %9, %3, %cst_12 {dimension_numbers = #tpu.dot_dimension_numbers<[1], [0], [0], [1], [0, 0, 1, 1], [], []>} : vector<10x4xbf16>, vector<4x256xbf16>, vector<10x256xf32> -> vector<10x256xf32>
    %11 = arith.addf %7, %10 : vector<10x256xf32>
    %c17_i32 = arith.constant 17 : i32
    %12 = tpu.dynamic_rotate %11 by %c17_i32 dim 1 : vector<10x256xf32>, i32 -> vector<10x256xf32>
    %c0_13 = arith.constant 0 : index
    %c0_14 = arith.constant 0 : index
    %13 = vector.load %arg1[%c0_13, %c0_14] : memref<9x256xf32, #tpu.memory_space<vmem>>, vector<1x256xf32>
    %14 = vector.broadcast %13 : vector<1x256xf32> to vector<10x256xf32>
    %15 = arith.mulf %12, %14 : vector<10x256xf32>
    %16 = arith.addf %4, %15 : vector<10x256xf32>
    %c1 = arith.constant 1 : index
    %c0_15 = arith.constant 0 : index
    %c0_16 = arith.constant 0 : index
    %17 = vector.load %arg4[%c1, %c0_15, %c0_16] : memref<9x10x6xbf16, #tpu.memory_space<vmem>>, vector<1x10x6xbf16>
    %18 = vector.shape_cast %17 : vector<1x10x6xbf16> to vector<10x6xbf16>
    %cst_17 = arith.constant dense<0.000000e+00> : vector<10x256xf32>
    %19 = tpu.matmul %18, %1, %cst_17 {dimension_numbers = #tpu.dot_dimension_numbers<[1], [0], [0], [1], [0, 0, 1, 1], [], []>} : vector<10x6xbf16>, vector<6x256xbf16>, vector<10x256xf32> -> vector<10x256xf32>
    %c1_18 = arith.constant 1 : index
    %c0_19 = arith.constant 0 : index
    %c0_20 = arith.constant 0 : index
    %20 = vector.load %arg5[%c1_18, %c0_19, %c0_20] : memref<9x10x4xbf16, #tpu.memory_space<vmem>>, vector<1x10x4xbf16>
    %21 = vector.shape_cast %20 : vector<1x10x4xbf16> to vector<10x4xbf16>
    %cst_21 = arith.constant dense<0.000000e+00> : vector<10x256xf32>
    %22 = tpu.matmul %21, %3, %cst_21 {dimension_numbers = #tpu.dot_dimension_numbers<[1], [0], [0], [1], [0, 0, 1, 1], [], []>} : vector<10x4xbf16>, vector<4x256xbf16>, vector<10x256xf32> -> vector<10x256xf32>
    %23 = arith.addf %19, %22 : vector<10x256xf32>
    %c16_i32 = arith.constant 16 : i32
    %24 = tpu.dynamic_rotate %23 by %c16_i32 dim 1 : vector<10x256xf32>, i32 -> vector<10x256xf32>
    %c1_22 = arith.constant 1 : index
    %c0_23 = arith.constant 0 : index
    %25 = vector.load %arg1[%c1_22, %c0_23] : memref<9x256xf32, #tpu.memory_space<vmem>>, vector<1x256xf32>
    %26 = vector.broadcast %25 : vector<1x256xf32> to vector<10x256xf32>
    %27 = arith.mulf %24, %26 : vector<10x256xf32>
    %28 = arith.addf %16, %27 : vector<10x256xf32>
    %c2 = arith.constant 2 : index
    %c0_24 = arith.constant 0 : index
    %c0_25 = arith.constant 0 : index
    %29 = vector.load %arg4[%c2, %c0_24, %c0_25] : memref<9x10x6xbf16, #tpu.memory_space<vmem>>, vector<1x10x6xbf16>
    %30 = vector.shape_cast %29 : vector<1x10x6xbf16> to vector<10x6xbf16>
    %cst_26 = arith.constant dense<0.000000e+00> : vector<10x256xf32>
    %31 = tpu.matmul %30, %1, %cst_26 {dimension_numbers = #tpu.dot_dimension_numbers<[1], [0], [0], [1], [0, 0, 1, 1], [], []>} : vector<10x6xbf16>, vector<6x256xbf16>, vector<10x256xf32> -> vector<10x256xf32>
    %c2_27 = arith.constant 2 : index
    %c0_28 = arith.constant 0 : index
    %c0_29 = arith.constant 0 : index
    %32 = vector.load %arg5[%c2_27, %c0_28, %c0_29] : memref<9x10x4xbf16, #tpu.memory_space<vmem>>, vector<1x10x4xbf16>
    %33 = vector.shape_cast %32 : vector<1x10x4xbf16> to vector<10x4xbf16>
    %cst_30 = arith.constant dense<0.000000e+00> : vector<10x256xf32>
    %34 = tpu.matmul %33, %3, %cst_30 {dimension_numbers = #tpu.dot_dimension_numbers<[1], [0], [0], [1], [0, 0, 1, 1], [], []>} : vector<10x4xbf16>, vector<4x256xbf16>, vector<10x256xf32> -> vector<10x256xf32>
    %35 = arith.addf %31, %34 : vector<10x256xf32>
    %c15_i32 = arith.constant 15 : i32
    %36 = tpu.dynamic_rotate %35 by %c15_i32 dim 1 : vector<10x256xf32>, i32 -> vector<10x256xf32>
    %c2_31 = arith.constant 2 : index
    %c0_32 = arith.constant 0 : index
    %37 = vector.load %arg1[%c2_31, %c0_32] : memref<9x256xf32, #tpu.memory_space<vmem>>, vector<1x256xf32>
    %38 = vector.broadcast %37 : vector<1x256xf32> to vector<10x256xf32>
    %39 = arith.mulf %36, %38 : vector<10x256xf32>
    %40 = arith.addf %28, %39 : vector<10x256xf32>
    %c3 = arith.constant 3 : index
    %c0_33 = arith.constant 0 : index
    %c0_34 = arith.constant 0 : index
    %41 = vector.load %arg4[%c3, %c0_33, %c0_34] : memref<9x10x6xbf16, #tpu.memory_space<vmem>>, vector<1x10x6xbf16>
    %42 = vector.shape_cast %41 : vector<1x10x6xbf16> to vector<10x6xbf16>
    %cst_35 = arith.constant dense<0.000000e+00> : vector<10x256xf32>
    %43 = tpu.matmul %42, %1, %cst_35 {dimension_numbers = #tpu.dot_dimension_numbers<[1], [0], [0], [1], [0, 0, 1, 1], [], []>} : vector<10x6xbf16>, vector<6x256xbf16>, vector<10x256xf32> -> vector<10x256xf32>
    %c3_36 = arith.constant 3 : index
    %c0_37 = arith.constant 0 : index
    %c0_38 = arith.constant 0 : index
    %44 = vector.load %arg5[%c3_36, %c0_37, %c0_38] : memref<9x10x4xbf16, #tpu.memory_space<vmem>>, vector<1x10x4xbf16>
    %45 = vector.shape_cast %44 : vector<1x10x4xbf16> to vector<10x4xbf16>
    %cst_39 = arith.constant dense<0.000000e+00> : vector<10x256xf32>
    %46 = tpu.matmul %45, %3, %cst_39 {dimension_numbers = #tpu.dot_dimension_numbers<[1], [0], [0], [1], [0, 0, 1, 1], [], []>} : vector<10x4xbf16>, vector<4x256xbf16>, vector<10x256xf32> -> vector<10x256xf32>
    %47 = arith.addf %43, %46 : vector<10x256xf32>
    %c1_i32 = arith.constant 1 : i32
    %48 = tpu.dynamic_rotate %47 by %c1_i32 dim 1 : vector<10x256xf32>, i32 -> vector<10x256xf32>
    %c3_40 = arith.constant 3 : index
    %c0_41 = arith.constant 0 : index
    %49 = vector.load %arg1[%c3_40, %c0_41] : memref<9x256xf32, #tpu.memory_space<vmem>>, vector<1x256xf32>
    %50 = vector.broadcast %49 : vector<1x256xf32> to vector<10x256xf32>
    %51 = arith.mulf %48, %50 : vector<10x256xf32>
    %52 = arith.addf %40, %51 : vector<10x256xf32>
    %c4 = arith.constant 4 : index
    %c0_42 = arith.constant 0 : index
    %c0_43 = arith.constant 0 : index
    %53 = vector.load %arg4[%c4, %c0_42, %c0_43] : memref<9x10x6xbf16, #tpu.memory_space<vmem>>, vector<1x10x6xbf16>
    %54 = vector.shape_cast %53 : vector<1x10x6xbf16> to vector<10x6xbf16>
    %cst_44 = arith.constant dense<0.000000e+00> : vector<10x256xf32>
    %55 = tpu.matmul %54, %1, %cst_44 {dimension_numbers = #tpu.dot_dimension_numbers<[1], [0], [0], [1], [0, 0, 1, 1], [], []>} : vector<10x6xbf16>, vector<6x256xbf16>, vector<10x256xf32> -> vector<10x256xf32>
    %c4_45 = arith.constant 4 : index
    %c0_46 = arith.constant 0 : index
    %c0_47 = arith.constant 0 : index
    %56 = vector.load %arg5[%c4_45, %c0_46, %c0_47] : memref<9x10x4xbf16, #tpu.memory_space<vmem>>, vector<1x10x4xbf16>
    %57 = vector.shape_cast %56 : vector<1x10x4xbf16> to vector<10x4xbf16>
    %cst_48 = arith.constant dense<0.000000e+00> : vector<10x256xf32>
    %58 = tpu.matmul %57, %3, %cst_48 {dimension_numbers = #tpu.dot_dimension_numbers<[1], [0], [0], [1], [0, 0, 1, 1], [], []>} : vector<10x4xbf16>, vector<4x256xbf16>, vector<10x256xf32> -> vector<10x256xf32>
    %59 = arith.addf %55, %58 : vector<10x256xf32>
    %60 = arith.addf %52, %59 : vector<10x256xf32>
    %c5 = arith.constant 5 : index
    %c0_49 = arith.constant 0 : index
    %c0_50 = arith.constant 0 : index
    %61 = vector.load %arg4[%c5, %c0_49, %c0_50] : memref<9x10x6xbf16, #tpu.memory_space<vmem>>, vector<1x10x6xbf16>
    %62 = vector.shape_cast %61 : vector<1x10x6xbf16> to vector<10x6xbf16>
    %cst_51 = arith.constant dense<0.000000e+00> : vector<10x256xf32>
    %63 = tpu.matmul %62, %1, %cst_51 {dimension_numbers = #tpu.dot_dimension_numbers<[1], [0], [0], [1], [0, 0, 1, 1], [], []>} : vector<10x6xbf16>, vector<6x256xbf16>, vector<10x256xf32> -> vector<10x256xf32>
    %c5_52 = arith.constant 5 : index
    %c0_53 = arith.constant 0 : index
    %c0_54 = arith.constant 0 : index
    %64 = vector.load %arg5[%c5_52, %c0_53, %c0_54] : memref<9x10x4xbf16, #tpu.memory_space<vmem>>, vector<1x10x4xbf16>
    %65 = vector.shape_cast %64 : vector<1x10x4xbf16> to vector<10x4xbf16>
    %cst_55 = arith.constant dense<0.000000e+00> : vector<10x256xf32>
    %66 = tpu.matmul %65, %3, %cst_55 {dimension_numbers = #tpu.dot_dimension_numbers<[1], [0], [0], [1], [0, 0, 1, 1], [], []>} : vector<10x4xbf16>, vector<4x256xbf16>, vector<10x256xf32> -> vector<10x256xf32>
    %67 = arith.addf %63, %66 : vector<10x256xf32>
    %c255_i32 = arith.constant 255 : i32
    %68 = tpu.dynamic_rotate %67 by %c255_i32 dim 1 : vector<10x256xf32>, i32 -> vector<10x256xf32>
    %c5_56 = arith.constant 5 : index
    %c0_57 = arith.constant 0 : index
    %69 = vector.load %arg1[%c5_56, %c0_57] : memref<9x256xf32, #tpu.memory_space<vmem>>, vector<1x256xf32>
    %70 = vector.broadcast %69 : vector<1x256xf32> to vector<10x256xf32>
    %71 = arith.mulf %68, %70 : vector<10x256xf32>
    %72 = arith.addf %60, %71 : vector<10x256xf32>
    %c6 = arith.constant 6 : index
    %c0_58 = arith.constant 0 : index
    %c0_59 = arith.constant 0 : index
    %73 = vector.load %arg4[%c6, %c0_58, %c0_59] : memref<9x10x6xbf16, #tpu.memory_space<vmem>>, vector<1x10x6xbf16>
    %74 = vector.shape_cast %73 : vector<1x10x6xbf16> to vector<10x6xbf16>
    %cst_60 = arith.constant dense<0.000000e+00> : vector<10x256xf32>
    %75 = tpu.matmul %74, %1, %cst_60 {dimension_numbers = #tpu.dot_dimension_numbers<[1], [0], [0], [1], [0, 0, 1, 1], [], []>} : vector<10x6xbf16>, vector<6x256xbf16>, vector<10x256xf32> -> vector<10x256xf32>
    %c6_61 = arith.constant 6 : index
    %c0_62 = arith.constant 0 : index
    %c0_63 = arith.constant 0 : index
    %76 = vector.load %arg5[%c6_61, %c0_62, %c0_63] : memref<9x10x4xbf16, #tpu.memory_space<vmem>>, vector<1x10x4xbf16>
    %77 = vector.shape_cast %76 : vector<1x10x4xbf16> to vector<10x4xbf16>
    %cst_64 = arith.constant dense<0.000000e+00> : vector<10x256xf32>
    %78 = tpu.matmul %77, %3, %cst_64 {dimension_numbers = #tpu.dot_dimension_numbers<[1], [0], [0], [1], [0, 0, 1, 1], [], []>} : vector<10x4xbf16>, vector<4x256xbf16>, vector<10x256xf32> -> vector<10x256xf32>
    %79 = arith.addf %75, %78 : vector<10x256xf32>
    %c241_i32 = arith.constant 241 : i32
    %80 = tpu.dynamic_rotate %79 by %c241_i32 dim 1 : vector<10x256xf32>, i32 -> vector<10x256xf32>
    %c6_65 = arith.constant 6 : index
    %c0_66 = arith.constant 0 : index
    %81 = vector.load %arg1[%c6_65, %c0_66] : memref<9x256xf32, #tpu.memory_space<vmem>>, vector<1x256xf32>
    %82 = vector.broadcast %81 : vector<1x256xf32> to vector<10x256xf32>
    %83 = arith.mulf %80, %82 : vector<10x256xf32>
    %84 = arith.addf %72, %83 : vector<10x256xf32>
    %c7 = arith.constant 7 : index
    %c0_67 = arith.constant 0 : index
    %c0_68 = arith.constant 0 : index
    %85 = vector.load %arg4[%c7, %c0_67, %c0_68] : memref<9x10x6xbf16, #tpu.memory_space<vmem>>, vector<1x10x6xbf16>
    %86 = vector.shape_cast %85 : vector<1x10x6xbf16> to vector<10x6xbf16>
    %cst_69 = arith.constant dense<0.000000e+00> : vector<10x256xf32>
    %87 = tpu.matmul %86, %1, %cst_69 {dimension_numbers = #tpu.dot_dimension_numbers<[1], [0], [0], [1], [0, 0, 1, 1], [], []>} : vector<10x6xbf16>, vector<6x256xbf16>, vector<10x256xf32> -> vector<10x256xf32>
    %c7_70 = arith.constant 7 : index
    %c0_71 = arith.constant 0 : index
    %c0_72 = arith.constant 0 : index
    %88 = vector.load %arg5[%c7_70, %c0_71, %c0_72] : memref<9x10x4xbf16, #tpu.memory_space<vmem>>, vector<1x10x4xbf16>
    %89 = vector.shape_cast %88 : vector<1x10x4xbf16> to vector<10x4xbf16>
    %cst_73 = arith.constant dense<0.000000e+00> : vector<10x256xf32>
    %90 = tpu.matmul %89, %3, %cst_73 {dimension_numbers = #tpu.dot_dimension_numbers<[1], [0], [0], [1], [0, 0, 1, 1], [], []>} : vector<10x4xbf16>, vector<4x256xbf16>, vector<10x256xf32> -> vector<10x256xf32>
    %91 = arith.addf %87, %90 : vector<10x256xf32>
    %c240_i32 = arith.constant 240 : i32
    %92 = tpu.dynamic_rotate %91 by %c240_i32 dim 1 : vector<10x256xf32>, i32 -> vector<10x256xf32>
    %c7_74 = arith.constant 7 : index
    %c0_75 = arith.constant 0 : index
    %93 = vector.load %arg1[%c7_74, %c0_75] : memref<9x256xf32, #tpu.memory_space<vmem>>, vector<1x256xf32>
    %94 = vector.broadcast %93 : vector<1x256xf32> to vector<10x256xf32>
    %95 = arith.mulf %92, %94 : vector<10x256xf32>
    %96 = arith.addf %84, %95 : vector<10x256xf32>
    %c8 = arith.constant 8 : index
    %c0_76 = arith.constant 0 : index
    %c0_77 = arith.constant 0 : index
    %97 = vector.load %arg4[%c8, %c0_76, %c0_77] : memref<9x10x6xbf16, #tpu.memory_space<vmem>>, vector<1x10x6xbf16>
    %98 = vector.shape_cast %97 : vector<1x10x6xbf16> to vector<10x6xbf16>
    %cst_78 = arith.constant dense<0.000000e+00> : vector<10x256xf32>
    %99 = tpu.matmul %98, %1, %cst_78 {dimension_numbers = #tpu.dot_dimension_numbers<[1], [0], [0], [1], [0, 0, 1, 1], [], []>} : vector<10x6xbf16>, vector<6x256xbf16>, vector<10x256xf32> -> vector<10x256xf32>
    %c8_79 = arith.constant 8 : index
    %c0_80 = arith.constant 0 : index
    %c0_81 = arith.constant 0 : index
    %100 = vector.load %arg5[%c8_79, %c0_80, %c0_81] : memref<9x10x4xbf16, #tpu.memory_space<vmem>>, vector<1x10x4xbf16>
    %101 = vector.shape_cast %100 : vector<1x10x4xbf16> to vector<10x4xbf16>
    %cst_82 = arith.constant dense<0.000000e+00> : vector<10x256xf32>
    %102 = tpu.matmul %101, %3, %cst_82 {dimension_numbers = #tpu.dot_dimension_numbers<[1], [0], [0], [1], [0, 0, 1, 1], [], []>} : vector<10x4xbf16>, vector<4x256xbf16>, vector<10x256xf32> -> vector<10x256xf32>
    %103 = arith.addf %99, %102 : vector<10x256xf32>
    %c239_i32 = arith.constant 239 : i32
    %104 = tpu.dynamic_rotate %103 by %c239_i32 dim 1 : vector<10x256xf32>, i32 -> vector<10x256xf32>
    %c8_83 = arith.constant 8 : index
    %c0_84 = arith.constant 0 : index
    %105 = vector.load %arg1[%c8_83, %c0_84] : memref<9x256xf32, #tpu.memory_space<vmem>>, vector<1x256xf32>
    %106 = vector.broadcast %105 : vector<1x256xf32> to vector<10x256xf32>
    %107 = arith.mulf %104, %106 : vector<10x256xf32>
    %108 = arith.addf %96, %107 : vector<10x256xf32>
    %c0_85 = arith.constant 0 : index
    %c0_86 = arith.constant 0 : index
    %109 = vector.load %arg2[%c0_85, %c0_86] : memref<10x1xf32, #tpu.memory_space<vmem>>, vector<10x1xf32>
    %110 = vector.broadcast %109 : vector<10x1xf32> to vector<10x256xf32>
    %111 = arith.mulf %108, %110 : vector<10x256xf32>
    %c0_87 = arith.constant 0 : index
    %c0_88 = arith.constant 0 : index
    %112 = vector.load %arg3[%c0_87, %c0_88] : memref<10x1xf32, #tpu.memory_space<vmem>>, vector<10x1xf32>
    %113 = vector.broadcast %112 : vector<10x1xf32> to vector<10x256xf32>
    %114 = arith.addf %111, %113 : vector<10x256xf32>
    %cst_89 = arith.constant 0.000000e+00 : f32
    %115 = vector.broadcast %cst_89 : f32 to vector<10x256xf32>
    %116 = arith.maximumf %114, %115 : vector<10x256xf32>
    %117 = arith.truncf %116 : vector<10x256xf32> to vector<10x256xbf16>
    %c0_90 = arith.constant 0 : index
    %c0_91 = arith.constant 0 : index
    %c0_92 = arith.constant 0 : index
    %118 = vector.load %arg8[%c0_90, %c0_91, %c0_92] : memref<1x10x256xbf16, #tpu.memory_space<vmem>>, vector<1x10x256xbf16>
    %119 = vector.shape_cast %118 : vector<1x10x256xbf16> to vector<10x256xbf16>
    %120 = vector.shape_cast %117 : vector<10x256xbf16> to vector<1x10x256xbf16>
    tpu.vector_store %arg8[%c0_90, %c0_91, %c0_92], %120 {strides = array<i32>} : memref<1x10x256xbf16, #tpu.memory_space<vmem>>, vector<1x10x256xbf16>,
    return
  }
  func.func @transform_0(%arg0: i32) -> (i32, i32) {
    %c0_i32 = arith.constant 0 : i32
    %c0_i32_0 = arith.constant 0 : i32
    %c0_i32_1 = arith.constant 0 : i32
    return %c0_i32, %c0_i32_0 : i32, i32
  }
  func.func @transform_1(%arg0: i32) -> (i32, i32) {
    %c0_i32 = arith.constant 0 : i32
    %c0_i32_0 = arith.constant 0 : i32
    %c0_i32_1 = arith.constant 0 : i32
    return %c0_i32, %c0_i32_0 : i32, i32
  }
  func.func @transform_2(%arg0: i32) -> (i32, i32) {
    %c0_i32 = arith.constant 0 : i32
    %c0_i32_0 = arith.constant 0 : i32
    %c0_i32_1 = arith.constant 0 : i32
    return %c0_i32, %c0_i32_0 : i32, i32
  }
  func.func @transform_3(%arg0: i32) -> (i32, i32, i32) {
    %c0_i32 = arith.constant 0 : i32
    %c0_i32_0 = arith.constant 0 : i32
    %c0_i32_1 = arith.constant 0 : i32
    %c0_i32_2 = arith.constant 0 : i32
    return %c0_i32, %c0_i32_0, %c0_i32_1 : i32, i32, i32
  }
  func.func @transform_4(%arg0: i32) -> (i32, i32, i32) {
    %c0_i32 = arith.constant 0 : i32
    %c0_i32_0 = arith.constant 0 : i32
    %c0_i32_1 = arith.constant 0 : i32
    %c0_i32_2 = arith.constant 0 : i32
    return %c0_i32, %c0_i32_0, %c0_i32_1 : i32, i32, i32
  }
  func.func @transform_5(%arg0: i32) -> (i32, i32, i32) {
    %c0_i32 = arith.constant 0 : i32
    %c0_i32_0 = arith.constant 0 : i32
    %c0_i32_1 = arith.constant 0 : i32
    return %arg0, %c0_i32, %c0_i32_0 : i32, i32, i32
  }
  func.func @transform_6(%arg0: i32) -> (i32, i32, i32) {
    %c0_i32 = arith.constant 0 : i32
    %c0_i32_0 = arith.constant 0 : i32
    %c0_i32_1 = arith.constant 0 : i32
    return %arg0, %c0_i32, %c0_i32_0 : i32, i32, i32
  }
  func.func @transform_7(%arg0: i32) -> (i32, i32, i32) {
    %c0_i32 = arith.constant 0 : i32
    %c0_i32_0 = arith.constant 0 : i32
    %c0_i32_1 = arith.constant 0 : i32
    return %arg0, %c0_i32, %c0_i32_0 : i32, i32, i32
  }
}

module attributes {stable_mosaic.version = 11 : i64} {
  func.func @kernel(%arg0: i32, %arg1: memref<9x256xf32, #tpu.memory_space<vmem>>, %arg2: memref<6x1xf32, #tpu.memory_space<vmem>>, %arg3: memref<6x1xf32, #tpu.memory_space<vmem>>, %arg4: memref<9x6x10xbf16, #tpu.memory_space<vmem>>, %arg5: memref<1x10x256xbf16, #tpu.memory_space<vmem>>, %arg6: memref<1x6x256xbf16, #tpu.memory_space<vmem>>) attributes {dimension_semantics = [#tpu.dimension_semantics<parallel>], iteration_bounds = array<i64: 2>, scalar_prefetch = 0 : i64, scratch_operands = 0 : i64, tpu.core_type = #tpu.core_type<tc>, window_params = [{pipeline_mode = #tpu.pipeline_mode<synchronous>, transform_indices = @transform_0, window_bounds = array<i64: 9, 256>}, {pipeline_mode = #tpu.pipeline_mode<synchronous>, transform_indices = @transform_1, window_bounds = array<i64: 6, 1>}, {pipeline_mode = #tpu.pipeline_mode<synchronous>, transform_indices = @transform_2, window_bounds = array<i64: 6, 1>}, {pipeline_mode = #tpu.pipeline_mode<synchronous>, transform_indices = @transform_3, window_bounds = array<i64: 9, 6, 10>}, {transform_indices = @transform_4, window_bounds = array<i64: 1, 10, 256>}, {transform_indices = @transform_5, window_bounds = array<i64: 1, 6, 256>}]} {
    %c0 = arith.constant 0 : index
    %c0_0 = arith.constant 0 : index
    %c0_1 = arith.constant 0 : index
    %0 = vector.load %arg5[%c0, %c0_0, %c0_1] : memref<1x10x256xbf16, #tpu.memory_space<vmem>>, vector<1x10x256xbf16>
    %1 = vector.shape_cast %0 : vector<1x10x256xbf16> to vector<10x256xbf16>
    %cst = arith.constant 0.000000e+00 : f32
    %2 = vector.broadcast %cst : f32 to vector<6x256xf32>
    %c0_2 = arith.constant 0 : index
    %c0_3 = arith.constant 0 : index
    %c0_4 = arith.constant 0 : index
    %3 = vector.load %arg4[%c0_2, %c0_3, %c0_4] : memref<9x6x10xbf16, #tpu.memory_space<vmem>>, vector<1x6x10xbf16>
    %4 = vector.shape_cast %3 : vector<1x6x10xbf16> to vector<6x10xbf16>
    %cst_5 = arith.constant dense<0.000000e+00> : vector<6x256xf32>
    %5 = tpu.matmul %4, %1, %cst_5 {dimension_numbers = #tpu.dot_dimension_numbers<[1], [0], [0], [1], [0, 0, 1, 1], [], []>} : vector<6x10xbf16>, vector<10x256xbf16>, vector<6x256xf32> -> vector<6x256xf32>
    %c17_i32 = arith.constant 17 : i32
    %6 = tpu.dynamic_rotate %5 by %c17_i32 dim 1 : vector<6x256xf32>, i32 -> vector<6x256xf32>
    %c0_6 = arith.constant 0 : index
    %c0_7 = arith.constant 0 : index
    %7 = vector.load %arg1[%c0_6, %c0_7] : memref<9x256xf32, #tpu.memory_space<vmem>>, vector<1x256xf32>
    %8 = vector.broadcast %7 : vector<1x256xf32> to vector<6x256xf32>
    %9 = arith.mulf %6, %8 : vector<6x256xf32>
    %10 = arith.addf %2, %9 : vector<6x256xf32>
    %c1 = arith.constant 1 : index
    %c0_8 = arith.constant 0 : index
    %c0_9 = arith.constant 0 : index
    %11 = vector.load %arg4[%c1, %c0_8, %c0_9] : memref<9x6x10xbf16, #tpu.memory_space<vmem>>, vector<1x6x10xbf16>
    %12 = vector.shape_cast %11 : vector<1x6x10xbf16> to vector<6x10xbf16>
    %cst_10 = arith.constant dense<0.000000e+00> : vector<6x256xf32>
    %13 = tpu.matmul %12, %1, %cst_10 {dimension_numbers = #tpu.dot_dimension_numbers<[1], [0], [0], [1], [0, 0, 1, 1], [], []>} : vector<6x10xbf16>, vector<10x256xbf16>, vector<6x256xf32> -> vector<6x256xf32>
    %c16_i32 = arith.constant 16 : i32
    %14 = tpu.dynamic_rotate %13 by %c16_i32 dim 1 : vector<6x256xf32>, i32 -> vector<6x256xf32>
    %c1_11 = arith.constant 1 : index
    %c0_12 = arith.constant 0 : index
    %15 = vector.load %arg1[%c1_11, %c0_12] : memref<9x256xf32, #tpu.memory_space<vmem>>, vector<1x256xf32>
    %16 = vector.broadcast %15 : vector<1x256xf32> to vector<6x256xf32>
    %17 = arith.mulf %14, %16 : vector<6x256xf32>
    %18 = arith.addf %10, %17 : vector<6x256xf32>
    %c2 = arith.constant 2 : index
    %c0_13 = arith.constant 0 : index
    %c0_14 = arith.constant 0 : index
    %19 = vector.load %arg4[%c2, %c0_13, %c0_14] : memref<9x6x10xbf16, #tpu.memory_space<vmem>>, vector<1x6x10xbf16>
    %20 = vector.shape_cast %19 : vector<1x6x10xbf16> to vector<6x10xbf16>
    %cst_15 = arith.constant dense<0.000000e+00> : vector<6x256xf32>
    %21 = tpu.matmul %20, %1, %cst_15 {dimension_numbers = #tpu.dot_dimension_numbers<[1], [0], [0], [1], [0, 0, 1, 1], [], []>} : vector<6x10xbf16>, vector<10x256xbf16>, vector<6x256xf32> -> vector<6x256xf32>
    %c15_i32 = arith.constant 15 : i32
    %22 = tpu.dynamic_rotate %21 by %c15_i32 dim 1 : vector<6x256xf32>, i32 -> vector<6x256xf32>
    %c2_16 = arith.constant 2 : index
    %c0_17 = arith.constant 0 : index
    %23 = vector.load %arg1[%c2_16, %c0_17] : memref<9x256xf32, #tpu.memory_space<vmem>>, vector<1x256xf32>
    %24 = vector.broadcast %23 : vector<1x256xf32> to vector<6x256xf32>
    %25 = arith.mulf %22, %24 : vector<6x256xf32>
    %26 = arith.addf %18, %25 : vector<6x256xf32>
    %c3 = arith.constant 3 : index
    %c0_18 = arith.constant 0 : index
    %c0_19 = arith.constant 0 : index
    %27 = vector.load %arg4[%c3, %c0_18, %c0_19] : memref<9x6x10xbf16, #tpu.memory_space<vmem>>, vector<1x6x10xbf16>
    %28 = vector.shape_cast %27 : vector<1x6x10xbf16> to vector<6x10xbf16>
    %cst_20 = arith.constant dense<0.000000e+00> : vector<6x256xf32>
    %29 = tpu.matmul %28, %1, %cst_20 {dimension_numbers = #tpu.dot_dimension_numbers<[1], [0], [0], [1], [0, 0, 1, 1], [], []>} : vector<6x10xbf16>, vector<10x256xbf16>, vector<6x256xf32> -> vector<6x256xf32>
    %c1_i32 = arith.constant 1 : i32
    %30 = tpu.dynamic_rotate %29 by %c1_i32 dim 1 : vector<6x256xf32>, i32 -> vector<6x256xf32>
    %c3_21 = arith.constant 3 : index
    %c0_22 = arith.constant 0 : index
    %31 = vector.load %arg1[%c3_21, %c0_22] : memref<9x256xf32, #tpu.memory_space<vmem>>, vector<1x256xf32>
    %32 = vector.broadcast %31 : vector<1x256xf32> to vector<6x256xf32>
    %33 = arith.mulf %30, %32 : vector<6x256xf32>
    %34 = arith.addf %26, %33 : vector<6x256xf32>
    %c4 = arith.constant 4 : index
    %c0_23 = arith.constant 0 : index
    %c0_24 = arith.constant 0 : index
    %35 = vector.load %arg4[%c4, %c0_23, %c0_24] : memref<9x6x10xbf16, #tpu.memory_space<vmem>>, vector<1x6x10xbf16>
    %36 = vector.shape_cast %35 : vector<1x6x10xbf16> to vector<6x10xbf16>
    %cst_25 = arith.constant dense<0.000000e+00> : vector<6x256xf32>
    %37 = tpu.matmul %36, %1, %cst_25 {dimension_numbers = #tpu.dot_dimension_numbers<[1], [0], [0], [1], [0, 0, 1, 1], [], []>} : vector<6x10xbf16>, vector<10x256xbf16>, vector<6x256xf32> -> vector<6x256xf32>
    %38 = arith.addf %34, %37 : vector<6x256xf32>
    %c5 = arith.constant 5 : index
    %c0_26 = arith.constant 0 : index
    %c0_27 = arith.constant 0 : index
    %39 = vector.load %arg4[%c5, %c0_26, %c0_27] : memref<9x6x10xbf16, #tpu.memory_space<vmem>>, vector<1x6x10xbf16>
    %40 = vector.shape_cast %39 : vector<1x6x10xbf16> to vector<6x10xbf16>
    %cst_28 = arith.constant dense<0.000000e+00> : vector<6x256xf32>
    %41 = tpu.matmul %40, %1, %cst_28 {dimension_numbers = #tpu.dot_dimension_numbers<[1], [0], [0], [1], [0, 0, 1, 1], [], []>} : vector<6x10xbf16>, vector<10x256xbf16>, vector<6x256xf32> -> vector<6x256xf32>
    %c255_i32 = arith.constant 255 : i32
    %42 = tpu.dynamic_rotate %41 by %c255_i32 dim 1 : vector<6x256xf32>, i32 -> vector<6x256xf32>
    %c5_29 = arith.constant 5 : index
    %c0_30 = arith.constant 0 : index
    %43 = vector.load %arg1[%c5_29, %c0_30] : memref<9x256xf32, #tpu.memory_space<vmem>>, vector<1x256xf32>
    %44 = vector.broadcast %43 : vector<1x256xf32> to vector<6x256xf32>
    %45 = arith.mulf %42, %44 : vector<6x256xf32>
    %46 = arith.addf %38, %45 : vector<6x256xf32>
    %c6 = arith.constant 6 : index
    %c0_31 = arith.constant 0 : index
    %c0_32 = arith.constant 0 : index
    %47 = vector.load %arg4[%c6, %c0_31, %c0_32] : memref<9x6x10xbf16, #tpu.memory_space<vmem>>, vector<1x6x10xbf16>
    %48 = vector.shape_cast %47 : vector<1x6x10xbf16> to vector<6x10xbf16>
    %cst_33 = arith.constant dense<0.000000e+00> : vector<6x256xf32>
    %49 = tpu.matmul %48, %1, %cst_33 {dimension_numbers = #tpu.dot_dimension_numbers<[1], [0], [0], [1], [0, 0, 1, 1], [], []>} : vector<6x10xbf16>, vector<10x256xbf16>, vector<6x256xf32> -> vector<6x256xf32>
    %c241_i32 = arith.constant 241 : i32
    %50 = tpu.dynamic_rotate %49 by %c241_i32 dim 1 : vector<6x256xf32>, i32 -> vector<6x256xf32>
    %c6_34 = arith.constant 6 : index
    %c0_35 = arith.constant 0 : index
    %51 = vector.load %arg1[%c6_34, %c0_35] : memref<9x256xf32, #tpu.memory_space<vmem>>, vector<1x256xf32>
    %52 = vector.broadcast %51 : vector<1x256xf32> to vector<6x256xf32>
    %53 = arith.mulf %50, %52 : vector<6x256xf32>
    %54 = arith.addf %46, %53 : vector<6x256xf32>
    %c7 = arith.constant 7 : index
    %c0_36 = arith.constant 0 : index
    %c0_37 = arith.constant 0 : index
    %55 = vector.load %arg4[%c7, %c0_36, %c0_37] : memref<9x6x10xbf16, #tpu.memory_space<vmem>>, vector<1x6x10xbf16>
    %56 = vector.shape_cast %55 : vector<1x6x10xbf16> to vector<6x10xbf16>
    %cst_38 = arith.constant dense<0.000000e+00> : vector<6x256xf32>
    %57 = tpu.matmul %56, %1, %cst_38 {dimension_numbers = #tpu.dot_dimension_numbers<[1], [0], [0], [1], [0, 0, 1, 1], [], []>} : vector<6x10xbf16>, vector<10x256xbf16>, vector<6x256xf32> -> vector<6x256xf32>
    %c240_i32 = arith.constant 240 : i32
    %58 = tpu.dynamic_rotate %57 by %c240_i32 dim 1 : vector<6x256xf32>, i32 -> vector<6x256xf32>
    %c7_39 = arith.constant 7 : index
    %c0_40 = arith.constant 0 : index
    %59 = vector.load %arg1[%c7_39, %c0_40] : memref<9x256xf32, #tpu.memory_space<vmem>>, vector<1x256xf32>
    %60 = vector.broadcast %59 : vector<1x256xf32> to vector<6x256xf32>
    %61 = arith.mulf %58, %60 : vector<6x256xf32>
    %62 = arith.addf %54, %61 : vector<6x256xf32>
    %c8 = arith.constant 8 : index
    %c0_41 = arith.constant 0 : index
    %c0_42 = arith.constant 0 : index
    %63 = vector.load %arg4[%c8, %c0_41, %c0_42] : memref<9x6x10xbf16, #tpu.memory_space<vmem>>, vector<1x6x10xbf16>
    %64 = vector.shape_cast %63 : vector<1x6x10xbf16> to vector<6x10xbf16>
    %cst_43 = arith.constant dense<0.000000e+00> : vector<6x256xf32>
    %65 = tpu.matmul %64, %1, %cst_43 {dimension_numbers = #tpu.dot_dimension_numbers<[1], [0], [0], [1], [0, 0, 1, 1], [], []>} : vector<6x10xbf16>, vector<10x256xbf16>, vector<6x256xf32> -> vector<6x256xf32>
    %c239_i32 = arith.constant 239 : i32
    %66 = tpu.dynamic_rotate %65 by %c239_i32 dim 1 : vector<6x256xf32>, i32 -> vector<6x256xf32>
    %c8_44 = arith.constant 8 : index
    %c0_45 = arith.constant 0 : index
    %67 = vector.load %arg1[%c8_44, %c0_45] : memref<9x256xf32, #tpu.memory_space<vmem>>, vector<1x256xf32>
    %68 = vector.broadcast %67 : vector<1x256xf32> to vector<6x256xf32>
    %69 = arith.mulf %66, %68 : vector<6x256xf32>
    %70 = arith.addf %62, %69 : vector<6x256xf32>
    %c0_46 = arith.constant 0 : index
    %c0_47 = arith.constant 0 : index
    %71 = vector.load %arg2[%c0_46, %c0_47] : memref<6x1xf32, #tpu.memory_space<vmem>>, vector<6x1xf32>
    %72 = vector.broadcast %71 : vector<6x1xf32> to vector<6x256xf32>
    %73 = arith.mulf %70, %72 : vector<6x256xf32>
    %c0_48 = arith.constant 0 : index
    %c0_49 = arith.constant 0 : index
    %74 = vector.load %arg3[%c0_48, %c0_49] : memref<6x1xf32, #tpu.memory_space<vmem>>, vector<6x1xf32>
    %75 = vector.broadcast %74 : vector<6x1xf32> to vector<6x256xf32>
    %76 = arith.addf %73, %75 : vector<6x256xf32>
    %cst_50 = arith.constant 0.000000e+00 : f32
    %77 = vector.broadcast %cst_50 : f32 to vector<6x256xf32>
    %78 = arith.maximumf %76, %77 : vector<6x256xf32>
    %79 = arith.truncf %78 : vector<6x256xf32> to vector<6x256xbf16>
    %c0_51 = arith.constant 0 : index
    %c0_52 = arith.constant 0 : index
    %c0_53 = arith.constant 0 : index
    %80 = vector.load %arg6[%c0_51, %c0_52, %c0_53] : memref<1x6x256xbf16, #tpu.memory_space<vmem>>, vector<1x6x256xbf16>
    %81 = vector.shape_cast %80 : vector<1x6x256xbf16> to vector<6x256xbf16>
    %82 = vector.shape_cast %79 : vector<6x256xbf16> to vector<1x6x256xbf16>
    tpu.vector_store %arg6[%c0_51, %c0_52, %c0_53], %82 {strides = array<i32>} : memref<1x6x256xbf16, #tpu.memory_space<vmem>>, vector<1x6x256xbf16>,
    return
  }
  func.func @transform_0(%arg0: i32) -> (i32, i32) {
    %c0_i32 = arith.constant 0 : i32
    %c0_i32_0 = arith.constant 0 : i32
    %c0_i32_1 = arith.constant 0 : i32
    return %c0_i32, %c0_i32_0 : i32, i32
  }
  func.func @transform_1(%arg0: i32) -> (i32, i32) {
    %c0_i32 = arith.constant 0 : i32
    %c0_i32_0 = arith.constant 0 : i32
    %c0_i32_1 = arith.constant 0 : i32
    return %c0_i32, %c0_i32_0 : i32, i32
  }
  func.func @transform_2(%arg0: i32) -> (i32, i32) {
    %c0_i32 = arith.constant 0 : i32
    %c0_i32_0 = arith.constant 0 : i32
    %c0_i32_1 = arith.constant 0 : i32
    return %c0_i32, %c0_i32_0 : i32, i32
  }
  func.func @transform_3(%arg0: i32) -> (i32, i32, i32) {
    %c0_i32 = arith.constant 0 : i32
    %c0_i32_0 = arith.constant 0 : i32
    %c0_i32_1 = arith.constant 0 : i32
    %c0_i32_2 = arith.constant 0 : i32
    return %c0_i32, %c0_i32_0, %c0_i32_1 : i32, i32, i32
  }
  func.func @transform_4(%arg0: i32) -> (i32, i32, i32) {
    %c0_i32 = arith.constant 0 : i32
    %c0_i32_0 = arith.constant 0 : i32
    %c0_i32_1 = arith.constant 0 : i32
    return %arg0, %c0_i32, %c0_i32_0 : i32, i32, i32
  }
  func.func @transform_5(%arg0: i32) -> (i32, i32, i32) {
    %c0_i32 = arith.constant 0 : i32
    %c0_i32_0 = arith.constant 0 : i32
    %c0_i32_1 = arith.constant 0 : i32
    return %arg0, %c0_i32, %c0_i32_0 : i32, i32, i32
  }
}

module attributes {stable_mosaic.version = 11 : i64} {
  func.func @kernel(%arg0: i32, %arg1: memref<9x256xf32, #tpu.memory_space<vmem>>, %arg2: memref<18x1xf32, #tpu.memory_space<vmem>>, %arg3: memref<18x1xf32, #tpu.memory_space<vmem>>, %arg4: memref<9x18x6xbf16, #tpu.memory_space<vmem>>, %arg5: memref<9x18x10xbf16, #tpu.memory_space<vmem>>, %arg6: memref<9x18x4xbf16, #tpu.memory_space<vmem>>, %arg7: memref<1x6x256xbf16, #tpu.memory_space<vmem>>, %arg8: memref<1x10x256xbf16, #tpu.memory_space<vmem>>, %arg9: memref<1x4x256xbf16, #tpu.memory_space<vmem>>, %arg10: memref<1x18x256xbf16, #tpu.memory_space<vmem>>) attributes {dimension_semantics = [#tpu.dimension_semantics<parallel>], iteration_bounds = array<i64: 2>, scalar_prefetch = 0 : i64, scratch_operands = 0 : i64, tpu.core_type = #tpu.core_type<tc>, window_params = [{pipeline_mode = #tpu.pipeline_mode<synchronous>, transform_indices = @transform_0, window_bounds = array<i64: 9, 256>}, {pipeline_mode = #tpu.pipeline_mode<synchronous>, transform_indices = @transform_1, window_bounds = array<i64: 18, 1>}, {pipeline_mode = #tpu.pipeline_mode<synchronous>, transform_indices = @transform_2, window_bounds = array<i64: 18, 1>}, {pipeline_mode = #tpu.pipeline_mode<synchronous>, transform_indices = @transform_3, window_bounds = array<i64: 9, 18, 6>}, {pipeline_mode = #tpu.pipeline_mode<synchronous>, transform_indices = @transform_4, window_bounds = array<i64: 9, 18, 10>}, {pipeline_mode = #tpu.pipeline_mode<synchronous>, transform_indices = @transform_5, window_bounds = array<i64: 9, 18, 4>}, {transform_indices = @transform_6, window_bounds = array<i64: 1, 6, 256>}, {transform_indices = @transform_7, window_bounds = array<i64: 1, 10, 256>}, {transform_indices = @transform_8, window_bounds = array<i64: 1, 4, 256>}, {transform_indices = @transform_9, window_bounds = array<i64: 1, 18, 256>}]} {
    %c0 = arith.constant 0 : index
    %c0_0 = arith.constant 0 : index
    %c0_1 = arith.constant 0 : index
    %0 = vector.load %arg7[%c0, %c0_0, %c0_1] : memref<1x6x256xbf16, #tpu.memory_space<vmem>>, vector<1x6x256xbf16>
    %1 = vector.shape_cast %0 : vector<1x6x256xbf16> to vector<6x256xbf16>
    %c0_2 = arith.constant 0 : index
    %c0_3 = arith.constant 0 : index
    %c0_4 = arith.constant 0 : index
    %2 = vector.load %arg8[%c0_2, %c0_3, %c0_4] : memref<1x10x256xbf16, #tpu.memory_space<vmem>>, vector<1x10x256xbf16>
    %3 = vector.shape_cast %2 : vector<1x10x256xbf16> to vector<10x256xbf16>
    %c0_5 = arith.constant 0 : index
    %c0_6 = arith.constant 0 : index
    %c0_7 = arith.constant 0 : index
    %4 = vector.load %arg9[%c0_5, %c0_6, %c0_7] : memref<1x4x256xbf16, #tpu.memory_space<vmem>>, vector<1x4x256xbf16>
    %5 = vector.shape_cast %4 : vector<1x4x256xbf16> to vector<4x256xbf16>
    %cst = arith.constant 0.000000e+00 : f32
    %6 = vector.broadcast %cst : f32 to vector<18x256xf32>
    %c0_8 = arith.constant 0 : index
    %c0_9 = arith.constant 0 : index
    %c0_10 = arith.constant 0 : index
    %7 = vector.load %arg4[%c0_8, %c0_9, %c0_10] : memref<9x18x6xbf16, #tpu.memory_space<vmem>>, vector<1x18x6xbf16>
    %8 = vector.shape_cast %7 : vector<1x18x6xbf16> to vector<18x6xbf16>
    %cst_11 = arith.constant dense<0.000000e+00> : vector<18x256xf32>
    %9 = tpu.matmul %8, %1, %cst_11 {dimension_numbers = #tpu.dot_dimension_numbers<[1], [0], [0], [1], [0, 0, 1, 1], [], []>} : vector<18x6xbf16>, vector<6x256xbf16>, vector<18x256xf32> -> vector<18x256xf32>
    %c0_12 = arith.constant 0 : index
    %c0_13 = arith.constant 0 : index
    %c0_14 = arith.constant 0 : index
    %10 = vector.load %arg5[%c0_12, %c0_13, %c0_14] : memref<9x18x10xbf16, #tpu.memory_space<vmem>>, vector<1x18x10xbf16>
    %11 = vector.shape_cast %10 : vector<1x18x10xbf16> to vector<18x10xbf16>
    %cst_15 = arith.constant dense<0.000000e+00> : vector<18x256xf32>
    %12 = tpu.matmul %11, %3, %cst_15 {dimension_numbers = #tpu.dot_dimension_numbers<[1], [0], [0], [1], [0, 0, 1, 1], [], []>} : vector<18x10xbf16>, vector<10x256xbf16>, vector<18x256xf32> -> vector<18x256xf32>
    %13 = arith.addf %9, %12 : vector<18x256xf32>
    %c0_16 = arith.constant 0 : index
    %c0_17 = arith.constant 0 : index
    %c0_18 = arith.constant 0 : index
    %14 = vector.load %arg6[%c0_16, %c0_17, %c0_18] : memref<9x18x4xbf16, #tpu.memory_space<vmem>>, vector<1x18x4xbf16>
    %15 = vector.shape_cast %14 : vector<1x18x4xbf16> to vector<18x4xbf16>
    %cst_19 = arith.constant dense<0.000000e+00> : vector<18x256xf32>
    %16 = tpu.matmul %15, %5, %cst_19 {dimension_numbers = #tpu.dot_dimension_numbers<[1], [0], [0], [1], [0, 0, 1, 1], [], []>} : vector<18x4xbf16>, vector<4x256xbf16>, vector<18x256xf32> -> vector<18x256xf32>
    %17 = arith.addf %13, %16 : vector<18x256xf32>
    %c17_i32 = arith.constant 17 : i32
    %18 = tpu.dynamic_rotate %17 by %c17_i32 dim 1 : vector<18x256xf32>, i32 -> vector<18x256xf32>
    %c0_20 = arith.constant 0 : index
    %c0_21 = arith.constant 0 : index
    %19 = vector.load %arg1[%c0_20, %c0_21] : memref<9x256xf32, #tpu.memory_space<vmem>>, vector<1x256xf32>
    %20 = vector.broadcast %19 : vector<1x256xf32> to vector<18x256xf32>
    %21 = arith.mulf %18, %20 : vector<18x256xf32>
    %22 = arith.addf %6, %21 : vector<18x256xf32>
    %c1 = arith.constant 1 : index
    %c0_22 = arith.constant 0 : index
    %c0_23 = arith.constant 0 : index
    %23 = vector.load %arg4[%c1, %c0_22, %c0_23] : memref<9x18x6xbf16, #tpu.memory_space<vmem>>, vector<1x18x6xbf16>
    %24 = vector.shape_cast %23 : vector<1x18x6xbf16> to vector<18x6xbf16>
    %cst_24 = arith.constant dense<0.000000e+00> : vector<18x256xf32>
    %25 = tpu.matmul %24, %1, %cst_24 {dimension_numbers = #tpu.dot_dimension_numbers<[1], [0], [0], [1], [0, 0, 1, 1], [], []>} : vector<18x6xbf16>, vector<6x256xbf16>, vector<18x256xf32> -> vector<18x256xf32>
    %c1_25 = arith.constant 1 : index
    %c0_26 = arith.constant 0 : index
    %c0_27 = arith.constant 0 : index
    %26 = vector.load %arg5[%c1_25, %c0_26, %c0_27] : memref<9x18x10xbf16, #tpu.memory_space<vmem>>, vector<1x18x10xbf16>
    %27 = vector.shape_cast %26 : vector<1x18x10xbf16> to vector<18x10xbf16>
    %cst_28 = arith.constant dense<0.000000e+00> : vector<18x256xf32>
    %28 = tpu.matmul %27, %3, %cst_28 {dimension_numbers = #tpu.dot_dimension_numbers<[1], [0], [0], [1], [0, 0, 1, 1], [], []>} : vector<18x10xbf16>, vector<10x256xbf16>, vector<18x256xf32> -> vector<18x256xf32>
    %29 = arith.addf %25, %28 : vector<18x256xf32>
    %c1_29 = arith.constant 1 : index
    %c0_30 = arith.constant 0 : index
    %c0_31 = arith.constant 0 : index
    %30 = vector.load %arg6[%c1_29, %c0_30, %c0_31] : memref<9x18x4xbf16, #tpu.memory_space<vmem>>, vector<1x18x4xbf16>
    %31 = vector.shape_cast %30 : vector<1x18x4xbf16> to vector<18x4xbf16>
    %cst_32 = arith.constant dense<0.000000e+00> : vector<18x256xf32>
    %32 = tpu.matmul %31, %5, %cst_32 {dimension_numbers = #tpu.dot_dimension_numbers<[1], [0], [0], [1], [0, 0, 1, 1], [], []>} : vector<18x4xbf16>, vector<4x256xbf16>, vector<18x256xf32> -> vector<18x256xf32>
    %33 = arith.addf %29, %32 : vector<18x256xf32>
    %c16_i32 = arith.constant 16 : i32
    %34 = tpu.dynamic_rotate %33 by %c16_i32 dim 1 : vector<18x256xf32>, i32 -> vector<18x256xf32>
    %c1_33 = arith.constant 1 : index
    %c0_34 = arith.constant 0 : index
    %35 = vector.load %arg1[%c1_33, %c0_34] : memref<9x256xf32, #tpu.memory_space<vmem>>, vector<1x256xf32>
    %36 = vector.broadcast %35 : vector<1x256xf32> to vector<18x256xf32>
    %37 = arith.mulf %34, %36 : vector<18x256xf32>
    %38 = arith.addf %22, %37 : vector<18x256xf32>
    %c2 = arith.constant 2 : index
    %c0_35 = arith.constant 0 : index
    %c0_36 = arith.constant 0 : index
    %39 = vector.load %arg4[%c2, %c0_35, %c0_36] : memref<9x18x6xbf16, #tpu.memory_space<vmem>>, vector<1x18x6xbf16>
    %40 = vector.shape_cast %39 : vector<1x18x6xbf16> to vector<18x6xbf16>
    %cst_37 = arith.constant dense<0.000000e+00> : vector<18x256xf32>
    %41 = tpu.matmul %40, %1, %cst_37 {dimension_numbers = #tpu.dot_dimension_numbers<[1], [0], [0], [1], [0, 0, 1, 1], [], []>} : vector<18x6xbf16>, vector<6x256xbf16>, vector<18x256xf32> -> vector<18x256xf32>
    %c2_38 = arith.constant 2 : index
    %c0_39 = arith.constant 0 : index
    %c0_40 = arith.constant 0 : index
    %42 = vector.load %arg5[%c2_38, %c0_39, %c0_40] : memref<9x18x10xbf16, #tpu.memory_space<vmem>>, vector<1x18x10xbf16>
    %43 = vector.shape_cast %42 : vector<1x18x10xbf16> to vector<18x10xbf16>
    %cst_41 = arith.constant dense<0.000000e+00> : vector<18x256xf32>
    %44 = tpu.matmul %43, %3, %cst_41 {dimension_numbers = #tpu.dot_dimension_numbers<[1], [0], [0], [1], [0, 0, 1, 1], [], []>} : vector<18x10xbf16>, vector<10x256xbf16>, vector<18x256xf32> -> vector<18x256xf32>
    %45 = arith.addf %41, %44 : vector<18x256xf32>
    %c2_42 = arith.constant 2 : index
    %c0_43 = arith.constant 0 : index
    %c0_44 = arith.constant 0 : index
    %46 = vector.load %arg6[%c2_42, %c0_43, %c0_44] : memref<9x18x4xbf16, #tpu.memory_space<vmem>>, vector<1x18x4xbf16>
    %47 = vector.shape_cast %46 : vector<1x18x4xbf16> to vector<18x4xbf16>
    %cst_45 = arith.constant dense<0.000000e+00> : vector<18x256xf32>
    %48 = tpu.matmul %47, %5, %cst_45 {dimension_numbers = #tpu.dot_dimension_numbers<[1], [0], [0], [1], [0, 0, 1, 1], [], []>} : vector<18x4xbf16>, vector<4x256xbf16>, vector<18x256xf32> -> vector<18x256xf32>
    %49 = arith.addf %45, %48 : vector<18x256xf32>
    %c15_i32 = arith.constant 15 : i32
    %50 = tpu.dynamic_rotate %49 by %c15_i32 dim 1 : vector<18x256xf32>, i32 -> vector<18x256xf32>
    %c2_46 = arith.constant 2 : index
    %c0_47 = arith.constant 0 : index
    %51 = vector.load %arg1[%c2_46, %c0_47] : memref<9x256xf32, #tpu.memory_space<vmem>>, vector<1x256xf32>
    %52 = vector.broadcast %51 : vector<1x256xf32> to vector<18x256xf32>
    %53 = arith.mulf %50, %52 : vector<18x256xf32>
    %54 = arith.addf %38, %53 : vector<18x256xf32>
    %c3 = arith.constant 3 : index
    %c0_48 = arith.constant 0 : index
    %c0_49 = arith.constant 0 : index
    %55 = vector.load %arg4[%c3, %c0_48, %c0_49] : memref<9x18x6xbf16, #tpu.memory_space<vmem>>, vector<1x18x6xbf16>
    %56 = vector.shape_cast %55 : vector<1x18x6xbf16> to vector<18x6xbf16>
    %cst_50 = arith.constant dense<0.000000e+00> : vector<18x256xf32>
    %57 = tpu.matmul %56, %1, %cst_50 {dimension_numbers = #tpu.dot_dimension_numbers<[1], [0], [0], [1], [0, 0, 1, 1], [], []>} : vector<18x6xbf16>, vector<6x256xbf16>, vector<18x256xf32> -> vector<18x256xf32>
    %c3_51 = arith.constant 3 : index
    %c0_52 = arith.constant 0 : index
    %c0_53 = arith.constant 0 : index
    %58 = vector.load %arg5[%c3_51, %c0_52, %c0_53] : memref<9x18x10xbf16, #tpu.memory_space<vmem>>, vector<1x18x10xbf16>
    %59 = vector.shape_cast %58 : vector<1x18x10xbf16> to vector<18x10xbf16>
    %cst_54 = arith.constant dense<0.000000e+00> : vector<18x256xf32>
    %60 = tpu.matmul %59, %3, %cst_54 {dimension_numbers = #tpu.dot_dimension_numbers<[1], [0], [0], [1], [0, 0, 1, 1], [], []>} : vector<18x10xbf16>, vector<10x256xbf16>, vector<18x256xf32> -> vector<18x256xf32>
    %61 = arith.addf %57, %60 : vector<18x256xf32>
    %c3_55 = arith.constant 3 : index
    %c0_56 = arith.constant 0 : index
    %c0_57 = arith.constant 0 : index
    %62 = vector.load %arg6[%c3_55, %c0_56, %c0_57] : memref<9x18x4xbf16, #tpu.memory_space<vmem>>, vector<1x18x4xbf16>
    %63 = vector.shape_cast %62 : vector<1x18x4xbf16> to vector<18x4xbf16>
    %cst_58 = arith.constant dense<0.000000e+00> : vector<18x256xf32>
    %64 = tpu.matmul %63, %5, %cst_58 {dimension_numbers = #tpu.dot_dimension_numbers<[1], [0], [0], [1], [0, 0, 1, 1], [], []>} : vector<18x4xbf16>, vector<4x256xbf16>, vector<18x256xf32> -> vector<18x256xf32>
    %65 = arith.addf %61, %64 : vector<18x256xf32>
    %c1_i32 = arith.constant 1 : i32
    %66 = tpu.dynamic_rotate %65 by %c1_i32 dim 1 : vector<18x256xf32>, i32 -> vector<18x256xf32>
    %c3_59 = arith.constant 3 : index
    %c0_60 = arith.constant 0 : index
    %67 = vector.load %arg1[%c3_59, %c0_60] : memref<9x256xf32, #tpu.memory_space<vmem>>, vector<1x256xf32>
    %68 = vector.broadcast %67 : vector<1x256xf32> to vector<18x256xf32>
    %69 = arith.mulf %66, %68 : vector<18x256xf32>
    %70 = arith.addf %54, %69 : vector<18x256xf32>
    %c4 = arith.constant 4 : index
    %c0_61 = arith.constant 0 : index
    %c0_62 = arith.constant 0 : index
    %71 = vector.load %arg4[%c4, %c0_61, %c0_62] : memref<9x18x6xbf16, #tpu.memory_space<vmem>>, vector<1x18x6xbf16>
    %72 = vector.shape_cast %71 : vector<1x18x6xbf16> to vector<18x6xbf16>
    %cst_63 = arith.constant dense<0.000000e+00> : vector<18x256xf32>
    %73 = tpu.matmul %72, %1, %cst_63 {dimension_numbers = #tpu.dot_dimension_numbers<[1], [0], [0], [1], [0, 0, 1, 1], [], []>} : vector<18x6xbf16>, vector<6x256xbf16>, vector<18x256xf32> -> vector<18x256xf32>
    %c4_64 = arith.constant 4 : index
    %c0_65 = arith.constant 0 : index
    %c0_66 = arith.constant 0 : index
    %74 = vector.load %arg5[%c4_64, %c0_65, %c0_66] : memref<9x18x10xbf16, #tpu.memory_space<vmem>>, vector<1x18x10xbf16>
    %75 = vector.shape_cast %74 : vector<1x18x10xbf16> to vector<18x10xbf16>
    %cst_67 = arith.constant dense<0.000000e+00> : vector<18x256xf32>
    %76 = tpu.matmul %75, %3, %cst_67 {dimension_numbers = #tpu.dot_dimension_numbers<[1], [0], [0], [1], [0, 0, 1, 1], [], []>} : vector<18x10xbf16>, vector<10x256xbf16>, vector<18x256xf32> -> vector<18x256xf32>
    %77 = arith.addf %73, %76 : vector<18x256xf32>
    %c4_68 = arith.constant 4 : index
    %c0_69 = arith.constant 0 : index
    %c0_70 = arith.constant 0 : index
    %78 = vector.load %arg6[%c4_68, %c0_69, %c0_70] : memref<9x18x4xbf16, #tpu.memory_space<vmem>>, vector<1x18x4xbf16>
    %79 = vector.shape_cast %78 : vector<1x18x4xbf16> to vector<18x4xbf16>
    %cst_71 = arith.constant dense<0.000000e+00> : vector<18x256xf32>
    %80 = tpu.matmul %79, %5, %cst_71 {dimension_numbers = #tpu.dot_dimension_numbers<[1], [0], [0], [1], [0, 0, 1, 1], [], []>} : vector<18x4xbf16>, vector<4x256xbf16>, vector<18x256xf32> -> vector<18x256xf32>
    %81 = arith.addf %77, %80 : vector<18x256xf32>
    %82 = arith.addf %70, %81 : vector<18x256xf32>
    %c5 = arith.constant 5 : index
    %c0_72 = arith.constant 0 : index
    %c0_73 = arith.constant 0 : index
    %83 = vector.load %arg4[%c5, %c0_72, %c0_73] : memref<9x18x6xbf16, #tpu.memory_space<vmem>>, vector<1x18x6xbf16>
    %84 = vector.shape_cast %83 : vector<1x18x6xbf16> to vector<18x6xbf16>
    %cst_74 = arith.constant dense<0.000000e+00> : vector<18x256xf32>
    %85 = tpu.matmul %84, %1, %cst_74 {dimension_numbers = #tpu.dot_dimension_numbers<[1], [0], [0], [1], [0, 0, 1, 1], [], []>} : vector<18x6xbf16>, vector<6x256xbf16>, vector<18x256xf32> -> vector<18x256xf32>
    %c5_75 = arith.constant 5 : index
    %c0_76 = arith.constant 0 : index
    %c0_77 = arith.constant 0 : index
    %86 = vector.load %arg5[%c5_75, %c0_76, %c0_77] : memref<9x18x10xbf16, #tpu.memory_space<vmem>>, vector<1x18x10xbf16>
    %87 = vector.shape_cast %86 : vector<1x18x10xbf16> to vector<18x10xbf16>
    %cst_78 = arith.constant dense<0.000000e+00> : vector<18x256xf32>
    %88 = tpu.matmul %87, %3, %cst_78 {dimension_numbers = #tpu.dot_dimension_numbers<[1], [0], [0], [1], [0, 0, 1, 1], [], []>} : vector<18x10xbf16>, vector<10x256xbf16>, vector<18x256xf32> -> vector<18x256xf32>
    %89 = arith.addf %85, %88 : vector<18x256xf32>
    %c5_79 = arith.constant 5 : index
    %c0_80 = arith.constant 0 : index
    %c0_81 = arith.constant 0 : index
    %90 = vector.load %arg6[%c5_79, %c0_80, %c0_81] : memref<9x18x4xbf16, #tpu.memory_space<vmem>>, vector<1x18x4xbf16>
    %91 = vector.shape_cast %90 : vector<1x18x4xbf16> to vector<18x4xbf16>
    %cst_82 = arith.constant dense<0.000000e+00> : vector<18x256xf32>
    %92 = tpu.matmul %91, %5, %cst_82 {dimension_numbers = #tpu.dot_dimension_numbers<[1], [0], [0], [1], [0, 0, 1, 1], [], []>} : vector<18x4xbf16>, vector<4x256xbf16>, vector<18x256xf32> -> vector<18x256xf32>
    %93 = arith.addf %89, %92 : vector<18x256xf32>
    %c255_i32 = arith.constant 255 : i32
    %94 = tpu.dynamic_rotate %93 by %c255_i32 dim 1 : vector<18x256xf32>, i32 -> vector<18x256xf32>
    %c5_83 = arith.constant 5 : index
    %c0_84 = arith.constant 0 : index
    %95 = vector.load %arg1[%c5_83, %c0_84] : memref<9x256xf32, #tpu.memory_space<vmem>>, vector<1x256xf32>
    %96 = vector.broadcast %95 : vector<1x256xf32> to vector<18x256xf32>
    %97 = arith.mulf %94, %96 : vector<18x256xf32>
    %98 = arith.addf %82, %97 : vector<18x256xf32>
    %c6 = arith.constant 6 : index
    %c0_85 = arith.constant 0 : index
    %c0_86 = arith.constant 0 : index
    %99 = vector.load %arg4[%c6, %c0_85, %c0_86] : memref<9x18x6xbf16, #tpu.memory_space<vmem>>, vector<1x18x6xbf16>
    %100 = vector.shape_cast %99 : vector<1x18x6xbf16> to vector<18x6xbf16>
    %cst_87 = arith.constant dense<0.000000e+00> : vector<18x256xf32>
    %101 = tpu.matmul %100, %1, %cst_87 {dimension_numbers = #tpu.dot_dimension_numbers<[1], [0], [0], [1], [0, 0, 1, 1], [], []>} : vector<18x6xbf16>, vector<6x256xbf16>, vector<18x256xf32> -> vector<18x256xf32>
    %c6_88 = arith.constant 6 : index
    %c0_89 = arith.constant 0 : index
    %c0_90 = arith.constant 0 : index
    %102 = vector.load %arg5[%c6_88, %c0_89, %c0_90] : memref<9x18x10xbf16, #tpu.memory_space<vmem>>, vector<1x18x10xbf16>
    %103 = vector.shape_cast %102 : vector<1x18x10xbf16> to vector<18x10xbf16>
    %cst_91 = arith.constant dense<0.000000e+00> : vector<18x256xf32>
    %104 = tpu.matmul %103, %3, %cst_91 {dimension_numbers = #tpu.dot_dimension_numbers<[1], [0], [0], [1], [0, 0, 1, 1], [], []>} : vector<18x10xbf16>, vector<10x256xbf16>, vector<18x256xf32> -> vector<18x256xf32>
    %105 = arith.addf %101, %104 : vector<18x256xf32>
    %c6_92 = arith.constant 6 : index
    %c0_93 = arith.constant 0 : index
    %c0_94 = arith.constant 0 : index
    %106 = vector.load %arg6[%c6_92, %c0_93, %c0_94] : memref<9x18x4xbf16, #tpu.memory_space<vmem>>, vector<1x18x4xbf16>
    %107 = vector.shape_cast %106 : vector<1x18x4xbf16> to vector<18x4xbf16>
    %cst_95 = arith.constant dense<0.000000e+00> : vector<18x256xf32>
    %108 = tpu.matmul %107, %5, %cst_95 {dimension_numbers = #tpu.dot_dimension_numbers<[1], [0], [0], [1], [0, 0, 1, 1], [], []>} : vector<18x4xbf16>, vector<4x256xbf16>, vector<18x256xf32> -> vector<18x256xf32>
    %109 = arith.addf %105, %108 : vector<18x256xf32>
    %c241_i32 = arith.constant 241 : i32
    %110 = tpu.dynamic_rotate %109 by %c241_i32 dim 1 : vector<18x256xf32>, i32 -> vector<18x256xf32>
    %c6_96 = arith.constant 6 : index
    %c0_97 = arith.constant 0 : index
    %111 = vector.load %arg1[%c6_96, %c0_97] : memref<9x256xf32, #tpu.memory_space<vmem>>, vector<1x256xf32>
    %112 = vector.broadcast %111 : vector<1x256xf32> to vector<18x256xf32>
    %113 = arith.mulf %110, %112 : vector<18x256xf32>
    %114 = arith.addf %98, %113 : vector<18x256xf32>
    %c7 = arith.constant 7 : index
    %c0_98 = arith.constant 0 : index
    %c0_99 = arith.constant 0 : index
    %115 = vector.load %arg4[%c7, %c0_98, %c0_99] : memref<9x18x6xbf16, #tpu.memory_space<vmem>>, vector<1x18x6xbf16>
    %116 = vector.shape_cast %115 : vector<1x18x6xbf16> to vector<18x6xbf16>
    %cst_100 = arith.constant dense<0.000000e+00> : vector<18x256xf32>
    %117 = tpu.matmul %116, %1, %cst_100 {dimension_numbers = #tpu.dot_dimension_numbers<[1], [0], [0], [1], [0, 0, 1, 1], [], []>} : vector<18x6xbf16>, vector<6x256xbf16>, vector<18x256xf32> -> vector<18x256xf32>
    %c7_101 = arith.constant 7 : index
    %c0_102 = arith.constant 0 : index
    %c0_103 = arith.constant 0 : index
    %118 = vector.load %arg5[%c7_101, %c0_102, %c0_103] : memref<9x18x10xbf16, #tpu.memory_space<vmem>>, vector<1x18x10xbf16>
    %119 = vector.shape_cast %118 : vector<1x18x10xbf16> to vector<18x10xbf16>
    %cst_104 = arith.constant dense<0.000000e+00> : vector<18x256xf32>
    %120 = tpu.matmul %119, %3, %cst_104 {dimension_numbers = #tpu.dot_dimension_numbers<[1], [0], [0], [1], [0, 0, 1, 1], [], []>} : vector<18x10xbf16>, vector<10x256xbf16>, vector<18x256xf32> -> vector<18x256xf32>
    %121 = arith.addf %117, %120 : vector<18x256xf32>
    %c7_105 = arith.constant 7 : index
    %c0_106 = arith.constant 0 : index
    %c0_107 = arith.constant 0 : index
    %122 = vector.load %arg6[%c7_105, %c0_106, %c0_107] : memref<9x18x4xbf16, #tpu.memory_space<vmem>>, vector<1x18x4xbf16>
    %123 = vector.shape_cast %122 : vector<1x18x4xbf16> to vector<18x4xbf16>
    %cst_108 = arith.constant dense<0.000000e+00> : vector<18x256xf32>
    %124 = tpu.matmul %123, %5, %cst_108 {dimension_numbers = #tpu.dot_dimension_numbers<[1], [0], [0], [1], [0, 0, 1, 1], [], []>} : vector<18x4xbf16>, vector<4x256xbf16>, vector<18x256xf32> -> vector<18x256xf32>
    %125 = arith.addf %121, %124 : vector<18x256xf32>
    %c240_i32 = arith.constant 240 : i32
    %126 = tpu.dynamic_rotate %125 by %c240_i32 dim 1 : vector<18x256xf32>, i32 -> vector<18x256xf32>
    %c7_109 = arith.constant 7 : index
    %c0_110 = arith.constant 0 : index
    %127 = vector.load %arg1[%c7_109, %c0_110] : memref<9x256xf32, #tpu.memory_space<vmem>>, vector<1x256xf32>
    %128 = vector.broadcast %127 : vector<1x256xf32> to vector<18x256xf32>
    %129 = arith.mulf %126, %128 : vector<18x256xf32>
    %130 = arith.addf %114, %129 : vector<18x256xf32>
    %c8 = arith.constant 8 : index
    %c0_111 = arith.constant 0 : index
    %c0_112 = arith.constant 0 : index
    %131 = vector.load %arg4[%c8, %c0_111, %c0_112] : memref<9x18x6xbf16, #tpu.memory_space<vmem>>, vector<1x18x6xbf16>
    %132 = vector.shape_cast %131 : vector<1x18x6xbf16> to vector<18x6xbf16>
    %cst_113 = arith.constant dense<0.000000e+00> : vector<18x256xf32>
    %133 = tpu.matmul %132, %1, %cst_113 {dimension_numbers = #tpu.dot_dimension_numbers<[1], [0], [0], [1], [0, 0, 1, 1], [], []>} : vector<18x6xbf16>, vector<6x256xbf16>, vector<18x256xf32> -> vector<18x256xf32>
    %c8_114 = arith.constant 8 : index
    %c0_115 = arith.constant 0 : index
    %c0_116 = arith.constant 0 : index
    %134 = vector.load %arg5[%c8_114, %c0_115, %c0_116] : memref<9x18x10xbf16, #tpu.memory_space<vmem>>, vector<1x18x10xbf16>
    %135 = vector.shape_cast %134 : vector<1x18x10xbf16> to vector<18x10xbf16>
    %cst_117 = arith.constant dense<0.000000e+00> : vector<18x256xf32>
    %136 = tpu.matmul %135, %3, %cst_117 {dimension_numbers = #tpu.dot_dimension_numbers<[1], [0], [0], [1], [0, 0, 1, 1], [], []>} : vector<18x10xbf16>, vector<10x256xbf16>, vector<18x256xf32> -> vector<18x256xf32>
    %137 = arith.addf %133, %136 : vector<18x256xf32>
    %c8_118 = arith.constant 8 : index
    %c0_119 = arith.constant 0 : index
    %c0_120 = arith.constant 0 : index
    %138 = vector.load %arg6[%c8_118, %c0_119, %c0_120] : memref<9x18x4xbf16, #tpu.memory_space<vmem>>, vector<1x18x4xbf16>
    %139 = vector.shape_cast %138 : vector<1x18x4xbf16> to vector<18x4xbf16>
    %cst_121 = arith.constant dense<0.000000e+00> : vector<18x256xf32>
    %140 = tpu.matmul %139, %5, %cst_121 {dimension_numbers = #tpu.dot_dimension_numbers<[1], [0], [0], [1], [0, 0, 1, 1], [], []>} : vector<18x4xbf16>, vector<4x256xbf16>, vector<18x256xf32> -> vector<18x256xf32>
    %141 = arith.addf %137, %140 : vector<18x256xf32>
    %c239_i32 = arith.constant 239 : i32
    %142 = tpu.dynamic_rotate %141 by %c239_i32 dim 1 : vector<18x256xf32>, i32 -> vector<18x256xf32>
    %c8_122 = arith.constant 8 : index
    %c0_123 = arith.constant 0 : index
    %143 = vector.load %arg1[%c8_122, %c0_123] : memref<9x256xf32, #tpu.memory_space<vmem>>, vector<1x256xf32>
    %144 = vector.broadcast %143 : vector<1x256xf32> to vector<18x256xf32>
    %145 = arith.mulf %142, %144 : vector<18x256xf32>
    %146 = arith.addf %130, %145 : vector<18x256xf32>
    %c0_124 = arith.constant 0 : index
    %c0_125 = arith.constant 0 : index
    %147 = vector.load %arg2[%c0_124, %c0_125] : memref<18x1xf32, #tpu.memory_space<vmem>>, vector<18x1xf32>
    %148 = vector.broadcast %147 : vector<18x1xf32> to vector<18x256xf32>
    %149 = arith.mulf %146, %148 : vector<18x256xf32>
    %c0_126 = arith.constant 0 : index
    %c0_127 = arith.constant 0 : index
    %150 = vector.load %arg3[%c0_126, %c0_127] : memref<18x1xf32, #tpu.memory_space<vmem>>, vector<18x1xf32>
    %151 = vector.broadcast %150 : vector<18x1xf32> to vector<18x256xf32>
    %152 = arith.addf %149, %151 : vector<18x256xf32>
    %cst_128 = arith.constant 0.000000e+00 : f32
    %153 = vector.broadcast %cst_128 : f32 to vector<18x256xf32>
    %154 = arith.maximumf %152, %153 : vector<18x256xf32>
    %155 = arith.truncf %154 : vector<18x256xf32> to vector<18x256xbf16>
    %c0_129 = arith.constant 0 : index
    %c0_130 = arith.constant 0 : index
    %c0_131 = arith.constant 0 : index
    %156 = vector.load %arg10[%c0_129, %c0_130, %c0_131] : memref<1x18x256xbf16, #tpu.memory_space<vmem>>, vector<1x18x256xbf16>
    %157 = vector.shape_cast %156 : vector<1x18x256xbf16> to vector<18x256xbf16>
    %158 = vector.shape_cast %155 : vector<18x256xbf16> to vector<1x18x256xbf16>
    tpu.vector_store %arg10[%c0_129, %c0_130, %c0_131], %158 {strides = array<i32>} : memref<1x18x256xbf16, #tpu.memory_space<vmem>>, vector<1x18x256xbf16>,
    return
  }
  func.func @transform_0(%arg0: i32) -> (i32, i32) {
    %c0_i32 = arith.constant 0 : i32
    %c0_i32_0 = arith.constant 0 : i32
    %c0_i32_1 = arith.constant 0 : i32
    return %c0_i32, %c0_i32_0 : i32, i32
  }
  func.func @transform_1(%arg0: i32) -> (i32, i32) {
    %c0_i32 = arith.constant 0 : i32
    %c0_i32_0 = arith.constant 0 : i32
    %c0_i32_1 = arith.constant 0 : i32
    return %c0_i32, %c0_i32_0 : i32, i32
  }
  func.func @transform_2(%arg0: i32) -> (i32, i32) {
    %c0_i32 = arith.constant 0 : i32
    %c0_i32_0 = arith.constant 0 : i32
    %c0_i32_1 = arith.constant 0 : i32
    return %c0_i32, %c0_i32_0 : i32, i32
  }
  func.func @transform_3(%arg0: i32) -> (i32, i32, i32) {
    %c0_i32 = arith.constant 0 : i32
    %c0_i32_0 = arith.constant 0 : i32
    %c0_i32_1 = arith.constant 0 : i32
    %c0_i32_2 = arith.constant 0 : i32
    return %c0_i32, %c0_i32_0, %c0_i32_1 : i32, i32, i32
  }
  func.func @transform_4(%arg0: i32) -> (i32, i32, i32) {
    %c0_i32 = arith.constant 0 : i32
    %c0_i32_0 = arith.constant 0 : i32
    %c0_i32_1 = arith.constant 0 : i32
    %c0_i32_2 = arith.constant 0 : i32
    return %c0_i32, %c0_i32_0, %c0_i32_1 : i32, i32, i32
  }
  func.func @transform_5(%arg0: i32) -> (i32, i32, i32) {
    %c0_i32 = arith.constant 0 : i32
    %c0_i32_0 = arith.constant 0 : i32
    %c0_i32_1 = arith.constant 0 : i32
    %c0_i32_2 = arith.constant 0 : i32
    return %c0_i32, %c0_i32_0, %c0_i32_1 : i32, i32, i32
  }
  func.func @transform_6(%arg0: i32) -> (i32, i32, i32) {
    %c0_i32 = arith.constant 0 : i32
    %c0_i32_0 = arith.constant 0 : i32
    %c0_i32_1 = arith.constant 0 : i32
    return %arg0, %c0_i32, %c0_i32_0 : i32, i32, i32
  }
  func.func @transform_7(%arg0: i32) -> (i32, i32, i32) {
    %c0_i32 = arith.constant 0 : i32
    %c0_i32_0 = arith.constant 0 : i32
    %c0_i32_1 = arith.constant 0 : i32
    return %arg0, %c0_i32, %c0_i32_0 : i32, i32, i32
  }
  func.func @transform_8(%arg0: i32) -> (i32, i32, i32) {
    %c0_i32 = arith.constant 0 : i32
    %c0_i32_0 = arith.constant 0 : i32
    %c0_i32_1 = arith.constant 0 : i32
    return %arg0, %c0_i32, %c0_i32_0 : i32, i32, i32
  }
  func.func @transform_9(%arg0: i32) -> (i32, i32, i32) {
    %c0_i32 = arith.constant 0 : i32
    %c0_i32_0 = arith.constant 0 : i32
    %c0_i32_1 = arith.constant 0 : i32
    return %arg0, %c0_i32, %c0_i32_0 : i32, i32, i32
  }
}

</mosaic_0001>

<bundles_post_ra>
// kernel: hardblock_forward.4
= control target key start
LH: loop header
LB: loop body
LE: loop exit
PB: predicated region body
PF: predicated region fallthrough
CT: control target
= control target key end

     0   :  { %s1048_s18 = smov 0   ;;  %s1185_s0 = inlined_call_operand.vmem [shape: f32[9,256], index: 0, kind: input, shape index: {}]   ;;  %s1186_s1 = inlined_call_operand.vmem [shape: f32[6,1], index: 1, kind: input, shape index: {}]   ;;  %s1187_s2 = inlined_call_operand.vmem [shape: f32[6,1], index: 2, kind: input, shape index: {}]   ;;  %s1188_s3 = inlined_call_operand.vmem [shape: bf16[9,6,4], index: 3, kind: input, shape index: {}]   ;;  %s1189_s4 = inlined_call_operand.vmem [shape: bf16[2,4,256], index: 4, kind: input, shape index: {}]   ;;  %s1190_s5 = inlined_call_operand.vmem [shape: bf16[2,6,256], index: 5, kind: output, shape index: {}]  }
   0x1 LB: > { %s934_s19 = sadd.s32 4294967295, %s1007_s18   ;;  %p938_p0 = scmp.ge.s32.totalorder %s1007_s18, 1  ;;  %s1007_s18 = sphi %s1048_s18, %s15_s18  }
   0x2   : > { %p187_p1 = scmp.lt.s32.totalorder %s1007_s18, 3 }
   0x4   : > { %p188_p2 = pnand %p938_p0, %p187_p1 }
   0x5   : > { %p215_p3 = scmp.lt.s32.totalorder (!%p188_p2), %s934_s19, 1  ;;  %v1009_v0 = vmov (!%p188_p2), 0   ;;  %vm241_vm0 = vcmask (!%p188_p2), 1041408   ;;  %v852_v1 = vld [vmem:[%s1186_s1] sm:$0x3f] (!%p188_p2)  ;;  %vm237_vm1 = vcmask (!%p188_p2), 31744   ;;  %v293_v54 = vlaneseq (!%p188_p2) }
   0x6   : > { %191 = sbr.rel (%p188_p2) target bundleno = 402 (0x192), region = 40  ;;  %280 = vmatprep.mubr.bf16.mxu0 (!%p188_p2), %v1009_v0  ;;  %351 = vmatprep.mubr.bf16.mxu1 (!%p188_p2), %v1009_v0  ;;  %v227_v5 = vld [vmem:[%s1188_s3] sm:$0x7] (!%p188_p2)  ;;  %v946_v6 = vld [vmem:[%s1188_s3 + $0x4] sm:$0x7] (!%p188_p2)  ;;  %s1010_s21 = smov (!%p188_p2), 16  }
   0x7   : > { %1000 = vset.pattern.permute.xlu0 (!%p188_p2), %v1009_v0  ;;  %v950_v7 = vld [vmem:[%s1188_s3 + $0x8] sm:$0x7] (!%p188_p2)  ;;  %v954_v8 = vld [vmem:[%s1188_s3 + $0xc] sm:$0x7] (!%p188_p2)  ;;  %v958_v9 = vld [vmem:[%s1188_s3 + $0x10] sm:$0x7] (!%p188_p2) }
   0x8   : > { %855 = vperm.xlu0 (!%p188_p2), %1000, %v852_v1   ;;  %v961_v10 = vld [vmem:[%s1188_s3 + $0x14] sm:$0x7] (!%p188_p2)  ;;  %v965_v11 = vld [vmem:[%s1188_s3 + $0x18] sm:$0x7] (!%p188_p2)  ;;  %v969_v12 = vld [vmem:[%s1188_s3 + $0x1c] sm:$0x7] (!%p188_p2) }
   0x9   : > { %v973_v13 = vld [vmem:[%s1188_s3 + $0x20] sm:$0x7] (!%p188_p2)  ;;  %s1011_s22 = smov (!%p188_p2), 17   ;;  %s1012_s23 = smov (!%p188_p2), 15   ;;  %v301_v57 = vshrl.u32 (!%p188_p2), %v293_v54, 7  ;;  %v1120_v59 = vand.u32 (!%p188_p2), 127, %v293_v54 }
   0xa   : > { %s1013_s24 = smov (!%p188_p2), 1   ;;  %s1015_s26 = smov (!%p188_p2), 113   ;;  %v860_v46 = vld [vmem:[%s1187_s2] sm:$0x3f] (!%p188_p2) }
   0xb   : > { %s1016_s27 = smov (!%p188_p2), 112   ;;  %s1017_s30 = smov (!%p188_p2), 111   ;;  %v1122_v61 = vsub.s32 (!%p188_p2), 0, %v301_v57  ;;  %v1124_v62 = vsub.s32 (!%p188_p2), 1, %v301_v57  ;;  %vm364_vm2 = vcmp.lt.s32.totalorder (!%p188_p2), %v1120_v59, 16  ;;  %vm295_vm3 = vcmp.lt.s32.totalorder (!%p188_p2), %v1120_v59, 17 }
   0xc   : > { %v949_v63 = vld [vmem:[%s1185_s0 + $0x1] ss:$8 sm:$0x3] (!%p188_p2)  ;;  %vm434_vm4 = vcmp.lt.s32.totalorder (!%p188_p2), %v1120_v59, 15  ;;  %vm504_vm5 = vcmp.lt.s32.totalorder (!%p188_p2), %v1120_v59, 1  ;;  %vm622_vm6 = vcmp.lt.s32.totalorder (!%p188_p2), %v1120_v59, 127 }
   0xd   : > { %s1192_s19 = smov (!%p215_p3, %s934_s19), 1  ;;  %v373_v1 = vrot.slane %v949_v63, %v1122_v61  ;;  %vm692_vm7 = vcmp.lt.s32.totalorder %v1120_v59, 113  ;;  %vm762_vm8 = vcmp.lt.s32.totalorder %v1120_v59, 112  ;;  %vm832_vm9 = vcmp.lt.s32.totalorder %v1120_v59, 111 }
   0xe   : > { %s980_s20 = sshll.u32 %s1192_s19, 2 }
   0xf   : > { %s219_s25 = scalar_lea.vmem %s1189_s4, %s980_s20 }
  0x10   : > { %v943_v2 = vld.sshfl [vmem:[%s219_s25] sm:$0x33 pattern:$0x76325410]  ;;  %s1014_s25 = smov 127  }
  0x11   : > { %v236_v3 = vcombine.high %v943_v2, %v943_v2  ;;  %v243_v4 = vsel %vm241_vm0, %v943_v2, 0  ;;  %v953_v2 = vld [vmem:[%s1185_s0 + $0x2] ss:$8 sm:$0x3] }
  0x13   : > { %944 = vmatprep.subr.msk.bf16.mxu0 %vm241_vm0, %v236_v3  ;;  %947 = vmatprep.subr.msk.bf16.mxu1 %vm241_vm0, %v236_v3 }
  0x14   : > { %249 = vmatpush1.bf16.msra.mxu0 %v243_v4  ;;  %320 = vmatpush1.bf16.msra.mxu1 %v243_v4 }
  0x15   : > { %951 = vmatprep.subr.msk.bf16.mxu0 %vm241_vm0, %v236_v3  ;;  %955 = vmatprep.subr.msk.bf16.mxu1 %vm241_vm0, %v236_v3 }
  0x17   : > { %945 = vmatmul.mubr.msk.bf16.vlgmr.msra.gmra.mrb[0].mxu0 %vm237_vm1, %v227_v5  ;;  %948 = vmatmul.mubr.msk.bf16.vlgmr.msra.gmra.mrb[0].mxu1 %vm237_vm1, %v946_v6 }
  0x18   : > { %390 = vmatpush1.bf16.msra.mxu0 %v243_v4  ;;  %460 = vmatpush1.bf16.msra.mxu1 %v243_v4 }
  0x19   : > { %421 = vmatprep.mubr.bf16.mxu0 %v1009_v0  ;;  %491 = vmatprep.mubr.bf16.mxu1 %v1009_v0 }
  0x1a   : > { %959 = vmatprep.subr.msk.bf16.mxu0 %vm241_vm0, %v236_v3  ;;  %962 = vmatprep.subr.msk.bf16.mxu1 %vm241_vm0, %v236_v3 }
  0x1f   : > { %952 = vmatmul.mubr.msk.bf16.vlgmr.msra.gmra.mrb[4].mxu0 %vm237_vm1, %v950_v7  ;;  %956 = vmatmul.mubr.msk.bf16.vlgmr.msra.gmra.mrb[4].mxu1 %vm237_vm1, %v954_v8  ;;  %v957_v7 = vld [vmem:[%s1185_s0 + $0x3] ss:$8 sm:$0x3] }
  0x20   : > { %530 = vmatpush1.bf16.msra.mxu0 %v243_v4  ;;  %578 = vmatpush1.bf16.msra.mxu1 %v243_v4 }
  0x21   : > { %561 = vmatprep.mubr.bf16.mxu0 %v1009_v0  ;;  %609 = vmatprep.mubr.bf16.mxu1 %v1009_v0 }
  0x22   : > { %966 = vmatprep.subr.msk.bf16.mxu0 %vm241_vm0, %v236_v3  ;;  %970 = vmatprep.subr.msk.bf16.mxu1 %vm241_vm0, %v236_v3 }
  0x27   : > { %960 = vmatmul.mubr.msk.bf16.vlgmr.msra.gmra.mrb[8].mxu0 %vm237_vm1, %v958_v9  ;;  %963 = vmatmul.mubr.msk.bf16.vlgmr.msra.gmra.mrb[8].mxu1 %vm237_vm1, %v961_v10 }
  0x28   : > { %648 = vmatpush1.bf16.msra.mxu0 %v243_v4  ;;  %718 = vmatpush1.bf16.msra.mxu1 %v243_v4 }
  0x29   : > { %679 = vmatprep.mubr.bf16.mxu0 %v1009_v0  ;;  %749 = vmatprep.mubr.bf16.mxu1 %v1009_v0 }
  0x2a   : > { %974 = vmatprep.subr.msk.bf16.mxu0 %vm241_vm0, %v236_v3 }
  0x2f   : > { %967 = vmatmul.mubr.msk.bf16.vlgmr.msra.gmra.mrb[12].mxu0 %vm237_vm1, %v965_v11  ;;  %971 = vmatmul.mubr.msk.bf16.vlgmr.msra.gmra.mrb[12].mxu1 %vm237_vm1, %v969_v12 }
  0x30   : > { %788 = vmatpush1.bf16.msra.mxu0 %v243_v4  ;;  %819 = vmatprep.mubr.bf16.mxu0 %v1009_v0  ;;  %v298_v0 = vld [vmem:[%s1185_s0] ss:$8 sm:$0x3]  ;;  %v377_v4 = vrot.slane %v949_v63, %v1124_v62 }
  0x31   : > { %v303_v5 = vrot.slane %v298_v0, %v1122_v61  ;;  %v307_v6 = vrot.slane %v298_v0, %v1124_v62  ;;  %v976_v0 = vld [vmem:[%s1185_s0 + $0x10] ss:$8 sm:$0x3] }
  0x37   : > { %975 = vmatmul.mubr.msk.bf16.vlgmr.msra.gmra.mrb[16].mxu0 %vm237_vm1, %v973_v13  ;;  %v443_v13 = vrot.slane %v953_v2, %v1122_v61 }
  0x87   : > { %v1118_v51 = vpop.permute.xlu0 %855 }
  0xea   : > { %v282_v14 = vpop.f32.mrb[0].mxu0  ;;  %v353_v15 = vpop.f32.mrb[0].mxu1 }
  0xeb   : > { %360 = vrot.lane.b32.xlu1 %v353_v15, %s1010_s21  ;;  %289 = vrot.lane.b32.xlu0 %v282_v14, %s1011_s22  ;;  %v284_v16 = vpop.f32.mrb[1].mxu0  ;;  %v355_v17 = vpop.f32.mrb[1].mxu1  ;;  %v447_v14 = vrot.slane %v953_v2, %v1124_v62 }
  0xec   : > { %v286_v18 = vpop.f32.mrb[2].mxu0  ;;  %v357_v19 = vpop.f32.mrb[2].mxu1 }
  0xed   : > { %v287_v20 = vpop.f32.mrb[3].mxu0  ;;  %v358_v21 = vpop.f32.mrb[3].mxu1  ;;  %v517_v18 = vrot.slane %v957_v7, %v1124_v62 }
  0xef   : > { %362 = vrot.lane.b32.xlu1 %v355_v17, %s1010_s21  ;;  %291 = vrot.lane.b32.xlu0 %v284_v16, %s1011_s22  ;;  %v513_v17 = vrot.slane %v957_v7, %v1122_v61  ;;  %v845_v7 = vrot.slane %v976_v0, %v1124_v62 }
  0xf2   : > { %v423_v22 = vpop.f32.mrb[4].mxu0  ;;  %v493_v23 = vpop.f32.mrb[4].mxu1 }
  0xf3   : > { %v425_v24 = vpop.f32.mrb[5].mxu0  ;;  %430 = vrot.lane.b32.xlu0 %v423_v22, %s1012_s23  ;;  %v495_v25 = vpop.f32.mrb[5].mxu1 }
  0xf4   : > { %432 = vrot.lane.b32.xlu1 %v425_v24, %s1012_s23  ;;  %v427_v26 = vpop.f32.mrb[6].mxu0  ;;  %v497_v27 = vpop.f32.mrb[6].mxu1 }
  0xf5   : > { %v428_v28 = vpop.f32.mrb[7].mxu0  ;;  %v498_v29 = vpop.f32.mrb[7].mxu1 }
  0xf7   : > { %500 = vrot.lane.b32.xlu0 %v493_v23, %s1013_s24 }
  0xf8   : > { %502 = vrot.lane.b32.xlu1 %v495_v25, %s1013_s24  ;;  %s981_s24 = sshll.u32 %s1192_s19, 3 }
  0xfa   : > { %v1111_v30 = vpop.f32.mrb[8].mxu0  ;;  %v611_v31 = vpop.f32.mrb[8].mxu1 }
  0xfb   : > { %v1113_v32 = vpop.f32.mrb[9].mxu0  ;;  %v613_v33 = vpop.f32.mrb[9].mxu1  ;;  %618 = vrot.lane.b32.xlu0 %v611_v31, %s1014_s25 }
  0xfc   : > { %620 = vrot.lane.b32.xlu1 %v613_v33, %s1014_s25  ;;  %v567_v34 = vpop.f32.mrb[10].mxu0  ;;  %v615_v35 = vpop.f32.mrb[10].mxu1 }
  0xfd   : > { %v568_v36 = vpop.f32.mrb[11].mxu0  ;;  %v616_v37 = vpop.f32.mrb[11].mxu1  ;;  %v964_v35 = vld [vmem:[%s1185_s0 + $0x5] ss:$8 sm:$0x3] }
 0x102   : > { %v681_v38 = vpop.f32.mrb[12].mxu0  ;;  %v751_v39 = vpop.f32.mrb[12].mxu1 }
 0x103   : > { %688 = vrot.lane.b32.xlu0 %v681_v38, %s1015_s26  ;;  %v683_v40 = vpop.f32.mrb[13].mxu0  ;;  %v753_v41 = vpop.f32.mrb[13].mxu1 }
 0x104   : > { %690 = vrot.lane.b32.xlu1 %v683_v40, %s1015_s26  ;;  %v685_v42 = vpop.f32.mrb[14].mxu0  ;;  %v755_v43 = vpop.f32.mrb[14].mxu1  ;;  %v631_v40 = vrot.slane %v964_v35, %v1122_v61 }
 0x105   : > { %v686_v44 = vpop.f32.mrb[15].mxu0  ;;  %v756_v45 = vpop.f32.mrb[15].mxu1 }
 0x106   : > { %v635_v44 = vrot.slane %v964_v35, %v1124_v62  ;;  %v972_v45 = vld [vmem:[%s1185_s0 + $0x7] ss:$8 sm:$0x3] }
 0x107   : > { %758 = vrot.lane.b32.xlu0 %v751_v39, %s1016_s27 }
 0x108   : > { %760 = vrot.lane.b32.xlu1 %v753_v41, %s1016_s27  ;;  %v968_v41 = vld [vmem:[%s1185_s0 + $0x6] ss:$8 sm:$0x3]  ;;  %s224_s27 = scalar_lea.vmem %s1190_s5, %s981_s24 }
 0x10a   : > { %v821_v47 = vpop.f32.mrb[16].mxu0 }
 0x10b   : > { %863 = vperm.xlu0 %1000, %v860_v46   ;;  %v823_v48 = vpop.f32.mrb[17].mxu0 }
 0x10c   : > { %828 = vrot.lane.b32.xlu1 %v821_v47, %s1017_s30  ;;  %v825_v49 = vpop.f32.mrb[18].mxu0 }
 0x10d   : > { %v826_v50 = vpop.f32.mrb[19].mxu0  ;;  %v705_v49 = vrot.slane %v968_v41, %v1124_v62 }
 0x110   : > { %830 = vrot.lane.b32.xlu1 %v823_v48, %s1017_s30  ;;  %v701_v48 = vrot.slane %v968_v41, %v1122_v61 }
 0x15d   : > { %v361_v52 = vpop.permute.xlu1 %360  ;;  %v290_v53 = vpop.permute.xlu0 %289 }
 0x161   : > { %v363_v55 = vpop.permute.xlu1 %362  ;;  %v292_v56 = vpop.permute.xlu0 %291 }
 0x162   : > { %v365_v9 = vsel %vm364_vm2, %v361_v52, %v363_v55  ;;  %v366_v10 = vsel %vm364_vm2, %v363_v55, %v361_v52  ;;  %v296_v11 = vsel %vm295_vm3, %v290_v53, %v292_v56  ;;  %v297_v12 = vsel %vm295_vm3, %v292_v56, %v290_v53 }
 0x163   : > { %v380_v19 = vmul.f32 %v373_v1, %v366_v10  ;;  %v381_v20 = vmul.f32 %v377_v4, %v365_v9  ;;  %v310_v21 = vmul.f32 %v303_v5, %v297_v12  ;;  %v311_v22 = vmul.f32 %v307_v6, %v296_v11 }
 0x164   : > { %v771_v55 = vrot.slane %v972_v45, %v1122_v61  ;;  %v775_v56 = vrot.slane %v972_v45, %v1124_v62  ;;  %v841_v6 = vrot.slane %v976_v0, %v1122_v61 }
 0x165   : > { %v431_v58 = vpop.permute.xlu0 %430  ;;  %v382_v29 = vadd.f32 %v380_v19, %v310_v21  ;;  %v383_v31 = vadd.f32 %v381_v20, %v311_v22 }
 0x166   : > { %v433_v60 = vpop.permute.xlu1 %432 }
 0x167   : > { %v435_v15 = vsel %vm434_vm4, %v431_v58, %v433_v60  ;;  %v436_v16 = vsel %vm434_vm4, %v433_v60, %v431_v58 }
 0x168   : > { %v450_v26 = vmul.f32 %v443_v13, %v436_v16  ;;  %v451_v27 = vmul.f32 %v447_v14, %v435_v15 }
 0x169   : > { %v501_v3 = vpop.permute.xlu0 %500 }
 0x16a   : > { %v503_v8 = vpop.permute.xlu1 %502  ;;  %v452_v37 = vadd.f32 %v450_v26, %v382_v29  ;;  %v453_v38 = vadd.f32 %v451_v27, %v383_v31 }
 0x16b   : > { %v505_v23 = vsel %vm504_vm5, %v501_v3, %v503_v8  ;;  %v506_v24 = vsel %vm504_vm5, %v503_v8, %v501_v3 }
 0x16c   : > { %v520_v33 = vmul.f32 %v513_v17, %v506_v24  ;;  %v521_v34 = vmul.f32 %v517_v18, %v505_v23 }
 0x16d   : > { %v619_v25 = vpop.permute.xlu0 %618 }
 0x16e   : > { %v621_v28 = vpop.permute.xlu1 %620  ;;  %v522_v42 = vadd.f32 %v520_v33, %v452_v37  ;;  %v523_v43 = vadd.f32 %v521_v34, %v453_v38 }
 0x16f   : > { %v623_v46 = vsel %vm622_vm6, %v619_v25, %v621_v28  ;;  %v624_v47 = vsel %vm622_vm6, %v621_v28, %v619_v25 }
 0x170   : > { %v570_v57 = vadd.f32 %v1111_v30, %v522_v42  ;;  %v571_v58 = vadd.f32 %v1113_v32, %v523_v43  ;;  %v638_v60 = vmul.f32 %v631_v40, %v623_v46  ;;  %v639_v63 = vmul.f32 %v635_v44, %v624_v47 }
 0x172   : > { %v640_v30 = vadd.f32 %v638_v60, %v570_v57  ;;  %v641_v8 = vadd.f32 %v639_v63, %v571_v58 }
 0x175   : > { %v689_v36 = vpop.permute.xlu0 %688 }
 0x176   : > { %v691_v39 = vpop.permute.xlu1 %690 }
 0x177   : > { %v693_v53 = vsel %vm692_vm7, %v689_v36, %v691_v39  ;;  %v694_v54 = vsel %vm692_vm7, %v691_v39, %v689_v36 }
 0x178   : > { %v708_v3 = vmul.f32 %v701_v48, %v693_v53  ;;  %v709_v4 = vmul.f32 %v705_v49, %v694_v54 }
 0x179   : > { %v759_v50 = vpop.permute.xlu0 %758 }
 0x17a   : > { %v761_v52 = vpop.permute.xlu1 %760  ;;  %v710_v10 = vadd.f32 %v708_v3, %v640_v30  ;;  %v711_v11 = vadd.f32 %v709_v4, %v641_v8 }
 0x17b   : > { %v763_v1 = vsel %vm762_vm8, %v759_v50, %v761_v52  ;;  %v764_v2 = vsel %vm762_vm8, %v761_v52, %v759_v50 }
 0x17c   : > { %v778_v32 = vmul.f32 %v771_v55, %v763_v1  ;;  %v779_v9 = vmul.f32 %v775_v56, %v764_v2 }
 0x17e   : > { %v829_v5 = vpop.permute.xlu1 %828  ;;  %v780_v15 = vadd.f32 %v778_v32, %v710_v10  ;;  %v781_v16 = vadd.f32 %v779_v9, %v711_v11 }
 0x182   : > { %v831_v12 = vpop.permute.xlu1 %830 }
 0x183   : > { %v833_v13 = vsel %vm832_vm9, %v829_v5, %v831_v12  ;;  %v834_v14 = vsel %vm832_vm9, %v831_v12, %v829_v5 }
 0x184   : > { %v848_v17 = vmul.f32 %v841_v6, %v833_v13  ;;  %v849_v18 = vmul.f32 %v845_v7, %v834_v14 }
 0x186   : > { %v850_v19 = vadd.f32 %v848_v17, %v780_v15  ;;  %v851_v59 = vadd.f32 %v849_v18, %v781_v16 }
 0x188   : > { %v858_v61 = vmul.f32 %v1118_v51, %v850_v19  ;;  %v859_v62 = vmul.f32 %v1118_v51, %v851_v59 }
 0x18a   : > { %v864_v20 = vpop.permute.xlu0 %863 }
 0x18b   : > { %v866_v21 = vadd.f32 %v864_v20, %v858_v61  ;;  %v867_v22 = vadd.f32 %v864_v20, %v859_v62 }
 0x18d   : > { %v868_v23 = vmax.f32 %v866_v21, 0.0  ;;  %v869_v24 = vmax.f32 %v867_v22, 0.0 }
 0x18f   : > { %v982_v25 = vpack.c.bf16 %v869_v24, %v868_v23 }
 0x191   : > { %878 = vst [vmem:[%s224_s27] sm:$0x77] %v982_v25 }
 0x192 PF: > { %s15_s18 = sadd.s32 1, %s1007_s18  }
 0x193   : > { %p12_p4 = scmp.ge.s32.totalorder %s15_s18, 4  }
 0x195   :  { %14 = sbr.rel (!%p12_p4) target bundleno = 1 (0x1), region = 85 }

// kernel: hardblock_forward.6
= control target key start
LH: loop header
LB: loop body
LE: loop exit
PB: predicated region body
PF: predicated region fallthrough
CT: control target
= control target key end

     0   :  { %s1052_s18 = smov 0   ;;  %s1189_s0 = inlined_call_operand.vmem [shape: f32[9,256], index: 0, kind: input, shape index: {}]   ;;  %s1190_s1 = inlined_call_operand.vmem [shape: f32[6,1], index: 1, kind: input, shape index: {}]   ;;  %s1191_s2 = inlined_call_operand.vmem [shape: f32[6,1], index: 2, kind: input, shape index: {}]   ;;  %s1192_s3 = inlined_call_operand.vmem [shape: bf16[9,6,10], index: 3, kind: input, shape index: {}]   ;;  %s1193_s4 = inlined_call_operand.vmem [shape: bf16[2,10,256], index: 4, kind: input, shape index: {}]   ;;  %s1194_s5 = inlined_call_operand.vmem [shape: bf16[2,6,256], index: 5, kind: output, shape index: {}]  }
   0x1 LB: > { %s934_s19 = sadd.s32 4294967295, %s1011_s18   ;;  %p938_p0 = scmp.ge.s32.totalorder %s1011_s18, 1  ;;  %s1011_s18 = sphi %s1052_s18, %s15_s18  }
   0x2   : > { %p187_p1 = scmp.lt.s32.totalorder %s1011_s18, 3 }
   0x4   : > { %p188_p2 = pnand %p938_p0, %p187_p1 }
   0x5   : > { %p215_p3 = scmp.lt.s32.totalorder (!%p188_p2), %s934_s19, 1  ;;  %v1013_v0 = vmov (!%p188_p2), 0   ;;  %v852_v1 = vld [vmem:[%s1190_s1] sm:$0x3f] (!%p188_p2)  ;;  %vm241_vm0 = vcmask (!%p188_p2), 1044480   ;;  %vm237_vm1 = vcmask (!%p188_p2), 80896   ;;  %v293_v54 = vlaneseq (!%p188_p2) }
   0x6   : > { %191 = sbr.rel (%p188_p2) target bundleno = 400 (0x190), region = 40  ;;  %280 = vmatprep.mubr.bf16.mxu0 (!%p188_p2), %v1013_v0  ;;  %351 = vmatprep.mubr.bf16.mxu1 (!%p188_p2), %v1013_v0  ;;  %v228_v5 = vld [vmem:[%s1192_s3] sm:$0x7] (!%p188_p2)  ;;  %v947_v6 = vld [vmem:[%s1192_s3 + $0x4] sm:$0x7] (!%p188_p2)  ;;  %s1014_s21 = smov (!%p188_p2), 16  }
   0x7   : > { %1001 = vset.pattern.permute.xlu0 (!%p188_p2), %v1013_v0  ;;  %v951_v7 = vld [vmem:[%s1192_s3 + $0x8] sm:$0x7] (!%p188_p2)  ;;  %v955_v8 = vld [vmem:[%s1192_s3 + $0xc] sm:$0x7] (!%p188_p2)  ;;  %v959_v9 = vld [vmem:[%s1192_s3 + $0x10] sm:$0x7] (!%p188_p2) }
   0x8   : > { %855 = vperm.xlu0 (!%p188_p2), %1001, %v852_v1   ;;  %v962_v10 = vld [vmem:[%s1192_s3 + $0x14] sm:$0x7] (!%p188_p2)  ;;  %v966_v11 = vld [vmem:[%s1192_s3 + $0x18] sm:$0x7] (!%p188_p2)  ;;  %v970_v12 = vld [vmem:[%s1192_s3 + $0x1c] sm:$0x7] (!%p188_p2) }
   0x9   : > { %v974_v13 = vld [vmem:[%s1192_s3 + $0x20] sm:$0x7] (!%p188_p2)  ;;  %s1015_s22 = smov (!%p188_p2), 17   ;;  %s1016_s23 = smov (!%p188_p2), 15   ;;  %v301_v57 = vshrl.u32 (!%p188_p2), %v293_v54, 7  ;;  %v1124_v59 = vand.u32 (!%p188_p2), 127, %v293_v54 }
   0xa   : > { %s1017_s24 = smov (!%p188_p2), 1   ;;  %s1019_s26 = smov (!%p188_p2), 113   ;;  %v860_v46 = vld [vmem:[%s1191_s2] sm:$0x3f] (!%p188_p2) }
   0xb   : > { %s1020_s27 = smov (!%p188_p2), 112   ;;  %s1021_s30 = smov (!%p188_p2), 111   ;;  %v1126_v61 = vsub.s32 (!%p188_p2), 0, %v301_v57  ;;  %v1128_v62 = vsub.s32 (!%p188_p2), 1, %v301_v57  ;;  %vm364_vm2 = vcmp.lt.s32.totalorder (!%p188_p2), %v1124_v59, 16  ;;  %vm295_vm3 = vcmp.lt.s32.totalorder (!%p188_p2), %v1124_v59, 17 }
   0xc   : > { %v950_v63 = vld [vmem:[%s1189_s0 + $0x1] ss:$8 sm:$0x3] (!%p188_p2)  ;;  %vm434_vm4 = vcmp.lt.s32.totalorder (!%p188_p2), %v1124_v59, 15  ;;  %vm504_vm5 = vcmp.lt.s32.totalorder (!%p188_p2), %v1124_v59, 1  ;;  %vm622_vm6 = vcmp.lt.s32.totalorder (!%p188_p2), %v1124_v59, 127 }
   0xd   : > { %s1196_s19 = smov (!%p215_p3, %s934_s19), 1  ;;  %v373_v1 = vrot.slane %v950_v63, %v1126_v61  ;;  %vm692_vm7 = vcmp.lt.s32.totalorder %v1124_v59, 113  ;;  %vm762_vm8 = vcmp.lt.s32.totalorder %v1124_v59, 112  ;;  %vm832_vm9 = vcmp.lt.s32.totalorder %v1124_v59, 111 }
   0xe   : > { %s981_s20 = sshll.u32 %s1196_s19, 4 }
   0xf   : > { %s219_s25 = scalar_lea.vmem %s1193_s4, %s981_s20 }
  0x10   : > { %v1002_v2 = vld [vmem:[%s219_s25 + $0x4] ss:$8 sps:$4 sm:$0x1f]   ;;  %v1004_v3 = vld [vmem:[%s219_s25] ss:$8 sps:$4 sm:$0x1f]  }
  0x11   : > { %945 = vmatprep.subr.msk.bf16.mxu0 %vm241_vm0, %v1002_v2  ;;  %948 = vmatprep.subr.msk.bf16.mxu1 %vm241_vm0, %v1002_v2  ;;  %v243_v4 = vsel %vm241_vm0, %v1004_v3, 0  ;;  %s1018_s25 = smov 127  }
  0x12   : > { %249 = vmatpush1.bf16.msra.mxu0 %v243_v4  ;;  %320 = vmatpush1.bf16.msra.mxu1 %v243_v4 }
  0x13   : > { %952 = vmatprep.subr.msk.bf16.mxu0 %vm241_vm0, %v1002_v2  ;;  %956 = vmatprep.subr.msk.bf16.mxu1 %vm241_vm0, %v1002_v2 }
  0x15   : > { %946 = vmatmul.mubr.msk.bf16.vlgmr.msra.gmra.mrb[0].mxu0 %vm237_vm1, %v228_v5  ;;  %949 = vmatmul.mubr.msk.bf16.vlgmr.msra.gmra.mrb[0].mxu1 %vm237_vm1, %v947_v6 }
  0x16   : > { %390 = vmatpush1.bf16.msra.mxu0 %v243_v4  ;;  %460 = vmatpush1.bf16.msra.mxu1 %v243_v4 }
  0x17   : > { %421 = vmatprep.mubr.bf16.mxu0 %v1013_v0  ;;  %491 = vmatprep.mubr.bf16.mxu1 %v1013_v0 }
  0x18   : > { %960 = vmatprep.subr.msk.bf16.mxu0 %vm241_vm0, %v1002_v2  ;;  %963 = vmatprep.subr.msk.bf16.mxu1 %vm241_vm0, %v1002_v2 }
  0x1d   : > { %953 = vmatmul.mubr.msk.bf16.vlgmr.msra.gmra.mrb[4].mxu0 %vm237_vm1, %v951_v7  ;;  %957 = vmatmul.mubr.msk.bf16.vlgmr.msra.gmra.mrb[4].mxu1 %vm237_vm1, %v955_v8  ;;  %v958_v7 = vld [vmem:[%s1189_s0 + $0x3] ss:$8 sm:$0x3] }
  0x1e   : > { %530 = vmatpush1.bf16.msra.mxu0 %v243_v4  ;;  %578 = vmatpush1.bf16.msra.mxu1 %v243_v4 }
  0x1f   : > { %561 = vmatprep.mubr.bf16.mxu0 %v1013_v0  ;;  %609 = vmatprep.mubr.bf16.mxu1 %v1013_v0 }
  0x20   : > { %967 = vmatprep.subr.msk.bf16.mxu0 %vm241_vm0, %v1002_v2  ;;  %971 = vmatprep.subr.msk.bf16.mxu1 %vm241_vm0, %v1002_v2 }
  0x25   : > { %961 = vmatmul.mubr.msk.bf16.vlgmr.msra.gmra.mrb[8].mxu0 %vm237_vm1, %v959_v9  ;;  %964 = vmatmul.mubr.msk.bf16.vlgmr.msra.gmra.mrb[8].mxu1 %vm237_vm1, %v962_v10 }
  0x26   : > { %648 = vmatpush1.bf16.msra.mxu0 %v243_v4  ;;  %718 = vmatpush1.bf16.msra.mxu1 %v243_v4 }
  0x27   : > { %679 = vmatprep.mubr.bf16.mxu0 %v1013_v0  ;;  %749 = vmatprep.mubr.bf16.mxu1 %v1013_v0 }
  0x28   : > { %975 = vmatprep.subr.msk.bf16.mxu0 %vm241_vm0, %v1002_v2  ;;  %v954_v2 = vld [vmem:[%s1189_s0 + $0x2] ss:$8 sm:$0x3] }
  0x2d   : > { %968 = vmatmul.mubr.msk.bf16.vlgmr.msra.gmra.mrb[12].mxu0 %vm237_vm1, %v966_v11  ;;  %972 = vmatmul.mubr.msk.bf16.vlgmr.msra.gmra.mrb[12].mxu1 %vm237_vm1, %v970_v12 }
  0x2e   : > { %788 = vmatpush1.bf16.msra.mxu0 %v243_v4  ;;  %819 = vmatprep.mubr.bf16.mxu0 %v1013_v0  ;;  %v298_v0 = vld [vmem:[%s1189_s0] ss:$8 sm:$0x3]  ;;  %v377_v4 = vrot.slane %v950_v63, %v1128_v62 }
  0x2f   : > { %v303_v5 = vrot.slane %v298_v0, %v1126_v61  ;;  %v307_v6 = vrot.slane %v298_v0, %v1128_v62  ;;  %v977_v0 = vld [vmem:[%s1189_s0 + $0x10] ss:$8 sm:$0x3] }
  0x35   : > { %976 = vmatmul.mubr.msk.bf16.vlgmr.msra.gmra.mrb[16].mxu0 %vm237_vm1, %v974_v13  ;;  %v443_v13 = vrot.slane %v954_v2, %v1126_v61 }
  0x87   : > { %v1122_v51 = vpop.permute.xlu0 %855 }
  0xe8   : > { %v282_v14 = vpop.f32.mrb[0].mxu0  ;;  %v353_v15 = vpop.f32.mrb[0].mxu1 }
  0xe9   : > { %360 = vrot.lane.b32.xlu1 %v353_v15, %s1014_s21  ;;  %289 = vrot.lane.b32.xlu0 %v282_v14, %s1015_s22  ;;  %v284_v16 = vpop.f32.mrb[1].mxu0  ;;  %v355_v17 = vpop.f32.mrb[1].mxu1  ;;  %v447_v14 = vrot.slane %v954_v2, %v1128_v62 }
  0xea   : > { %v286_v18 = vpop.f32.mrb[2].mxu0  ;;  %v357_v19 = vpop.f32.mrb[2].mxu1 }
  0xeb   : > { %v287_v20 = vpop.f32.mrb[3].mxu0  ;;  %v358_v21 = vpop.f32.mrb[3].mxu1  ;;  %v517_v18 = vrot.slane %v958_v7, %v1128_v62 }
  0xed   : > { %362 = vrot.lane.b32.xlu1 %v355_v17, %s1014_s21  ;;  %291 = vrot.lane.b32.xlu0 %v284_v16, %s1015_s22  ;;  %v513_v17 = vrot.slane %v958_v7, %v1126_v61  ;;  %v845_v7 = vrot.slane %v977_v0, %v1128_v62 }
  0xf0   : > { %v423_v22 = vpop.f32.mrb[4].mxu0  ;;  %v493_v23 = vpop.f32.mrb[4].mxu1 }
  0xf1   : > { %v425_v24 = vpop.f32.mrb[5].mxu0  ;;  %430 = vrot.lane.b32.xlu0 %v423_v22, %s1016_s23  ;;  %v495_v25 = vpop.f32.mrb[5].mxu1 }
  0xf2   : > { %432 = vrot.lane.b32.xlu1 %v425_v24, %s1016_s23  ;;  %v427_v26 = vpop.f32.mrb[6].mxu0  ;;  %v497_v27 = vpop.f32.mrb[6].mxu1 }
  0xf3   : > { %v428_v28 = vpop.f32.mrb[7].mxu0  ;;  %v498_v29 = vpop.f32.mrb[7].mxu1 }
  0xf5   : > { %500 = vrot.lane.b32.xlu0 %v493_v23, %s1017_s24 }
  0xf6   : > { %502 = vrot.lane.b32.xlu1 %v495_v25, %s1017_s24  ;;  %s982_s24 = sshll.u32 %s1196_s19, 3 }
  0xf8   : > { %v1115_v30 = vpop.f32.mrb[8].mxu0  ;;  %v611_v31 = vpop.f32.mrb[8].mxu1 }
  0xf9   : > { %v1117_v32 = vpop.f32.mrb[9].mxu0  ;;  %v613_v33 = vpop.f32.mrb[9].mxu1  ;;  %618 = vrot.lane.b32.xlu0 %v611_v31, %s1018_s25 }
  0xfa   : > { %620 = vrot.lane.b32.xlu1 %v613_v33, %s1018_s25  ;;  %v567_v34 = vpop.f32.mrb[10].mxu0  ;;  %v615_v35 = vpop.f32.mrb[10].mxu1 }
  0xfb   : > { %v568_v36 = vpop.f32.mrb[11].mxu0  ;;  %v616_v37 = vpop.f32.mrb[11].mxu1  ;;  %v965_v35 = vld [vmem:[%s1189_s0 + $0x5] ss:$8 sm:$0x3] }
 0x100   : > { %v681_v38 = vpop.f32.mrb[12].mxu0  ;;  %v751_v39 = vpop.f32.mrb[12].mxu1 }
 0x101   : > { %688 = vrot.lane.b32.xlu0 %v681_v38, %s1019_s26  ;;  %v683_v40 = vpop.f32.mrb[13].mxu0  ;;  %v753_v41 = vpop.f32.mrb[13].mxu1 }
 0x102   : > { %690 = vrot.lane.b32.xlu1 %v683_v40, %s1019_s26  ;;  %v685_v42 = vpop.f32.mrb[14].mxu0  ;;  %v755_v43 = vpop.f32.mrb[14].mxu1  ;;  %v631_v40 = vrot.slane %v965_v35, %v1126_v61 }
 0x103   : > { %v686_v44 = vpop.f32.mrb[15].mxu0  ;;  %v756_v45 = vpop.f32.mrb[15].mxu1 }
 0x104   : > { %v635_v44 = vrot.slane %v965_v35, %v1128_v62  ;;  %v973_v45 = vld [vmem:[%s1189_s0 + $0x7] ss:$8 sm:$0x3] }
 0x105   : > { %758 = vrot.lane.b32.xlu0 %v751_v39, %s1020_s27 }
 0x106   : > { %760 = vrot.lane.b32.xlu1 %v753_v41, %s1020_s27  ;;  %v969_v41 = vld [vmem:[%s1189_s0 + $0x6] ss:$8 sm:$0x3]  ;;  %s224_s27 = scalar_lea.vmem %s1194_s5, %s982_s24 }
 0x108   : > { %v821_v47 = vpop.f32.mrb[16].mxu0 }
 0x109   : > { %863 = vperm.xlu0 %1001, %v860_v46   ;;  %v823_v48 = vpop.f32.mrb[17].mxu0 }
 0x10a   : > { %828 = vrot.lane.b32.xlu1 %v821_v47, %s1021_s30  ;;  %v825_v49 = vpop.f32.mrb[18].mxu0 }
 0x10b   : > { %v826_v50 = vpop.f32.mrb[19].mxu0  ;;  %v705_v49 = vrot.slane %v969_v41, %v1128_v62 }
 0x10e   : > { %830 = vrot.lane.b32.xlu1 %v823_v48, %s1021_s30  ;;  %v701_v48 = vrot.slane %v969_v41, %v1126_v61 }
 0x15b   : > { %v361_v52 = vpop.permute.xlu1 %360  ;;  %v290_v53 = vpop.permute.xlu0 %289 }
 0x15f   : > { %v363_v55 = vpop.permute.xlu1 %362  ;;  %v292_v56 = vpop.permute.xlu0 %291 }
 0x160   : > { %v365_v9 = vsel %vm364_vm2, %v361_v52, %v363_v55  ;;  %v366_v10 = vsel %vm364_vm2, %v363_v55, %v361_v52  ;;  %v296_v11 = vsel %vm295_vm3, %v290_v53, %v292_v56  ;;  %v297_v12 = vsel %vm295_vm3, %v292_v56, %v290_v53 }
 0x161   : > { %v380_v19 = vmul.f32 %v373_v1, %v366_v10  ;;  %v381_v20 = vmul.f32 %v377_v4, %v365_v9  ;;  %v310_v21 = vmul.f32 %v303_v5, %v297_v12  ;;  %v311_v22 = vmul.f32 %v307_v6, %v296_v11 }
 0x162   : > { %v771_v55 = vrot.slane %v973_v45, %v1126_v61  ;;  %v775_v56 = vrot.slane %v973_v45, %v1128_v62  ;;  %v841_v6 = vrot.slane %v977_v0, %v1126_v61 }
 0x163   : > { %v431_v58 = vpop.permute.xlu0 %430  ;;  %v382_v29 = vadd.f32 %v380_v19, %v310_v21  ;;  %v383_v31 = vadd.f32 %v381_v20, %v311_v22 }
 0x164   : > { %v433_v60 = vpop.permute.xlu1 %432 }
 0x165   : > { %v435_v15 = vsel %vm434_vm4, %v431_v58, %v433_v60  ;;  %v436_v16 = vsel %vm434_vm4, %v433_v60, %v431_v58 }
 0x166   : > { %v450_v26 = vmul.f32 %v443_v13, %v436_v16  ;;  %v451_v27 = vmul.f32 %v447_v14, %v435_v15 }
 0x167   : > { %v501_v3 = vpop.permute.xlu0 %500 }
 0x168   : > { %v503_v8 = vpop.permute.xlu1 %502  ;;  %v452_v37 = vadd.f32 %v450_v26, %v382_v29  ;;  %v453_v38 = vadd.f32 %v451_v27, %v383_v31 }
 0x169   : > { %v505_v23 = vsel %vm504_vm5, %v501_v3, %v503_v8  ;;  %v506_v24 = vsel %vm504_vm5, %v503_v8, %v501_v3 }
 0x16a   : > { %v520_v33 = vmul.f32 %v513_v17, %v506_v24  ;;  %v521_v34 = vmul.f32 %v517_v18, %v505_v23 }
 0x16b   : > { %v619_v25 = vpop.permute.xlu0 %618 }
 0x16c   : > { %v621_v28 = vpop.permute.xlu1 %620  ;;  %v522_v42 = vadd.f32 %v520_v33, %v452_v37  ;;  %v523_v43 = vadd.f32 %v521_v34, %v453_v38 }
 0x16d   : > { %v623_v46 = vsel %vm622_vm6, %v619_v25, %v621_v28  ;;  %v624_v47 = vsel %vm622_vm6, %v621_v28, %v619_v25 }
 0x16e   : > { %v570_v57 = vadd.f32 %v1115_v30, %v522_v42  ;;  %v571_v58 = vadd.f32 %v1117_v32, %v523_v43  ;;  %v638_v60 = vmul.f32 %v631_v40, %v623_v46  ;;  %v639_v63 = vmul.f32 %v635_v44, %v624_v47 }
 0x170   : > { %v640_v30 = vadd.f32 %v638_v60, %v570_v57  ;;  %v641_v8 = vadd.f32 %v639_v63, %v571_v58 }
 0x173   : > { %v689_v36 = vpop.permute.xlu0 %688 }
 0x174   : > { %v691_v39 = vpop.permute.xlu1 %690 }
 0x175   : > { %v693_v53 = vsel %vm692_vm7, %v689_v36, %v691_v39  ;;  %v694_v54 = vsel %vm692_vm7, %v691_v39, %v689_v36 }
 0x176   : > { %v708_v3 = vmul.f32 %v701_v48, %v693_v53  ;;  %v709_v4 = vmul.f32 %v705_v49, %v694_v54 }
 0x177   : > { %v759_v50 = vpop.permute.xlu0 %758 }
 0x178   : > { %v761_v52 = vpop.permute.xlu1 %760  ;;  %v710_v10 = vadd.f32 %v708_v3, %v640_v30  ;;  %v711_v11 = vadd.f32 %v709_v4, %v641_v8 }
 0x179   : > { %v763_v1 = vsel %vm762_vm8, %v759_v50, %v761_v52  ;;  %v764_v2 = vsel %vm762_vm8, %v761_v52, %v759_v50 }
 0x17a   : > { %v778_v32 = vmul.f32 %v771_v55, %v763_v1  ;;  %v779_v9 = vmul.f32 %v775_v56, %v764_v2 }
 0x17c   : > { %v829_v5 = vpop.permute.xlu1 %828  ;;  %v780_v15 = vadd.f32 %v778_v32, %v710_v10  ;;  %v781_v16 = vadd.f32 %v779_v9, %v711_v11 }
 0x180   : > { %v831_v12 = vpop.permute.xlu1 %830 }
 0x181   : > { %v833_v13 = vsel %vm832_vm9, %v829_v5, %v831_v12  ;;  %v834_v14 = vsel %vm832_vm9, %v831_v12, %v829_v5 }
 0x182   : > { %v848_v17 = vmul.f32 %v841_v6, %v833_v13  ;;  %v849_v18 = vmul.f32 %v845_v7, %v834_v14 }
 0x184   : > { %v850_v19 = vadd.f32 %v848_v17, %v780_v15  ;;  %v851_v59 = vadd.f32 %v849_v18, %v781_v16 }
 0x186   : > { %v858_v61 = vmul.f32 %v1122_v51, %v850_v19  ;;  %v859_v62 = vmul.f32 %v1122_v51, %v851_v59 }
 0x188   : > { %v864_v20 = vpop.permute.xlu0 %863 }
 0x189   : > { %v866_v21 = vadd.f32 %v864_v20, %v858_v61  ;;  %v867_v22 = vadd.f32 %v864_v20, %v859_v62 }
 0x18b   : > { %v868_v23 = vmax.f32 %v866_v21, 0.0  ;;  %v869_v24 = vmax.f32 %v867_v22, 0.0 }
 0x18d   : > { %v983_v25 = vpack.c.bf16 %v869_v24, %v868_v23 }
 0x18f   : > { %878 = vst [vmem:[%s224_s27] sm:$0x77] %v983_v25 }
 0x190 PF: > { %s15_s18 = sadd.s32 1, %s1011_s18  }
 0x191   : > { %p12_p4 = scmp.ge.s32.totalorder %s15_s18, 4  }
 0x193   :  { %14 = sbr.rel (!%p12_p4) target bundleno = 1 (0x1), region = 85 }

// kernel: hardblock_forward.5
= control target key start
LH: loop header
LB: loop body
LE: loop exit
PB: predicated region body
PF: predicated region fallthrough
CT: control target
= control target key end

     0   :  { %s1944_s24 = smov 0   ;;  %s2311_s0 = inlined_call_operand.vmem [shape: f32[9,256], index: 0, kind: input, shape index: {}]   ;;  %s2312_s1 = inlined_call_operand.vmem [shape: f32[10,1], index: 1, kind: input, shape index: {}]   ;;  %s2313_s2 = inlined_call_operand.vmem [shape: f32[10,1], index: 2, kind: input, shape index: {}]   ;;  %s2314_s3 = inlined_call_operand.vmem [shape: bf16[9,10,6], index: 3, kind: input, shape index: {}]   ;;  %s2315_s4 = inlined_call_operand.vmem [shape: bf16[9,10,4], index: 4, kind: input, shape index: {}]   ;;  %s2316_s5 = inlined_call_operand.vmem [shape: bf16[2,6,256], index: 5, kind: input, shape index: {}]   ;;  %s2317_s6 = inlined_call_operand.vmem [shape: bf16[2,4,256], index: 6, kind: input, shape index: {}]   ;;  %s2318_s7 = inlined_call_operand.vmem [shape: bf16[2,10,256], index: 7, kind: output, shape index: {}]  }
   0x1 LB: > { %s1696_s25 = sadd.s32 4294967295, %s1893_s24   ;;  %p1700_p0 = scmp.ge.s32.totalorder %s1893_s24, 1  ;;  %s1893_s24 = sphi %s1944_s24, %s17_s24  }
   0x2   : > { %p247_p1 = scmp.lt.s32.totalorder %s1893_s24, 3 }
   0x4   : > { %p248_p2 = pnand %p1700_p0, %p247_p1 }
   0x5   : > { %p284_p3 = scmp.lt.s32.totalorder (!%p248_p2), %s1696_s25, 1  ;;  %v1895_v0 = vmov (!%p248_p2), 0   ;;  %v1579_v1 = vld [vmem:[%s2312_s1] sm:$0xff] (!%p248_p2)  ;;  %vm324_vm0 = vcmask (!%p248_p2), 1041408   ;;  %vm388_vm1 = vcmask (!%p248_p2), 1042432   ;;  %vm320_vm2 = vcmask (!%p248_p2), 31744  }
   0x6   : > { %251 = sbr.rel (%p248_p2) target bundleno = 467 (0x1d3), region = 48  ;;  %363 = vmatprep.mubr.bf16.mxu1 (!%p248_p2), %v1895_v0  ;;  %427 = vmatprep.mubr.bf16.mxu0 (!%p248_p2), %v1895_v0  ;;  %v1869_v8 = vld [vmem:[%s2315_s4] sm:$0x1f] (!%p248_p2)   ;;  %vm384_vm3 = vcmask (!%p248_p2), 48128   ;;  %v1871_v11 = vld [vmem:[%s2315_s4 + $0x8] sm:$0x1f] (!%p248_p2)  }
   0x7   : > { %1865 = vset.pattern.permute.xlu0 (!%p248_p2), %v1895_v0  ;;  %1866 = vset.pattern.permute.xlu1 (!%p248_p2), %v1895_v0  ;;  %v1870_v9 = vld [vmem:[%s2314_s3] sm:$0x1f] (!%p248_p2)   ;;  %v1872_v12 = vld [vmem:[%s2315_s4 + $0x10] sm:$0x1f] (!%p248_p2)   ;;  %v1580_v13 = vld [vmem:[%s2312_s1 + $0x8] sm:$0x3] (!%p248_p2) }
   0x8   : > { %1583 = vperm.xlu0 (!%p248_p2), %1865, %v1579_v1   ;;  %1588 = vperm.xlu1 (!%p248_p2), %1866, %v1580_v13   ;;  %v1873_v14 = vld [vmem:[%s2314_s3 + $0x8] sm:$0x1f] (!%p248_p2)   ;;  %v1874_v15 = vld [vmem:[%s2314_s3 + $0x10] sm:$0x1f] (!%p248_p2)   ;;  %v1875_v16 = vld [vmem:[%s2315_s4 + $0x18] sm:$0x1f] (!%p248_p2)  }
   0x9   : > { %v1876_v17 = vld [vmem:[%s2315_s4 + $0x20] sm:$0x1f] (!%p248_p2)   ;;  %v1877_v18 = vld [vmem:[%s2314_s3 + $0x18] sm:$0x1f] (!%p248_p2)   ;;  %v1879_v20 = vld [vmem:[%s2315_s4 + $0x28] sm:$0x1f] (!%p248_p2)  }
   0xa   : > { %v1878_v19 = vld [vmem:[%s2314_s3 + $0x20] sm:$0x1f] (!%p248_p2)   ;;  %v1880_v21 = vld [vmem:[%s2315_s4 + $0x30] sm:$0x1f] (!%p248_p2)   ;;  %v1881_v22 = vld [vmem:[%s2314_s3 + $0x28] sm:$0x1f] (!%p248_p2)  }
   0xb   : > { %v1882_v23 = vld [vmem:[%s2314_s3 + $0x30] sm:$0x1f] (!%p248_p2)   ;;  %v1883_v24 = vld [vmem:[%s2315_s4 + $0x38] sm:$0x1f] (!%p248_p2)   ;;  %v1884_v25 = vld [vmem:[%s2315_s4 + $0x40] sm:$0x1f] (!%p248_p2)  }
   0xc   : > { %v1885_v26 = vld [vmem:[%s2314_s3 + $0x38] sm:$0x1f] (!%p248_p2)   ;;  %v1886_v27 = vld [vmem:[%s2314_s3 + $0x40] sm:$0x1f] (!%p248_p2)   ;;  %s1897_s10 = smov (!%p248_p2), 16   ;;  %s1898_s11 = smov (!%p248_p2), 15  }
   0xd   : > { %s2320_s25 = smov (!%p284_p3, %s1696_s25), 1  ;;  %s1900_s13 = smov 127  }
   0xe   : > { %s1808_s28 = sshll.u32 %s2320_s25, 2  ;;  %s1807_s29 = sshll.u32 %s2320_s25, 3 }
   0xf   : > { %s293_s9 = scalar_lea.vmem %s2317_s6, %s1808_s28  ;;  %s288_s12 = scalar_lea.vmem %s2316_s5, %s1807_s29 }
  0x10   : > { %v1708_v2 = vld.sshfl [vmem:[%s293_s9] sm:$0x33 pattern:$0x76325410]  ;;  %s1896_s9 = smov 17   ;;  %s1901_s14 = smov 113  }
  0x11   : > { %v300_v3 = vld [vmem:[%s288_s12] sm:$0x77]  ;;  %v1969_v4 = vcombine.high %v1708_v2, %v1708_v2  ;;  %v1974_v6 = vsel %vm324_vm0, %v1708_v2, 0  ;;  %s1899_s12 = smov 1   ;;  %s1902_s15 = smov 111  }
  0x12   : > { %v1971_v5 = vcombine.high %v300_v3, %v300_v3  ;;  %v1712_v7 = vcombine.low %v300_v3, %v300_v3  ;;  %s1903_s16 = smov 112  }
  0x13   : > { %1709 = vmatprep.subr.msk.bf16.mxu1 %vm324_vm0, %v1969_v4 }
  0x14   : > { %1714 = vmatprep.subr.msk.bf16.mxu0 %vm388_vm1, %v1971_v5  ;;  %v1987_v10 = vsel %vm388_vm1, %v1712_v7, 0  ;;  %332 = vmatpush1.bf16.msra.mxu1 %v1974_v6 }
  0x15   : > { %396 = vmatpush1.bf16.msra.mxu0 %v1987_v10  ;;  %1721 = vmatprep.subr.msk.bf16.mxu1 %vm324_vm0, %v1969_v4 }
  0x16   : > { %1732 = vmatprep.subr.msk.bf16.mxu0 %vm324_vm0, %v1969_v4 }
  0x17   : > { %1710 = vmatmul.mubr.msk.bf16.vlgmr.msra.gmra.mrb[0].mxu1 %vm320_vm2, %v1869_v8  ;;  %v1595_v8 = vld [vmem:[%s2313_s2] sm:$0xff] }
  0x18   : > { %1715 = vmatmul.mubr.msk.bf16.vlgmr.msra.gmra.mrb[0].mxu0 %vm384_vm3, %v1870_v9  ;;  %488 = vmatpush1.bf16.msra.mxu1 %v1974_v6  ;;  %v1596_v9 = vld [vmem:[%s2313_s2 + $0x8] sm:$0x3] }
  0x19   : > { %630 = vmatpush1.bf16.msra.mxu0 %v1974_v6  ;;  %519 = vmatprep.mubr.bf16.mxu1 %v1895_v0 }
  0x1a   : > { %661 = vmatprep.mubr.bf16.mxu0 %v1895_v0  ;;  %1724 = vmatprep.subr.msk.bf16.mxu1 %vm388_vm1, %v1971_v5 }
  0x1b   : > { %1735 = vmatprep.subr.msk.bf16.mxu0 %vm388_vm1, %v1971_v5 }
  0x1f   : > { %1722 = vmatmul.mubr.msk.bf16.vlgmr.msra.gmra.mrb[4].mxu1 %vm320_vm2, %v1871_v11 }
  0x20   : > { %1733 = vmatmul.mubr.msk.bf16.vlgmr.msra.gmra.mrb[4].mxu0 %vm320_vm2, %v1872_v12  ;;  %539 = vmatpush1.bf16.msra.mxu1 %v1987_v10 }
  0x21   : > { %681 = vmatpush1.bf16.msra.mxu0 %v1987_v10  ;;  %570 = vmatprep.mubr.bf16.mxu1 %v1895_v0 }
  0x22   : > { %712 = vmatprep.mubr.bf16.mxu0 %v1895_v0  ;;  %1743 = vmatprep.subr.msk.bf16.mxu1 %vm324_vm0, %v1969_v4 }
  0x23   : > { %1754 = vmatprep.subr.msk.bf16.mxu0 %vm324_vm0, %v1969_v4 }
  0x2b   : > { %1725 = vmatmul.mubr.msk.bf16.vlgmr.msra.gmra.mrb[4].mxu1 %vm384_vm3, %v1873_v14 }
  0x2c   : > { %1736 = vmatmul.mubr.msk.bf16.vlgmr.msra.gmra.mrb[4].mxu0 %vm384_vm3, %v1874_v15  ;;  %772 = vmatpush1.bf16.msra.mxu1 %v1974_v6 }
  0x2d   : > { %914 = vmatpush1.bf16.msra.mxu0 %v1974_v6  ;;  %803 = vmatprep.mubr.bf16.mxu1 %v1895_v0 }
  0x2e   : > { %945 = vmatprep.mubr.bf16.mxu0 %v1895_v0  ;;  %1746 = vmatprep.subr.msk.bf16.mxu1 %vm388_vm1, %v1971_v5 }
  0x2f   : > { %1757 = vmatprep.subr.msk.bf16.mxu0 %vm388_vm1, %v1971_v5 }
  0x33   : > { %1744 = vmatmul.mubr.msk.bf16.vlgmr.msra.gmra.mrb[8].mxu1 %vm320_vm2, %v1875_v16 }
  0x34   : > { %1755 = vmatmul.mubr.msk.bf16.vlgmr.msra.gmra.mrb[8].mxu0 %vm320_vm2, %v1876_v17  ;;  %823 = vmatpush1.bf16.msra.mxu1 %v1987_v10 }
  0x35   : > { %965 = vmatpush1.bf16.msra.mxu0 %v1987_v10  ;;  %854 = vmatprep.mubr.bf16.mxu1 %v1895_v0 }
  0x36   : > { %996 = vmatprep.mubr.bf16.mxu0 %v1895_v0  ;;  %1764 = vmatprep.subr.msk.bf16.mxu1 %vm324_vm0, %v1969_v4 }
  0x37   : > { %1775 = vmatprep.subr.msk.bf16.mxu0 %vm324_vm0, %v1969_v4 }
  0x3f   : > { %1747 = vmatmul.mubr.msk.bf16.vlgmr.msra.gmra.mrb[8].mxu1 %vm384_vm3, %v1877_v18 }
  0x40   : > { %1758 = vmatmul.mubr.msk.bf16.vlgmr.msra.gmra.mrb[8].mxu0 %vm384_vm3, %v1878_v19  ;;  %1026 = vmatpush1.bf16.msra.mxu1 %v1974_v6 }
  0x41   : > { %1168 = vmatpush1.bf16.msra.mxu0 %v1974_v6  ;;  %1057 = vmatprep.mubr.bf16.mxu1 %v1895_v0 }
  0x42   : > { %1199 = vmatprep.mubr.bf16.mxu0 %v1895_v0  ;;  %1767 = vmatprep.subr.msk.bf16.mxu1 %vm388_vm1, %v1971_v5 }
  0x43   : > { %1778 = vmatprep.subr.msk.bf16.mxu0 %vm388_vm1, %v1971_v5 }
  0x47   : > { %1765 = vmatmul.mubr.msk.bf16.vlgmr.msra.gmra.mrb[12].mxu1 %vm320_vm2, %v1879_v20 }
  0x48   : > { %1776 = vmatmul.mubr.msk.bf16.vlgmr.msra.gmra.mrb[12].mxu0 %vm320_vm2, %v1880_v21  ;;  %1077 = vmatpush1.bf16.msra.mxu1 %v1987_v10 }
  0x49   : > { %1219 = vmatpush1.bf16.msra.mxu0 %v1987_v10  ;;  %1108 = vmatprep.mubr.bf16.mxu1 %v1895_v0 }
  0x4a   : > { %1250 = vmatprep.mubr.bf16.mxu0 %v1895_v0  ;;  %1786 = vmatprep.subr.msk.bf16.mxu1 %vm324_vm0, %v1969_v4 }
  0x4b   : > { %1797 = vmatprep.subr.msk.bf16.mxu0 %vm324_vm0, %v1969_v4 }
  0x53   : > { %1768 = vmatmul.mubr.msk.bf16.vlgmr.msra.gmra.mrb[12].mxu1 %vm384_vm3, %v1881_v22 }
  0x54   : > { %1779 = vmatmul.mubr.msk.bf16.vlgmr.msra.gmra.mrb[12].mxu0 %vm384_vm3, %v1882_v23  ;;  %1310 = vmatpush1.bf16.msra.mxu1 %v1974_v6 }
  0x55   : > { %1452 = vmatpush1.bf16.msra.mxu0 %v1974_v6  ;;  %1341 = vmatprep.mubr.bf16.mxu1 %v1895_v0 }
  0x56   : > { %1483 = vmatprep.mubr.bf16.mxu0 %v1895_v0  ;;  %1789 = vmatprep.subr.msk.bf16.mxu1 %vm388_vm1, %v1971_v5 }
  0x57   : > { %1800 = vmatprep.subr.msk.bf16.mxu0 %vm388_vm1, %v1971_v5 }
  0x5b   : > { %1787 = vmatmul.mubr.msk.bf16.vlgmr.msra.gmra.mrb[16].mxu1 %vm320_vm2, %v1883_v24 }
  0x5c   : > { %1798 = vmatmul.mubr.msk.bf16.vlgmr.msra.gmra.mrb[16].mxu0 %vm320_vm2, %v1884_v25  ;;  %1361 = vmatpush1.bf16.msra.mxu1 %v1987_v10 }
  0x5d   : > { %1503 = vmatpush1.bf16.msra.mxu0 %v1987_v10  ;;  %1392 = vmatprep.mubr.bf16.mxu1 %v1895_v0 }
  0x5e   : > { %1534 = vmatprep.mubr.bf16.mxu0 %v1895_v0 }
  0x67   : > { %1790 = vmatmul.mubr.msk.bf16.vlgmr.msra.gmra.mrb[16].mxu1 %vm384_vm3, %v1885_v26 }
  0x68   : > { %1801 = vmatmul.mubr.msk.bf16.vlgmr.msra.gmra.mrb[16].mxu0 %vm384_vm3, %v1886_v27 }
  0x87   : > { %v2138_v10 = vpop.permute.xlu0 %1583  ;;  %v2140_v11 = vpop.permute.xlu1 %1588 }
  0xea   : > { %v365_v28 = vpop.f32.mrb[0].mxu1 }
  0xeb   : > { %v429_v29 = vpop.f32.mrb[0].mxu0  ;;  %v367_v31 = vpop.f32.mrb[1].mxu1 }
  0xec   : > { %v430_v30 = vadd.f32 %v429_v29, %v365_v28  ;;  %v431_v32 = vpop.f32.mrb[1].mxu0  ;;  %v369_v34 = vpop.f32.mrb[2].mxu1  ;;  %v446_v29 = vlaneseq }
  0xed   : > { %v432_v33 = vadd.f32 %v431_v32, %v367_v31  ;;  %v433_v35 = vpop.f32.mrb[2].mxu0  ;;  %v371_v37 = vpop.f32.mrb[3].mxu1 }
  0xee   : > { %v434_v36 = vadd.f32 %v433_v35, %v369_v34  ;;  %v435_v38 = vpop.f32.mrb[3].mxu0  ;;  %438 = vrot.lane.b32.xlu0 %v430_v30, %s1896_s9  ;;  %v456_v32 = vshrl.u32 %v446_v29, 7  ;;  %v2150_v34 = vand.u32 127, %v446_v29 }
  0xef   : > { %v436_v39 = vadd.f32 %v435_v38, %v371_v37  ;;  %442 = vrot.lane.b32.xlu1 %v432_v33, %s1896_s9  ;;  %v453_v37 = vld [vmem:[%s2311_s0] ss:$8 sm:$0x3]  ;;  %v1726_v38 = vld [vmem:[%s2311_s0 + $0x1] ss:$8 sm:$0x3] }
  0xf0   : > { %v2152_v35 = vsub.s32 0, %v456_v32  ;;  %vm448_vm4 = vcmp.lt.s32.totalorder %v2150_v34, 17  ;;  %vm589_vm5 = vcmp.lt.s32.totalorder %v2150_v34, 16  ;;  %vm731_vm6 = vcmp.lt.s32.totalorder %v2150_v34, 15 }
  0xf1   : > { %vm873_vm7 = vcmp.lt.s32.totalorder %v2150_v34, 1  ;;  %vm1127_vm8 = vcmp.lt.s32.totalorder %v2150_v34, 127  ;;  %vm1269_vm9 = vcmp.lt.s32.totalorder %v2150_v34, 113  ;;  %vm1553_vm10 = vcmp.lt.s32.totalorder %v2150_v34, 111 }
  0xf2   : > { %440 = vrot.lane.b32.xlu0 %v434_v36, %s1896_s9  ;;  %v2154_v36 = vsub.s32 1, %v456_v32  ;;  %vm1411_vm11 = vcmp.lt.s32.totalorder %v2150_v34, 112 }
  0xf3   : > { %444 = vrot.lane.b32.xlu1 %v436_v39, %s1896_s9 }
  0xfe   : > { %v572_v40 = vpop.f32.mrb[4].mxu1 }
  0xff   : > { %v714_v41 = vpop.f32.mrb[4].mxu0  ;;  %v574_v42 = vpop.f32.mrb[5].mxu1  ;;  %581 = vrot.lane.b32.xlu0 %v572_v40, %s1897_s10 }
 0x100   : > { %v716_v43 = vpop.f32.mrb[5].mxu0  ;;  %v576_v44 = vpop.f32.mrb[6].mxu1 }
 0x101   : > { %v718_v45 = vpop.f32.mrb[6].mxu0  ;;  %v578_v46 = vpop.f32.mrb[7].mxu1  ;;  %583 = vrot.lane.b32.xlu1 %v576_v44, %s1897_s10  ;;  %v600_v44 = vrot.slane %v1726_v38, %v2152_v35 }
 0x102   : > { %v720_v47 = vpop.f32.mrb[7].mxu0 }
 0x103   : > { %723 = vrot.lane.b32.xlu0 %v714_v41, %s1898_s11  ;;  %v1737_v41 = vld [vmem:[%s2311_s0 + $0x2] ss:$8 sm:$0x3] }
 0x105   : > { %725 = vrot.lane.b32.xlu1 %v718_v45, %s1898_s11  ;;  %v604_v45 = vrot.slane %v1726_v38, %v2154_v36  ;;  %v1780_v38 = vld [vmem:[%s2311_s0 + $0x6] ss:$8 sm:$0x3] }
 0x107   : > { %585 = vrot.lane.b32.xlu0 %v574_v42, %s1897_s10  ;;  %v458_v42 = vrot.slane %v453_v37, %v2152_v35 }
 0x109   : > { %587 = vrot.lane.b32.xlu1 %v578_v46, %s1897_s10  ;;  %v1748_v46 = vld [vmem:[%s2311_s0 + $0x3] ss:$8 sm:$0x3] }
 0x10b   : > { %727 = vrot.lane.b32.xlu0 %v716_v43, %s1898_s11  ;;  %v462_v43 = vrot.slane %v453_v37, %v2154_v36 }
 0x10d   : > { %729 = vrot.lane.b32.xlu1 %v720_v47, %s1898_s11  ;;  %v1769_v47 = vld [vmem:[%s2311_s0 + $0x5] ss:$8 sm:$0x3] }
 0x112   : > { %v856_v48 = vpop.f32.mrb[8].mxu1 }
 0x113   : > { %v2124_v49 = vpop.f32.mrb[8].mxu0  ;;  %v858_v50 = vpop.f32.mrb[9].mxu1  ;;  %865 = vrot.lane.b32.xlu0 %v856_v48, %s1899_s12  ;;  %v742_v48 = vrot.slane %v1737_v41, %v2152_v35 }
 0x114   : > { %v2126_v51 = vpop.f32.mrb[9].mxu0  ;;  %v860_v52 = vpop.f32.mrb[10].mxu1 }
 0x115   : > { %v2128_v53 = vpop.f32.mrb[10].mxu0  ;;  %v862_v54 = vpop.f32.mrb[11].mxu1  ;;  %867 = vrot.lane.b32.xlu1 %v860_v52, %s1899_s12 }
 0x116   : > { %v2130_v55 = vpop.f32.mrb[11].mxu0 }
 0x117   : > { %869 = vrot.lane.b32.xlu0 %v858_v50, %s1899_s12  ;;  %v746_v50 = vrot.slane %v1737_v41, %v2154_v36 }
 0x119   : > { %871 = vrot.lane.b32.xlu1 %v862_v54, %s1899_s12 }
 0x126   : > { %v1110_v56 = vpop.f32.mrb[12].mxu1 }
 0x127   : > { %v1252_v57 = vpop.f32.mrb[12].mxu0  ;;  %v1112_v58 = vpop.f32.mrb[13].mxu1  ;;  %1119 = vrot.lane.b32.xlu0 %v1110_v56, %s1900_s13 }
 0x128   : > { %v1254_v59 = vpop.f32.mrb[13].mxu0  ;;  %v1114_v60 = vpop.f32.mrb[14].mxu1 }
 0x129   : > { %v1256_v61 = vpop.f32.mrb[14].mxu0  ;;  %v1116_v62 = vpop.f32.mrb[15].mxu1  ;;  %1121 = vrot.lane.b32.xlu1 %v1114_v60, %s1900_s13  ;;  %v2189_v60 = vrot.slane %v1769_v47, %v2152_v35 }
 0x12a   : > { %v1258_v63 = vpop.f32.mrb[15].mxu0 }
 0x12b   : > { %1261 = vrot.lane.b32.xlu0 %v1252_v57, %s1901_s14 }
 0x12d   : > { %1263 = vrot.lane.b32.xlu1 %v1256_v61, %s1901_s14 }
 0x12f   : > { %1123 = vrot.lane.b32.xlu0 %v1112_v58, %s1900_s13  ;;  %v884_v58 = vrot.slane %v1748_v46, %v2152_v35 }
 0x131   : > { %1125 = vrot.lane.b32.xlu1 %v1116_v62, %s1900_s13 }
 0x133   : > { %1265 = vrot.lane.b32.xlu0 %v1254_v59, %s1901_s14  ;;  %v888_v59 = vrot.slane %v1748_v46, %v2154_v36 }
 0x135   : > { %1267 = vrot.lane.b32.xlu1 %v1258_v63, %s1901_s14 }
 0x13a   : > { %v1394_v0 = vpop.f32.mrb[16].mxu1 }
 0x13b   : > { %v1536_v1 = vpop.f32.mrb[16].mxu0  ;;  %v1396_v2 = vpop.f32.mrb[17].mxu1  ;;  %1403 = vrot.lane.b32.xlu0 %v1394_v0, %s1903_s16 }
 0x13c   : > { %v1538_v3 = vpop.f32.mrb[17].mxu0  ;;  %1545 = vrot.lane.b32.xlu1 %v1536_v1, %s1902_s15  ;;  %v1398_v4 = vpop.f32.mrb[18].mxu1 }
 0x13d   : > { %v1540_v5 = vpop.f32.mrb[18].mxu0  ;;  %v1400_v6 = vpop.f32.mrb[19].mxu1 }
 0x13e   : > { %v1542_v7 = vpop.f32.mrb[19].mxu0 }
 0x13f   : > { %1407 = vrot.lane.b32.xlu0 %v1396_v2, %s1903_s16 }
 0x140   : > { %1549 = vrot.lane.b32.xlu1 %v1538_v3, %s1902_s15 }
 0x143   : > { %1547 = vrot.lane.b32.xlu0 %v1540_v5, %s1902_s15 }
 0x144   : > { %1405 = vrot.lane.b32.xlu1 %v1398_v4, %s1903_s16 }
 0x147   : > { %1551 = vrot.lane.b32.xlu0 %v1542_v7, %s1902_s15 }
 0x148   : > { %1409 = vrot.lane.b32.xlu1 %v1400_v6, %s1903_s16  ;;  %s1809_s16 = sshll.u32 %s2320_s25, 4 }
 0x149   : > { %s298_s19 = scalar_lea.vmem %s2318_s7, %s1809_s16 }
 0x14b   : > { %1604 = vperm.xlu0 %1865, %v1596_v9  }
 0x14c   : > { %1599 = vperm.xlu1 %1866, %v1595_v8  }
 0x160   : > { %v439_v12 = vpop.permute.xlu0 %438 }
 0x161   : > { %v443_v13 = vpop.permute.xlu1 %442 }
 0x162   : > { %v449_v63 = vsel %vm448_vm4, %v439_v12, %v443_v13  ;;  %v451_v0 = vsel %vm448_vm4, %v443_v13, %v439_v12 }
 0x163   : > { %v465_v13 = vmul.f32 %v458_v42, %v451_v0 }
 0x164   : > { %v441_v14 = vpop.permute.xlu0 %440 }
 0x165   : > { %v445_v15 = vpop.permute.xlu1 %444 }
 0x166   : > { %v450_v1 = vsel %vm448_vm4, %v441_v14, %v445_v15  ;;  %v452_v2 = vsel %vm448_vm4, %v445_v15, %v441_v14 }
 0x167   : > { %v468_v14 = vmul.f32 %v462_v43, %v450_v1 }
 0x171   : > { %v582_v16 = vpop.permute.xlu0 %581 }
 0x173   : > { %v584_v17 = vpop.permute.xlu1 %583 }
 0x175   : > { %v724_v18 = vpop.permute.xlu0 %723 }
 0x177   : > { %v726_v19 = vpop.permute.xlu1 %725 }
 0x179   : > { %v586_v20 = vpop.permute.xlu0 %585 }
 0x17a   : > { %v590_v52 = vsel %vm589_vm5, %v582_v16, %v586_v20  ;;  %v592_v54 = vsel %vm589_vm5, %v586_v20, %v582_v16  ;;  %v466_v16 = vmul.f32 %v462_v43, %v449_v63 }
 0x17b   : > { %v588_v21 = vpop.permute.xlu1 %587  ;;  %v607_v3 = vmul.f32 %v600_v44, %v592_v54  ;;  %v608_v4 = vmul.f32 %v604_v45, %v590_v52 }
 0x17c   : > { %v591_v56 = vsel %vm589_vm5, %v584_v17, %v588_v21  ;;  %v593_v57 = vsel %vm589_vm5, %v588_v21, %v584_v17  ;;  %v467_v17 = vmul.f32 %v458_v42, %v452_v2 }
 0x17d   : > { %v728_v22 = vpop.permute.xlu0 %727  ;;  %v609_v5 = vmul.f32 %v600_v44, %v593_v57  ;;  %v610_v6 = vmul.f32 %v604_v45, %v591_v56  ;;  %v611_v41 = vadd.f32 %v607_v3, %v465_v13  ;;  %v612_v42 = vadd.f32 %v608_v4, %v466_v16 }
 0x17e   : > { %v732_v7 = vsel %vm731_vm6, %v724_v18, %v728_v22  ;;  %v734_v8 = vsel %vm731_vm6, %v728_v22, %v724_v18 }
 0x17f   : > { %v730_v23 = vpop.permute.xlu1 %729  ;;  %v613_v43 = vadd.f32 %v609_v5, %v467_v17  ;;  %v614_v44 = vadd.f32 %v610_v6, %v468_v14 }
 0x180   : > { %v733_v9 = vsel %vm731_vm6, %v726_v19, %v730_v23  ;;  %v735_v12 = vsel %vm731_vm6, %v730_v23, %v726_v19  ;;  %v749_v19 = vmul.f32 %v742_v48, %v734_v8  ;;  %v750_v23 = vmul.f32 %v746_v50, %v732_v7 }
 0x181   : > { %v751_v32 = vmul.f32 %v742_v48, %v735_v12  ;;  %v752_v37 = vmul.f32 %v746_v50, %v733_v9  ;;  %v1284_v48 = vrot.slane %v1780_v38, %v2154_v36 }
 0x182   : > { %v753_v50 = vadd.f32 %v749_v19, %v611_v41  ;;  %v754_v56 = vadd.f32 %v750_v23, %v612_v42 }
 0x183   : > { %v755_v57 = vadd.f32 %v751_v32, %v613_v43  ;;  %v756_v63 = vadd.f32 %v752_v37, %v614_v44 }
 0x185   : > { %v866_v24 = vpop.permute.xlu0 %865 }
 0x187   : > { %v868_v25 = vpop.permute.xlu1 %867 }
 0x189   : > { %v870_v26 = vpop.permute.xlu0 %869 }
 0x18a   : > { %v874_v21 = vsel %vm873_vm7, %v866_v24, %v870_v26  ;;  %v876_v29 = vsel %vm873_vm7, %v870_v26, %v866_v24 }
 0x18b   : > { %v872_v27 = vpop.permute.xlu1 %871  ;;  %v891_v45 = vmul.f32 %v884_v58, %v876_v29  ;;  %v892_v24 = vmul.f32 %v888_v59, %v874_v21 }
 0x18c   : > { %v875_v18 = vsel %vm873_vm7, %v868_v25, %v872_v27  ;;  %v877_v22 = vsel %vm873_vm7, %v872_v27, %v868_v25  ;;  %v1142_v25 = vrot.slane %v1769_v47, %v2154_v36  ;;  %v1280_v27 = vrot.slane %v1780_v38, %v2152_v35 }
 0x18d   : > { %v893_v26 = vmul.f32 %v884_v58, %v877_v22  ;;  %v894_v46 = vmul.f32 %v888_v59, %v875_v18  ;;  %v1791_v58 = vld [vmem:[%s2311_s0 + $0x7] ss:$8 sm:$0x3]  ;;  %v895_v2 = vadd.f32 %v891_v45, %v753_v50  ;;  %v896_v3 = vadd.f32 %v892_v24, %v754_v56 }
 0x18f   : > { %v897_v4 = vadd.f32 %v893_v26, %v755_v57  ;;  %v898_v5 = vadd.f32 %v894_v46, %v756_v63  ;;  %v1007_v17 = vadd.f32 %v2124_v49, %v895_v2  ;;  %v1008_v14 = vadd.f32 %v2126_v51, %v896_v3 }
 0x191   : > { %v1009_v21 = vadd.f32 %v2128_v53, %v897_v4  ;;  %v1010_v29 = vadd.f32 %v2130_v55, %v898_v5  ;;  %v1802_v53 = vld [vmem:[%s2311_s0 + $0x10] ss:$8 sm:$0x3] }
 0x192   : > { %v1564_v44 = vrot.slane %v1802_v53, %v2152_v35  ;;  %v1568_v45 = vrot.slane %v1802_v53, %v2154_v36 }
 0x199   : > { %v2142_v28 = vpop.permute.xlu0 %1119 }
 0x19b   : > { %v2144_v30 = vpop.permute.xlu1 %1121 }
 0x19d   : > { %v2146_v31 = vpop.permute.xlu0 %1261 }
 0x19f   : > { %v2148_v33 = vpop.permute.xlu1 %1263 }
 0x1a1   : > { %v2162_v39 = vpop.permute.xlu0 %1123 }
 0x1a2   : > { %v1128_v59 = vsel %vm1127_vm8, %v2142_v28, %v2162_v39  ;;  %v1130_v47 = vsel %vm1127_vm8, %v2162_v39, %v2142_v28  ;;  %v1422_v28 = vrot.slane %v1791_v58, %v2152_v35  ;;  %v1426_v39 = vrot.slane %v1791_v58, %v2154_v36 }
 0x1a3   : > { %v2164_v40 = vpop.permute.xlu1 %1125  ;;  %v1145_v7 = vmul.f32 %v2189_v60, %v1128_v59  ;;  %v1146_v8 = vmul.f32 %v1142_v25, %v1130_v47 }
 0x1a4   : > { %v1129_v0 = vsel %vm1127_vm8, %v2144_v30, %v2164_v40  ;;  %v1131_v1 = vsel %vm1127_vm8, %v2164_v40, %v2144_v30 }
 0x1a5   : > { %v2191_v61 = vpop.permute.xlu0 %1265  ;;  %v1147_v9 = vmul.f32 %v2189_v60, %v1129_v0  ;;  %v1148_v12 = vmul.f32 %v1142_v25, %v1131_v1  ;;  %v1149_v55 = vadd.f32 %v1145_v7, %v1007_v17  ;;  %v1150_v23 = vadd.f32 %v1146_v8, %v1008_v14 }
 0x1a6   : > { %v1270_v40 = vsel %vm1269_vm9, %v2146_v31, %v2191_v61  ;;  %v1272_v13 = vsel %vm1269_vm9, %v2191_v61, %v2146_v31 }
 0x1a7   : > { %v2193_v62 = vpop.permute.xlu1 %1267  ;;  %v1287_v49 = vmul.f32 %v1280_v27, %v1270_v40  ;;  %v1151_v32 = vadd.f32 %v1147_v9, %v1009_v21  ;;  %v1152_v37 = vadd.f32 %v1148_v12, %v1010_v29 }
 0x1a8   : > { %v1271_v16 = vsel %vm1269_vm9, %v2148_v33, %v2193_v62  ;;  %v1273_v60 = vsel %vm1269_vm9, %v2193_v62, %v2148_v33  ;;  %v1288_v62 = vmul.f32 %v1284_v48, %v1272_v13 }
 0x1a9   : > { %v1289_v51 = vmul.f32 %v1280_v27, %v1271_v16  ;;  %v1290_v19 = vmul.f32 %v1284_v48, %v1273_v60  ;;  %v1291_v24 = vadd.f32 %v1287_v49, %v1149_v55 }
 0x1aa   : > { %v1292_v26 = vadd.f32 %v1288_v62, %v1150_v23 }
 0x1ab   : > { %v1293_v46 = vadd.f32 %v1289_v51, %v1151_v32 }
 0x1ad   : > { %v1404_v20 = vpop.permute.xlu0 %1403 }
 0x1ae   : > { %v2211_v15 = vpop.permute.xlu1 %1545 }
 0x1b1   : > { %v1408_v54 = vpop.permute.xlu0 %1407 }
 0x1b2   : > { %v2224_v52 = vpop.permute.xlu1 %1549  ;;  %v1412_v31 = vsel %vm1411_vm11, %v1404_v20, %v1408_v54  ;;  %v1414_v61 = vsel %vm1411_vm11, %v1408_v54, %v1404_v20  ;;  %v1294_v54 = vadd.f32 %v1290_v19, %v1152_v37 }
 0x1b3   : > { %v1429_v38 = vmul.f32 %v1422_v28, %v1412_v31  ;;  %v1430_v20 = vmul.f32 %v1426_v39, %v1414_v61  ;;  %v1554_v25 = vsel %vm1553_vm10, %v2211_v15, %v2224_v52  ;;  %v1556_v27 = vsel %vm1553_vm10, %v2224_v52, %v2211_v15 }
 0x1b4   : > { %v1571_v63 = vmul.f32 %v1564_v44, %v1554_v25  ;;  %v1572_v58 = vmul.f32 %v1568_v45, %v1556_v27 }
 0x1b5   : > { %v1548_v30 = vpop.permute.xlu0 %1547  ;;  %v1433_v36 = vadd.f32 %v1429_v38, %v1291_v24  ;;  %v1434_v50 = vadd.f32 %v1430_v20, %v1292_v26 }
 0x1b6   : > { %v1406_v6 = vpop.permute.xlu1 %1405 }
 0x1b7   : > { %v1575_v0 = vadd.f32 %v1571_v63, %v1433_v36  ;;  %v1576_v1 = vadd.f32 %v1572_v58, %v1434_v50 }
 0x1b9   : > { %v1552_v43 = vpop.permute.xlu0 %1551  ;;  %v1591_v15 = vmul.f32 %v2138_v10, %v1575_v0  ;;  %v1592_v52 = vmul.f32 %v2138_v10, %v1576_v1 }
 0x1ba   : > { %v1410_v18 = vpop.permute.xlu1 %1409  ;;  %v1555_v48 = vsel %vm1553_vm10, %v1548_v30, %v1552_v43  ;;  %v1557_v35 = vsel %vm1553_vm10, %v1552_v43, %v1548_v30 }
 0x1bb   : > { %v1413_v22 = vsel %vm1411_vm11, %v1406_v6, %v1410_v18  ;;  %v1415_v33 = vsel %vm1411_vm11, %v1410_v18, %v1406_v6  ;;  %v1573_v59 = vmul.f32 %v1564_v44, %v1555_v48  ;;  %v1574_v47 = vmul.f32 %v1568_v45, %v1557_v35 }
 0x1bc   : > { %v1431_v41 = vmul.f32 %v1422_v28, %v1413_v22  ;;  %v1432_v42 = vmul.f32 %v1426_v39, %v1415_v33 }
 0x1be   : > { %v1435_v56 = vadd.f32 %v1431_v41, %v1293_v46  ;;  %v1436_v57 = vadd.f32 %v1432_v42, %v1294_v54 }
 0x1c0   : > { %v1577_v2 = vadd.f32 %v1573_v59, %v1435_v56  ;;  %v1578_v3 = vadd.f32 %v1574_v47, %v1436_v57 }
 0x1c2   : > { %v1593_v34 = vmul.f32 %v2140_v11, %v1577_v2  ;;  %v1594_v4 = vmul.f32 %v2140_v11, %v1578_v3 }
 0x1ca   : > { %v1605_v6 = vpop.permute.xlu0 %1604 }
 0x1cb   : > { %v1600_v5 = vpop.permute.xlu1 %1599  ;;  %v1609_v7 = vadd.f32 %v1605_v6, %v1593_v34  ;;  %v1610_v8 = vadd.f32 %v1605_v6, %v1594_v4 }
 0x1cc   : > { %v1607_v28 = vadd.f32 %v1600_v5, %v1591_v15  ;;  %v1608_v39 = vadd.f32 %v1600_v5, %v1592_v52 }
 0x1cd   : > { %v1613_v30 = vmax.f32 %v1609_v7, 0.0  ;;  %v1614_v40 = vmax.f32 %v1610_v8, 0.0 }
 0x1ce   : > { %v1611_v9 = vmax.f32 %v1607_v28, 0.0  ;;  %v1612_v12 = vmax.f32 %v1608_v39, 0.0 }
 0x1cf   : > { %v1811_v13 = vpack.c.bf16 %v1614_v40, %v1613_v30 }
 0x1d0   : > { %v1810_v10 = vpack.c.bf16 %v1612_v12, %v1611_v9 }
 0x1d1   : > { %1628 = vst [vmem:[%s298_s19 + $0x8] sm:$0x11] %v1811_v13 }
 0x1d2   : > { %1627 = vst [vmem:[%s298_s19] sm:$0xff] %v1810_v10 }
 0x1d3 PF: > { %s17_s24 = sadd.s32 1, %s1893_s24  }
 0x1d4   : > { %p14_p4 = scmp.ge.s32.totalorder %s17_s24, 4  }
 0x1d6   :  { %16 = sbr.rel (!%p14_p4) target bundleno = 1 (0x1), region = 104 }

// kernel: hardblock_forward.7
= control target key start
LH: loop header
LB: loop body
LE: loop exit
PB: predicated region body
PF: predicated region fallthrough
CT: control target
= control target key end

     0   :  { %s3377_s30 = smov 0   ;;  %s4134_s0 = inlined_call_operand.vmem [shape: f32[9,256], index: 0, kind: input, shape index: {}]   ;;  %s4135_s1 = inlined_call_operand.vmem [shape: f32[18,1], index: 1, kind: input, shape index: {}]   ;;  %s4136_s2 = inlined_call_operand.vmem [shape: f32[18,1], index: 2, kind: input, shape index: {}]   ;;  %s4137_s3 = inlined_call_operand.vmem [shape: bf16[9,18,6], index: 3, kind: input, shape index: {}]   ;;  %s4138_s4 = inlined_call_operand.vmem [shape: bf16[9,18,10], index: 4, kind: input, shape index: {}]   ;;  %s4139_s5 = inlined_call_operand.vmem [shape: bf16[9,18,4], index: 5, kind: input, shape index: {}]   ;;  %s4140_s6 = inlined_call_operand.vmem [shape: bf16[2,6,256], index: 6, kind: input, shape index: {}]   ;;  %s4141_s7 = inlined_call_operand.vmem [shape: bf16[2,10,256], index: 7, kind: input, shape index: {}]   ;;  %s4142_s8 = inlined_call_operand.vmem [shape: bf16[2,4,256], index: 8, kind: input, shape index: {}]   ;;  %s4143_s9 = inlined_call_operand.vmem [shape: bf16[2,18,256], index: 9, kind: output, shape index: {}]  }
   0x1 LB: > { %s2853_s10 = sadd.s32 4294967295, %s3316_s30   ;;  %p2857_p0 = scmp.ge.s32.totalorder %s3316_s30, 1  ;;  %s3316_s30 = sphi %s3377_s30, %s19_s30  }
   0x2   : > { %p307_p1 = scmp.lt.s32.totalorder %s3316_s30, 3 }
   0x4   : > { %p308_p2 = pnand %p2857_p0, %p307_p1 }
   0x5   : > { %p353_p3 = scmp.lt.s32.totalorder (!%p308_p2), %s2853_s10, 1  ;;  %v3318_v0 = vmov (!%p308_p2), 0   ;;  %vm407_vm0 = vcmask (!%p308_p2), 1044480   ;;  %vm485_vm1 = vcmask (!%p308_p2), 1042432   ;;  %v3256_v6 = vld [vmem:[%s4138_s4] sm:$0xff] (!%p308_p2)   ;;  %vm400_vm2 = vcmask (!%p308_p2), 80896  }
   0x6   : > { %311 = sbr.rel (%p308_p2) target bundleno = 597 (0x255), region = 56  ;;  %446 = vmatprep.mubr.bf16.mxu1 (!%p308_p2), %v3318_v0  ;;  %524 = vmatprep.mubr.bf16.mxu0 (!%p308_p2), %v3318_v0  ;;  %v3257_v7 = vld [vmem:[%s4137_s3] sm:$0xff] (!%p308_p2)   ;;  %vm570_vm3 = vcmask (!%p308_p2), 1041408   ;;  %vm478_vm4 = vcmask (!%p308_p2), 48128   ;;  %vm563_vm5 = vcmask (!%p308_p2), 31744   ;;  %v3262_v17 = vld [vmem:[%s4138_s4 + $0xc] sm:$0xff] (!%p308_p2)  }
   0x7   : > { %3249 = vset.pattern.permute.xlu0 (!%p308_p2), %v3318_v0  ;;  %3250 = vset.pattern.permute.xlu1 (!%p308_p2), %v3318_v0  ;;  %v3258_v13 = vld [vmem:[%s4138_s4 + $0x8] ss:$0 sps:$4 sm:$0x11] (!%p308_p2)   ;;  %v3259_v14 = vld [vmem:[%s4139_s5] sm:$0xff] (!%p308_p2)   ;;  %v3263_v18 = vld [vmem:[%s4138_s4 + $0x18] sm:$0xff] (!%p308_p2)   ;;  %s3319_s25 = smov (!%p308_p2), 17  }
   0x8   : > { %v3260_v15 = vld [vmem:[%s4137_s3 + $0x8] ss:$0 sps:$4 sm:$0x11] (!%p308_p2)   ;;  %v3264_v19 = vld [vmem:[%s4138_s4 + $0x14] ss:$0 sps:$4 sm:$0x11] (!%p308_p2)  }
   0x9   : > { %v3261_v16 = vld [vmem:[%s4139_s5 + $0x8] ss:$0 sps:$4 sm:$0x11] (!%p308_p2)   ;;  %v3265_v20 = vld [vmem:[%s4138_s4 + $0x20] ss:$0 sps:$4 sm:$0x11] (!%p308_p2)  }
   0xa   : > { %v3266_v21 = vld [vmem:[%s4137_s3 + $0xc] sm:$0xff] (!%p308_p2)   ;;  %v3267_v22 = vld [vmem:[%s4137_s3 + $0x18] sm:$0xff] (!%p308_p2)   ;;  %v3268_v23 = vld [vmem:[%s4137_s3 + $0x14] ss:$0 sps:$4 sm:$0x11] (!%p308_p2)   ;;  %s3321_s27 = smov (!%p308_p2), 15  }
   0xb   : > { %v3269_v24 = vld [vmem:[%s4137_s3 + $0x20] ss:$0 sps:$4 sm:$0x11] (!%p308_p2)   ;;  %v3270_v25 = vld [vmem:[%s4139_s5 + $0xc] sm:$0xff] (!%p308_p2)   ;;  %v3271_v26 = vld [vmem:[%s4139_s5 + $0x18] sm:$0xff] (!%p308_p2)   ;;  %s3322_s28 = smov (!%p308_p2), 1  }
   0xc   : > { %v3272_v27 = vld [vmem:[%s4139_s5 + $0x14] ss:$0 sps:$4 sm:$0x11] (!%p308_p2)   ;;  %v3273_v28 = vld [vmem:[%s4139_s5 + $0x20] ss:$0 sps:$4 sm:$0x11] (!%p308_p2)  }
   0xd   : > { %s4145_s10 = smov (!%p353_p3, %s2853_s10), 1  ;;  %v3274_v29 = vld [vmem:[%s4138_s4 + $0x24] sm:$0xff]   ;;  %v3275_v30 = vld [vmem:[%s4138_s4 + $0x30] sm:$0xff]   ;;  %v3276_v33 = vld [vmem:[%s4138_s4 + $0x2c] ss:$0 sps:$4 sm:$0x11]  }
   0xe   : > { %s3090_s11 = sshll.u32 %s4145_s10, 4  ;;  %s3089_s12 = sshll.u32 %s4145_s10, 3  ;;  %v2697_v31 = vld [vmem:[%s4135_s1] sm:$0xff]  ;;  %v2698_v32 = vld [vmem:[%s4135_s1 + $0x8] sm:$0xff]  ;;  %v2699_v36 = vld [vmem:[%s4135_s1 + $0x10] sm:$0x3] }
   0xf   : > { %s362_s15 = scalar_lea.vmem %s4141_s7, %s3090_s11  ;;  %s357_s18 = scalar_lea.vmem %s4140_s6, %s3089_s12  ;;  %2702 = vperm.xlu0 %3249, %v2697_v31   ;;  %v3277_v34 = vld [vmem:[%s4138_s4 + $0x38] ss:$0 sps:$4 sm:$0x11]   ;;  %2707 = vperm.xlu1 %3250, %v2698_v32   ;;  %v2721_v35 = vld [vmem:[%s4136_s2] sm:$0xff]  ;;  %v3279_v38 = vld [vmem:[%s4137_s3 + $0x30] sm:$0xff]  }
  0x10   : > { %v3399_v1 = vld [vmem:[%s362_s15 + $0x4] ss:$8 sps:$4 sm:$0x1f]   ;;  %v3254_v3 = vld [vmem:[%s362_s15] ss:$8 sps:$4 sm:$0x1f]  }
  0x11   : > { %v374_v2 = vld [vmem:[%s357_s18] sm:$0x77]  ;;  %s3091_s19 = sshll.u32 %s4145_s10, 2  ;;  %2869 = vmatprep.subr.msk.bf16.mxu1 %vm407_vm0, %v3399_v1  ;;  %v3416_v8 = vsel %vm407_vm0, %v3254_v3, 0  ;;  %v3283_v42 = vld [vmem:[%s4139_s5 + $0x30] sm:$0xff]   ;;  %v3287_v46 = vld [vmem:[%s4138_s4 + $0x48] sm:$0xff]  }
  0x12   : > { %v3404_v4 = vcombine.high %v374_v2, %v374_v2  ;;  %v2874_v5 = vcombine.low %v374_v2, %v374_v2  ;;  %s367_s26 = scalar_lea.vmem %s4142_s8, %s3091_s19  ;;  %415 = vmatpush1.bf16.msra.mxu1 %v3416_v8  ;;  %v3278_v37 = vld [vmem:[%s4137_s3 + $0x24] sm:$0xff]   ;;  %v3280_v39 = vld [vmem:[%s4137_s3 + $0x2c] ss:$0 sps:$4 sm:$0x11]   ;;  %v3286_v45 = vld [vmem:[%s4138_s4 + $0x3c] sm:$0xff]   ;;  %s3323_s29 = smov 127  }
  0x13   : > { %v2881_v9 = vld.sshfl [vmem:[%s367_s26] sm:$0x33 pattern:$0x76325410]  ;;  %2726 = vperm.xlu0 %3249, %v2721_v35   ;;  %2712 = vperm.xlu1 %3250, %v2699_v36   ;;  %v3282_v41 = vld [vmem:[%s4139_s5 + $0x24] sm:$0xff]   ;;  %v3298_v57 = vld [vmem:[%s4138_s4 + $0x54] sm:$0xff]  }
  0x14   : > { %2876 = vmatprep.subr.msk.bf16.mxu0 %vm485_vm1, %v3404_v4  ;;  %v3422_v10 = vsel %vm485_vm1, %v2874_v5, 0  ;;  %v3424_v11 = vcombine.high %v2881_v9, %v2881_v9  ;;  %3095 = vmatprep.subr.msk.bf16.mxu1 %vm485_vm1, %v3404_v4  ;;  %v3432_v12 = vsel %vm570_vm3, %v2881_v9, 0  ;;  %v3281_v40 = vld [vmem:[%s4137_s3 + $0x38] ss:$0 sps:$4 sm:$0x11]   ;;  %v3290_v49 = vld [vmem:[%s4137_s3 + $0x3c] sm:$0xff]  }
  0x15   : > { %493 = vmatpush1.bf16.msra.mxu0 %v3422_v10  ;;  %2870 = vmatmul.mubr.msk.bf16.vlgmr.msra.gmra.mrb[0].mxu1 %vm400_vm2, %v3256_v6  ;;  %v3284_v43 = vld [vmem:[%s4139_s5 + $0x2c] ss:$0 sps:$4 sm:$0x11]   ;;  %v3285_v44 = vld [vmem:[%s4139_s5 + $0x38] ss:$0 sps:$4 sm:$0x11]  }
  0x16   : > { %2882 = vmatprep.subr.msk.bf16.mxu0 %vm570_vm3, %v3424_v11  ;;  %3096 = vmatpush1.bf16.msra.mxu1 %v3422_v10  ;;  %v3288_v47 = vld [vmem:[%s4138_s4 + $0x44] ss:$0 sps:$4 sm:$0x11]   ;;  %v3289_v48 = vld [vmem:[%s4138_s4 + $0x50] ss:$0 sps:$4 sm:$0x11]  }
  0x17   : > { %456 = vmatprep.mubr.bf16.mxu1 %v3318_v0  ;;  %2893 = vmatprep.subr.msk.bf16.mxu1 %vm407_vm0, %v3399_v1  ;;  %v3291_v50 = vld [vmem:[%s4137_s3 + $0x48] sm:$0xff]   ;;  %v3292_v51 = vld [vmem:[%s4137_s3 + $0x44] ss:$0 sps:$4 sm:$0x11]   ;;  %v3294_v53 = vld [vmem:[%s4139_s5 + $0x3c] sm:$0xff]   ;;  %s3320_s26 = smov 16  }
  0x18   : > { %2877 = vmatmul.mubr.msk.bf16.vlgmr.msra.gmra.mrb[0].mxu0 %vm478_vm4, %v3257_v7  ;;  %v3293_v52 = vld [vmem:[%s4137_s3 + $0x50] ss:$0 sps:$4 sm:$0x11]   ;;  %v3295_v54 = vld [vmem:[%s4139_s5 + $0x48] sm:$0xff]   ;;  %v3299_v58 = vld [vmem:[%s4138_s4 + $0x60] sm:$0xff]   ;;  %s3324_s11 = smov 113  }
  0x19   : > { %578 = vmatpush1.bf16.msra.mxu0 %v3432_v12  ;;  %609 = vmatprep.mubr.bf16.mxu0 %v3318_v0  ;;  %v3296_v55 = vld [vmem:[%s4139_s5 + $0x44] ss:$0 sps:$4 sm:$0x11]   ;;  %v3297_v56 = vld [vmem:[%s4139_s5 + $0x50] ss:$0 sps:$4 sm:$0x11]  }
  0x1a   : > { %2918 = vmatprep.subr.msk.bf16.mxu0 %vm407_vm0, %v3399_v1  ;;  %v3300_v59 = vld [vmem:[%s4138_s4 + $0x5c] ss:$0 sps:$4 sm:$0x11]   ;;  %v3301_v60 = vld [vmem:[%s4138_s4 + $0x68] ss:$0 sps:$4 sm:$0x11]  }
  0x1b   : > { %v3302_v61 = vld [vmem:[%s4137_s3 + $0x54] sm:$0xff]   ;;  %v3303_v62 = vld [vmem:[%s4137_s3 + $0x60] sm:$0xff]   ;;  %v3304_v63 = vld [vmem:[%s4137_s3 + $0x5c] ss:$0 sps:$4 sm:$0x11]   ;;  %s3325_s18 = smov 112  }
  0x1c   : > { %v3306_v2 = vld [vmem:[%s4139_s5 + $0x54] sm:$0xff]   ;;  %v3307_v3 = vld [vmem:[%s4139_s5 + $0x60] sm:$0xff]   ;;  %v3309_v5 = vld [vmem:[%s4139_s5 + $0x68] ss:$0 sps:$4 sm:$0x11]   ;;  %s3326_s19 = smov 111  }
  0x1d   : > { %2871 = vmatmul.mubr.msk.bf16.gmra.mrb[4].mxu1 %vm400_vm2, %v3258_v13  ;;  %s3231_s15 = smul.u32 24, %s4145_s10 }
  0x1e   : > { %534 = vmatprep.mubr.bf16.mxu1 %v3318_v0 }
  0x24   : > { %2883 = vmatmul.mubr.msk.bf16.vlgmr.msra.gmra.mrb[0].mxu0 %vm563_vm5, %v3259_v14 }
  0x25   : > { %959 = vmatpush1.bf16.msra.mxu0 %v3416_v8  ;;  %619 = vmatprep.mubr.bf16.mxu0 %v3318_v0 }
  0x26   : > { %2923 = vmatprep.subr.msk.bf16.mxu0 %vm485_vm1, %v3404_v4 }
  0x29   : > { %2878 = vmatmul.mubr.msk.bf16.vlgmr.msra.gmra.mrb[4].mxu1 %vm478_vm4, %v3260_v15 }
  0x2a   : > { %702 = vmatpush1.bf16.msra.mxu1 %v3416_v8  ;;  %733 = vmatprep.mubr.bf16.mxu1 %v3318_v0 }
  0x2b   : > { %2898 = vmatprep.subr.msk.bf16.mxu1 %vm485_vm1, %v3404_v4 }
  0x2c   : > { %2884 = vmatmul.mubr.msk.bf16.gmra.mrb[4].mxu0 %vm563_vm5, %v3261_v16 }
  0x2d   : > { %990 = vmatprep.mubr.bf16.mxu0 %v3318_v0 }
  0x31   : > { %2894 = vmatmul.mubr.msk.bf16.vlgmr.msra.gmra.mrb[8].mxu1 %vm400_vm2, %v3262_v17 }
  0x32   : > { %767 = vmatpush1.bf16.msra.mxu1 %v3422_v10  ;;  %743 = vmatprep.mubr.bf16.mxu1 %v3318_v0 }
  0x33   : > { %2906 = vmatprep.subr.msk.bf16.mxu1 %vm570_vm3, %v3424_v11 }
  0x34   : > { %2919 = vmatmul.mubr.msk.bf16.vlgmr.msra.gmra.mrb[8].mxu0 %vm400_vm2, %v3263_v18 }
  0x35   : > { %1024 = vmatpush1.bf16.msra.mxu0 %v3422_v10  ;;  %1000 = vmatprep.mubr.bf16.mxu0 %v3318_v0 }
  0x36   : > { %2931 = vmatprep.subr.msk.bf16.mxu0 %vm570_vm3, %v3424_v11 }
  0x39   : > { %2895 = vmatmul.mubr.msk.bf16.gmra.mrb[12].mxu1 %vm400_vm2, %v3264_v19 }
  0x3a   : > { %798 = vmatprep.mubr.bf16.mxu1 %v3318_v0 }
  0x3c   : > { %2920 = vmatmul.mubr.msk.bf16.gmra.mrb[12].mxu0 %vm400_vm2, %v3265_v20 }
  0x3d   : > { %1055 = vmatprep.mubr.bf16.mxu0 %v3318_v0 }
  0x41   : > { %2899 = vmatmul.mubr.msk.bf16.vlgmr.msra.gmra.mrb[8].mxu1 %vm478_vm4, %v3266_v21 }
  0x42   : > { %836 = vmatpush1.bf16.msra.mxu1 %v3432_v12  ;;  %808 = vmatprep.mubr.bf16.mxu1 %v3318_v0 }
  0x43   : > { %2943 = vmatprep.subr.msk.bf16.mxu1 %vm407_vm0, %v3399_v1 }
  0x44   : > { %2924 = vmatmul.mubr.msk.bf16.vlgmr.msra.gmra.mrb[8].mxu0 %vm478_vm4, %v3267_v22 }
  0x45   : > { %1093 = vmatpush1.bf16.msra.mxu0 %v3432_v12  ;;  %1065 = vmatprep.mubr.bf16.mxu0 %v3318_v0 }
  0x46   : > { %2968 = vmatprep.subr.msk.bf16.mxu0 %vm407_vm0, %v3399_v1 }
  0x49   : > { %2900 = vmatmul.mubr.msk.bf16.gmra.mrb[12].mxu1 %vm478_vm4, %v3268_v23 }
  0x4a   : > { %867 = vmatprep.mubr.bf16.mxu1 %v3318_v0 }
  0x4c   : > { %2925 = vmatmul.mubr.msk.bf16.gmra.mrb[12].mxu0 %vm478_vm4, %v3269_v24 }
  0x4d   : > { %1124 = vmatprep.mubr.bf16.mxu0 %v3318_v0 }
  0x51   : > { %2907 = vmatmul.mubr.msk.bf16.vlgmr.msra.gmra.mrb[8].mxu1 %vm563_vm5, %v3270_v25 }
  0x52   : > { %1216 = vmatpush1.bf16.msra.mxu1 %v3416_v8  ;;  %877 = vmatprep.mubr.bf16.mxu1 %v3318_v0 }
  0x53   : > { %2948 = vmatprep.subr.msk.bf16.mxu1 %vm485_vm1, %v3404_v4 }
  0x54   : > { %2932 = vmatmul.mubr.msk.bf16.vlgmr.msra.gmra.mrb[8].mxu0 %vm563_vm5, %v3271_v26 }
  0x55   : > { %1473 = vmatpush1.bf16.msra.mxu0 %v3416_v8  ;;  %1134 = vmatprep.mubr.bf16.mxu0 %v3318_v0 }
  0x56   : > { %2973 = vmatprep.subr.msk.bf16.mxu0 %vm485_vm1, %v3404_v4 }
  0x59   : > { %2908 = vmatmul.mubr.msk.bf16.gmra.mrb[12].mxu1 %vm563_vm5, %v3272_v27 }
  0x5a   : > { %1247 = vmatprep.mubr.bf16.mxu1 %v3318_v0 }
  0x5c   : > { %2933 = vmatmul.mubr.msk.bf16.gmra.mrb[12].mxu0 %vm563_vm5, %v3273_v28 }
  0x5d   : > { %1504 = vmatprep.mubr.bf16.mxu0 %v3318_v0 }
  0x61   : > { %2944 = vmatmul.mubr.msk.bf16.vlgmr.msra.gmra.mrb[16].mxu1 %vm400_vm2, %v3274_v29 }
  0x62   : > { %1281 = vmatpush1.bf16.msra.mxu1 %v3422_v10  ;;  %1257 = vmatprep.mubr.bf16.mxu1 %v3318_v0 }
  0x63   : > { %2956 = vmatprep.subr.msk.bf16.mxu1 %vm570_vm3, %v3424_v11 }
  0x64   : > { %2969 = vmatmul.mubr.msk.bf16.vlgmr.msra.gmra.mrb[16].mxu0 %vm400_vm2, %v3275_v30 }
  0x65   : > { %1538 = vmatpush1.bf16.msra.mxu0 %v3422_v10  ;;  %1514 = vmatprep.mubr.bf16.mxu0 %v3318_v0 }
  0x66   : > { %2981 = vmatprep.subr.msk.bf16.mxu0 %vm570_vm3, %v3424_v11 }
  0x69   : > { %2945 = vmatmul.mubr.msk.bf16.gmra.mrb[20].mxu1 %vm400_vm2, %v3276_v33 }
  0x6a   : > { %1312 = vmatprep.mubr.bf16.mxu1 %v3318_v0 }
  0x6c   : > { %2970 = vmatmul.mubr.msk.bf16.gmra.mrb[20].mxu0 %vm400_vm2, %v3277_v34 }
  0x6d   : > { %1569 = vmatprep.mubr.bf16.mxu0 %v3318_v0 }
  0x71   : > { %2949 = vmatmul.mubr.msk.bf16.vlgmr.msra.gmra.mrb[16].mxu1 %vm478_vm4, %v3278_v37 }
  0x72   : > { %1350 = vmatpush1.bf16.msra.mxu1 %v3432_v12  ;;  %1322 = vmatprep.mubr.bf16.mxu1 %v3318_v0 }
  0x73   : > { %2992 = vmatprep.subr.msk.bf16.mxu1 %vm407_vm0, %v3399_v1 }
  0x74   : > { %2974 = vmatmul.mubr.msk.bf16.vlgmr.msra.gmra.mrb[16].mxu0 %vm478_vm4, %v3279_v38 }
  0x75   : > { %1607 = vmatpush1.bf16.msra.mxu0 %v3432_v12  ;;  %1579 = vmatprep.mubr.bf16.mxu0 %v3318_v0 }
  0x76   : > { %3017 = vmatprep.subr.msk.bf16.mxu0 %vm407_vm0, %v3399_v1 }
  0x79   : > { %2950 = vmatmul.mubr.msk.bf16.gmra.mrb[20].mxu1 %vm478_vm4, %v3280_v39 }
  0x7a   : > { %1381 = vmatprep.mubr.bf16.mxu1 %v3318_v0 }
  0x7c   : > { %2975 = vmatmul.mubr.msk.bf16.gmra.mrb[24].mxu0 %vm478_vm4, %v3281_v40 }
  0x7d   : > { %1638 = vmatprep.mubr.bf16.mxu0 %v3318_v0 }
  0x81   : > { %2957 = vmatmul.mubr.msk.bf16.vlgmr.msra.gmra.mrb[16].mxu1 %vm563_vm5, %v3282_v41 }
  0x82   : > { %1692 = vmatpush1.bf16.msra.mxu1 %v3416_v8  ;;  %1391 = vmatprep.mubr.bf16.mxu1 %v3318_v0 }
  0x83   : > { %2997 = vmatprep.subr.msk.bf16.mxu1 %vm485_vm1, %v3404_v4 }
  0x84   : > { %2982 = vmatmul.mubr.msk.bf16.vlgmr.msra.gmra.mrb[16].mxu0 %vm563_vm5, %v3283_v42 }
  0x85   : > { %1949 = vmatpush1.bf16.msra.mxu0 %v3416_v8  ;;  %1648 = vmatprep.mubr.bf16.mxu0 %v3318_v0 }
  0x86   : > { %3022 = vmatprep.subr.msk.bf16.mxu0 %vm485_vm1, %v3404_v4 }
  0x89   : > { %2958 = vmatmul.mubr.msk.bf16.gmra.mrb[20].mxu1 %vm563_vm5, %v3284_v43 }
  0x8a   : > { %1723 = vmatprep.mubr.bf16.mxu1 %v3318_v0 }
  0x8c   : > { %2983 = vmatmul.mubr.msk.bf16.gmra.mrb[28].mxu0 %vm563_vm5, %v3285_v44 }
  0x8d   : > { %1980 = vmatprep.mubr.bf16.mxu0 %v3318_v0 }
  0x91   : > { %2993 = vmatmul.mubr.msk.bf16.vlgmr.msra.gmra.mrb[24].mxu1 %vm400_vm2, %v3286_v45 }
  0x92   : > { %1757 = vmatpush1.bf16.msra.mxu1 %v3422_v10  ;;  %1733 = vmatprep.mubr.bf16.mxu1 %v3318_v0 }
  0x93   : > { %3005 = vmatprep.subr.msk.bf16.mxu1 %vm570_vm3, %v3424_v11 }
  0x94   : > { %3018 = vmatmul.mubr.msk.bf16.vlgmr.msra.gmra.mrb[32].mxu0 %vm400_vm2, %v3287_v46 }
  0x95   : > { %2014 = vmatpush1.bf16.msra.mxu0 %v3422_v10  ;;  %1990 = vmatprep.mubr.bf16.mxu0 %v3318_v0 }
  0x96   : > { %3030 = vmatprep.subr.msk.bf16.mxu0 %vm570_vm3, %v3424_v11 }
  0x99   : > { %2994 = vmatmul.mubr.msk.bf16.gmra.mrb[28].mxu1 %vm400_vm2, %v3288_v47 }
  0x9a   : > { %1788 = vmatprep.mubr.bf16.mxu1 %v3318_v0 }
  0x9c   : > { %3019 = vmatmul.mubr.msk.bf16.gmra.mrb[36].mxu0 %vm400_vm2, %v3289_v48 }
  0x9d   : > { %2045 = vmatprep.mubr.bf16.mxu0 %v3318_v0 }
  0xa1   : > { %2998 = vmatmul.mubr.msk.bf16.vlgmr.msra.gmra.mrb[24].mxu1 %vm478_vm4, %v3290_v49 }
  0xa2   : > { %1826 = vmatpush1.bf16.msra.mxu1 %v3432_v12  ;;  %1798 = vmatprep.mubr.bf16.mxu1 %v3318_v0 }
  0xa3   : > { %3042 = vmatprep.subr.msk.bf16.mxu1 %vm407_vm0, %v3399_v1 }
  0xa4   : > { %3023 = vmatmul.mubr.msk.bf16.vlgmr.msra.gmra.mrb[32].mxu0 %vm478_vm4, %v3291_v50 }
  0xa5   : > { %2083 = vmatpush1.bf16.msra.mxu0 %v3432_v12  ;;  %2055 = vmatprep.mubr.bf16.mxu0 %v3318_v0 }
  0xa6   : > { %3067 = vmatprep.subr.msk.bf16.mxu0 %vm407_vm0, %v3399_v1  ;;  %v3305_v1 = vld [vmem:[%s4137_s3 + $0x68] ss:$0 sps:$4 sm:$0x11]  }
  0xa9   : > { %2999 = vmatmul.mubr.msk.bf16.gmra.mrb[28].mxu1 %vm478_vm4, %v3292_v51 }
  0xaa   : > { %1857 = vmatprep.mubr.bf16.mxu1 %v3318_v0 }
  0xac   : > { %3024 = vmatmul.mubr.msk.bf16.gmra.mrb[36].mxu0 %vm478_vm4, %v3293_v52 }
  0xad   : > { %2114 = vmatprep.mubr.bf16.mxu0 %v3318_v0 }
  0xb1   : > { %3006 = vmatmul.mubr.msk.bf16.vlgmr.msra.gmra.mrb[24].mxu1 %vm563_vm5, %v3294_v53 }
  0xb2   : > { %2206 = vmatpush1.bf16.msra.mxu1 %v3416_v8  ;;  %1867 = vmatprep.mubr.bf16.mxu1 %v3318_v0 }
  0xb3   : > { %3047 = vmatprep.subr.msk.bf16.mxu1 %vm485_vm1, %v3404_v4 }
  0xb4   : > { %3031 = vmatmul.mubr.msk.bf16.vlgmr.msra.gmra.mrb[32].mxu0 %vm563_vm5, %v3295_v54 }
  0xb5   : > { %2463 = vmatpush1.bf16.msra.mxu0 %v3416_v8  ;;  %2124 = vmatprep.mubr.bf16.mxu0 %v3318_v0 }
  0xb6   : > { %3072 = vmatprep.subr.msk.bf16.mxu0 %vm485_vm1, %v3404_v4  ;;  %v3308_v4 = vld [vmem:[%s4139_s5 + $0x5c] ss:$0 sps:$4 sm:$0x11]  }
  0xb9   : > { %3007 = vmatmul.mubr.msk.bf16.gmra.mrb[28].mxu1 %vm563_vm5, %v3296_v55 }
  0xba   : > { %2237 = vmatprep.mubr.bf16.mxu1 %v3318_v0 }
  0xbc   : > { %3032 = vmatmul.mubr.msk.bf16.gmra.mrb[36].mxu0 %vm563_vm5, %v3297_v56 }
  0xbd   : > { %2494 = vmatprep.mubr.bf16.mxu0 %v3318_v0 }
  0xc1   : > { %3043 = vmatmul.mubr.msk.bf16.vlgmr.msra.gmra.mrb[32].mxu1 %vm400_vm2, %v3298_v57 }
  0xc2   : > { %2271 = vmatpush1.bf16.msra.mxu1 %v3422_v10  ;;  %2247 = vmatprep.mubr.bf16.mxu1 %v3318_v0 }
  0xc3   : > { %3055 = vmatprep.subr.msk.bf16.mxu1 %vm570_vm3, %v3424_v11 }
  0xc4   : > { %3068 = vmatmul.mubr.msk.bf16.vlgmr.msra.gmra.mrb[40].mxu0 %vm400_vm2, %v3299_v58 }
  0xc5   : > { %2528 = vmatpush1.bf16.msra.mxu0 %v3422_v10  ;;  %2504 = vmatprep.mubr.bf16.mxu0 %v3318_v0 }
  0xc6   : > { %3080 = vmatprep.subr.msk.bf16.mxu0 %vm570_vm3, %v3424_v11 }
  0xc9   : > { %3044 = vmatmul.mubr.msk.bf16.gmra.mrb[36].mxu1 %vm400_vm2, %v3300_v59 }
  0xca   : > { %2302 = vmatprep.mubr.bf16.mxu1 %v3318_v0 }
  0xcc   : > { %3069 = vmatmul.mubr.msk.bf16.gmra.mrb[44].mxu0 %vm400_vm2, %v3301_v60 }
  0xcd   : > { %2559 = vmatprep.mubr.bf16.mxu0 %v3318_v0 }
  0xd1   : > { %3048 = vmatmul.mubr.msk.bf16.vlgmr.msra.gmra.mrb[32].mxu1 %vm478_vm4, %v3302_v61 }
  0xd2   : > { %2340 = vmatpush1.bf16.msra.mxu1 %v3432_v12  ;;  %2312 = vmatprep.mubr.bf16.mxu1 %v3318_v0 }
  0xd4   : > { %3073 = vmatmul.mubr.msk.bf16.vlgmr.msra.gmra.mrb[40].mxu0 %vm478_vm4, %v3303_v62  ;;  %v3790_v62 = vpop.permute.xlu0 %2702 }
  0xd5   : > { %2597 = vmatpush1.bf16.msra.mxu0 %v3432_v12  ;;  %2569 = vmatprep.mubr.bf16.mxu0 %v3318_v0 }
  0xd9   : > { %3049 = vmatmul.mubr.msk.bf16.gmra.mrb[36].mxu1 %vm478_vm4, %v3304_v63 }
  0xda   : > { %2371 = vmatprep.mubr.bf16.mxu1 %v3318_v0 }
  0xdc   : > { %3074 = vmatmul.mubr.msk.bf16.gmra.mrb[44].mxu0 %vm478_vm4, %v3305_v1 }
  0xdd   : > { %2628 = vmatprep.mubr.bf16.mxu0 %v3318_v0 }
  0xe1   : > { %3056 = vmatmul.mubr.msk.bf16.vlgmr.msra.gmra.mrb[32].mxu1 %vm563_vm5, %v3306_v2 }
  0xe2   : > { %2381 = vmatprep.mubr.bf16.mxu1 %v3318_v0 }
  0xe4   : > { %3081 = vmatmul.mubr.msk.bf16.vlgmr.msra.gmra.mrb[40].mxu0 %vm563_vm5, %v3307_v3 }
  0xe5   : > { %2638 = vmatprep.mubr.bf16.mxu0 %v3318_v0 }
  0xe8   : > { %v448_v6 = vpop.f32.mrb[0].mxu1 }
  0xe9   : > { %v450_v7 = vpop.f32.mrb[1].mxu1  ;;  %3057 = vmatmul.mubr.msk.bf16.gmra.mrb[36].mxu1 %vm563_vm5, %v3308_v4 }
  0xea   : > { %v452_v8 = vpop.f32.mrb[2].mxu1 }
  0xeb   : > { %v454_v9 = vpop.f32.mrb[3].mxu1 }
  0xec   : > { %3082 = vmatmul.mubr.msk.bf16.gmra.mrb[44].mxu0 %vm563_vm5, %v3309_v5 }
  0xf7   : > { %v611_v10 = vpop.f32.mrb[0].mxu0 }
  0xf8   : > { %v3097_v11 = vadd.f32 %v611_v10, %v448_v6  ;;  %v613_v12 = vpop.f32.mrb[1].mxu0  ;;  %v3798_v10 = vpop.permute.xlu0 %2726 }
  0xf9   : > { %v3098_v0 = vadd.f32 %v613_v12, %v450_v7  ;;  %v615_v13 = vpop.f32.mrb[2].mxu0 }
  0xfa   : > { %v3099_v14 = vadd.f32 %v615_v13, %v452_v8  ;;  %634 = vrot.lane.b32.xlu0 %v3097_v11, %s3319_s25  ;;  %v617_v15 = vpop.f32.mrb[3].mxu0 }
  0xfb   : > { %v3100_v16 = vadd.f32 %v617_v15, %v454_v9  ;;  %640 = vrot.lane.b32.xlu1 %v3098_v0, %s3319_s25  ;;  %v3796_v9 = vpop.permute.xlu1 %2707  ;;  %v646_v0 = vlaneseq }
  0xfc   : > { %v536_v17 = vpop.f32.mrb[4].mxu1 }
  0xfd   : > { %v538_v19 = vpop.f32.mrb[5].mxu1  ;;  %v3804_v13 = vand.u32 127, %v646_v0 }
  0xfe   : > { %636 = vrot.lane.b32.xlu0 %v3099_v14, %s3319_s25  ;;  %v540_v22 = vpop.f32.mrb[6].mxu1 }
  0xff   : > { %v621_v18 = vpop.f32.mrb[4].mxu0  ;;  %v541_v24 = vpop.f32.mrb[7].mxu1  ;;  %vm648_vm6 = vcmp.lt.s32.totalorder %v3804_v13, 17  ;;  %vm904_vm7 = vcmp.lt.s32.totalorder %v3804_v13, 16  ;;  %vm1161_vm8 = vcmp.lt.s32.totalorder %v3804_v13, 15  ;;  %vm1418_vm9 = vcmp.lt.s32.totalorder %v3804_v13, 1 }
 0x100   : > { %v3101_v20 = vadd.f32 %v621_v18, %v536_v17  ;;  %v623_v21 = vpop.f32.mrb[5].mxu0  ;;  %v3800_v11 = vpop.permute.xlu1 %2712  ;;  %vm1894_vm10 = vcmp.lt.s32.totalorder %v3804_v13, 127  ;;  %vm2151_vm11 = vcmp.lt.s32.totalorder %v3804_v13, 113  ;;  %vm2408_vm12 = vcmp.lt.s32.totalorder %v3804_v13, 112 }
 0x101   : > { %v3102_v23 = vadd.f32 %v623_v21, %v538_v19  ;;  %v625_v25 = vpop.f32.mrb[6].mxu0  ;;  %vm2665_vm13 = vcmp.lt.s32.totalorder %v3804_v13, 111 }
 0x102   : > { %642 = vrot.lane.b32.xlu0 %v3100_v16, %s3319_s25  ;;  %638 = vrot.lane.b32.xlu1 %v3101_v20, %s3319_s25  ;;  %v626_v26 = vpop.f32.mrb[7].mxu0 }
 0x106   : > { %644 = vrot.lane.b32.xlu1 %v3102_v23, %s3319_s25 }
 0x124   : > { %v869_v27 = vpop.f32.mrb[8].mxu1 }
 0x125   : > { %v871_v29 = vpop.f32.mrb[9].mxu1  ;;  %892 = vrot.lane.b32.xlu0 %v869_v27, %s3320_s26 }
 0x126   : > { %v873_v31 = vpop.f32.mrb[10].mxu1  ;;  %898 = vrot.lane.b32.xlu1 %v871_v29, %s3320_s26 }
 0x127   : > { %v1126_v28 = vpop.f32.mrb[8].mxu0  ;;  %v875_v33 = vpop.f32.mrb[11].mxu1 }
 0x128   : > { %v1128_v30 = vpop.f32.mrb[9].mxu0 }
 0x129   : > { %v1130_v32 = vpop.f32.mrb[10].mxu0  ;;  %1149 = vrot.lane.b32.xlu0 %v1126_v28, %s3321_s27 }
 0x12a   : > { %v1132_v34 = vpop.f32.mrb[11].mxu0  ;;  %1155 = vrot.lane.b32.xlu1 %v1128_v30, %s3321_s27 }
 0x12c   : > { %v879_v35 = vpop.f32.mrb[12].mxu1 }
 0x12d   : > { %v881_v37 = vpop.f32.mrb[13].mxu1  ;;  %900 = vrot.lane.b32.xlu0 %v875_v33, %s3320_s26 }
 0x12e   : > { %v883_v39 = vpop.f32.mrb[14].mxu1  ;;  %894 = vrot.lane.b32.xlu1 %v873_v31, %s3320_s26 }
 0x12f   : > { %v1136_v36 = vpop.f32.mrb[12].mxu0  ;;  %v884_v41 = vpop.f32.mrb[15].mxu1  ;;  %v658_v39 = vshrl.u32 %v646_v0, 7 }
 0x130   : > { %v1138_v38 = vpop.f32.mrb[13].mxu0 }
 0x131   : > { %v1140_v40 = vpop.f32.mrb[14].mxu0  ;;  %1157 = vrot.lane.b32.xlu0 %v1132_v34, %s3321_s27 }
 0x132   : > { %v1141_v42 = vpop.f32.mrb[15].mxu0  ;;  %1151 = vrot.lane.b32.xlu1 %v1130_v32, %s3321_s27 }
 0x133   : > { %v3825_v42 = vsub.s32 0, %v658_v39 }
 0x135   : > { %896 = vrot.lane.b32.xlu0 %v879_v35, %s3320_s26 }
 0x136   : > { %902 = vrot.lane.b32.xlu1 %v881_v37, %s3320_s26 }
 0x139   : > { %1153 = vrot.lane.b32.xlu0 %v1136_v36, %s3321_s27 }
 0x13a   : > { %1159 = vrot.lane.b32.xlu1 %v1138_v38, %s3321_s27 }
 0x13f   : > { %v1516_v43 = vpop.f32.mrb[20].mxu0 }
 0x140   : > { %v1518_v44 = vpop.f32.mrb[21].mxu0 }
 0x141   : > { %v1520_v45 = vpop.f32.mrb[22].mxu0 }
 0x142   : > { %v1521_v46 = vpop.f32.mrb[23].mxu0  ;;  %v3832_v45 = vsub.s32 1, %v658_v39 }
 0x14f   : > { %v1581_v47 = vpop.f32.mrb[24].mxu0 }
 0x150   : > { %v1582_v48 = vadd.f32 %v1581_v47, %v1516_v43  ;;  %v1583_v49 = vpop.f32.mrb[25].mxu0  ;;  %v2909_v47 = vld [vmem:[%s4134_s0 + $0x1] ss:$8 sm:$0x3] }
 0x151   : > { %v1584_v50 = vadd.f32 %v1583_v49, %v1518_v44  ;;  %v1585_v51 = vpop.f32.mrb[26].mxu0  ;;  %v655_v44 = vld [vmem:[%s4134_s0] ss:$8 sm:$0x3] }
 0x152   : > { %v1586_v52 = vpop.f32.mrb[27].mxu0  ;;  %v3847_v51 = vrot.slane %v2909_v47, %v3825_v42 }
 0x153   : > { %v3850_v52 = vrot.slane %v2909_v47, %v3832_v45 }
 0x154   : > { %v1383_v53 = vpop.f32.mrb[16].mxu1 }
 0x155   : > { %v1385_v55 = vpop.f32.mrb[17].mxu1  ;;  %1406 = vrot.lane.b32.xlu0 %v1383_v53, %s3322_s28 }
 0x156   : > { %v1387_v57 = vpop.f32.mrb[18].mxu1  ;;  %1412 = vrot.lane.b32.xlu1 %v1385_v55, %s3322_s28  ;;  %v2934_v55 = vld [vmem:[%s4134_s0 + $0x2] ss:$8 sm:$0x3] }
 0x157   : > { %v3782_v54 = vpop.f32.mrb[16].mxu0  ;;  %v1389_v59 = vpop.f32.mrb[19].mxu1 }
 0x158   : > { %v3784_v56 = vpop.f32.mrb[17].mxu0 }
 0x159   : > { %v3786_v58 = vpop.f32.mrb[18].mxu0  ;;  %1414 = vrot.lane.b32.xlu0 %v1389_v59, %s3322_s28 }
 0x15a   : > { %v3788_v60 = vpop.f32.mrb[19].mxu0  ;;  %1408 = vrot.lane.b32.xlu1 %v1387_v57, %s3322_s28 }
 0x15c   : > { %v1393_v61 = vpop.f32.mrb[20].mxu1 }
 0x15d   : > { %v1395_v1 = vpop.f32.mrb[21].mxu1  ;;  %1410 = vrot.lane.b32.xlu0 %v1393_v61, %s3322_s28 }
 0x15e   : > { %v1397_v4 = vpop.f32.mrb[22].mxu1  ;;  %1416 = vrot.lane.b32.xlu1 %v1395_v1, %s3322_s28 }
 0x15f   : > { %v1650_v63 = vpop.f32.mrb[28].mxu0  ;;  %v1398_v6 = vpop.f32.mrb[23].mxu1 }
 0x160   : > { %v3792_v2 = vadd.f32 %v1650_v63, %v1582_v48  ;;  %v1652_v3 = vpop.f32.mrb[29].mxu0  ;;  %v3840_v48 = vrot.slane %v655_v44, %v3825_v42  ;;  %v3865_v6 = vrot.slane %v2934_v55, %v3825_v42 }
 0x161   : > { %v3794_v5 = vadd.f32 %v1652_v3, %v1584_v50  ;;  %v1654_v7 = vpop.f32.mrb[30].mxu0  ;;  %v3843_v50 = vrot.slane %v655_v44, %v3832_v45 }
 0x162   : > { %v1655_v8 = vpop.f32.mrb[31].mxu0  ;;  %v3868_v7 = vrot.slane %v2934_v55, %v3832_v45 }
 0x16c   : > { %v3802_v12 = vpop.permute.xlu0 %634 }
 0x16d   : > { %v3806_v14 = vpop.permute.xlu1 %640 }
 0x170   : > { %v637_v15 = vpop.permute.xlu0 %636 }
 0x174   : > { %v643_v16 = vpop.permute.xlu0 %642  ;;  %v639_v17 = vpop.permute.xlu1 %638 }
 0x175   : > { %v650_v18 = vsel %vm648_vm6, %v637_v15, %v643_v16  ;;  %v653_v19 = vsel %vm648_vm6, %v643_v16, %v637_v15 }
 0x176   : > { %v669_v61 = vmul.f32 %v3840_v48, %v653_v19  ;;  %v670_v63 = vmul.f32 %v3843_v50, %v650_v18 }
 0x178   : > { %v645_v20 = vpop.permute.xlu1 %644 }
 0x179   : > { %v3815_v21 = vsel %vm648_vm6, %v639_v17, %v645_v20  ;;  %v3819_v22 = vsel %vm648_vm6, %v645_v20, %v639_v17 }
 0x184   : > { %v1859_v23 = vpop.f32.mrb[24].mxu1 }
 0x185   : > { %v1861_v25 = vpop.f32.mrb[25].mxu1  ;;  %1882 = vrot.lane.b32.xlu0 %v1859_v23, %s3323_s29 }
 0x186   : > { %v1863_v27 = vpop.f32.mrb[26].mxu1  ;;  %1888 = vrot.lane.b32.xlu1 %v1861_v25, %s3323_s29 }
 0x187   : > { %v2116_v24 = vpop.f32.mrb[32].mxu0  ;;  %v1865_v29 = vpop.f32.mrb[27].mxu1 }
 0x188   : > { %v2118_v26 = vpop.f32.mrb[33].mxu0 }
 0x189   : > { %v2120_v28 = vpop.f32.mrb[34].mxu0  ;;  %2139 = vrot.lane.b32.xlu0 %v2116_v24, %s3324_s11 }
 0x18a   : > { %v2122_v30 = vpop.f32.mrb[35].mxu0  ;;  %2145 = vrot.lane.b32.xlu1 %v2118_v26, %s3324_s11 }
 0x18c   : > { %v1869_v31 = vpop.f32.mrb[28].mxu1 }
 0x18d   : > { %v1871_v33 = vpop.f32.mrb[29].mxu1  ;;  %1890 = vrot.lane.b32.xlu0 %v1865_v29, %s3323_s29 }
 0x18e   : > { %v1873_v35 = vpop.f32.mrb[30].mxu1  ;;  %1884 = vrot.lane.b32.xlu1 %v1863_v27, %s3323_s29 }
 0x18f   : > { %v2126_v32 = vpop.f32.mrb[36].mxu0  ;;  %v1874_v37 = vpop.f32.mrb[31].mxu1 }
 0x190   : > { %v2128_v34 = vpop.f32.mrb[37].mxu0 }
 0x191   : > { %v2130_v36 = vpop.f32.mrb[38].mxu0  ;;  %2147 = vrot.lane.b32.xlu0 %v2122_v30, %s3324_s11 }
 0x192   : > { %v2131_v38 = vpop.f32.mrb[39].mxu0  ;;  %2141 = vrot.lane.b32.xlu1 %v2120_v28, %s3324_s11 }
 0x195   : > { %1886 = vrot.lane.b32.xlu0 %v1869_v31, %s3323_s29 }
 0x196   : > { %1892 = vrot.lane.b32.xlu1 %v1871_v33, %s3323_s29 }
 0x197   : > { %v3821_v40 = vpop.permute.xlu0 %892 }
 0x198   : > { %v3823_v41 = vpop.permute.xlu1 %898 }
 0x199   : > { %2143 = vrot.lane.b32.xlu0 %v2126_v32, %s3324_s11 }
 0x19a   : > { %2149 = vrot.lane.b32.xlu1 %v2128_v34, %s3324_s11 }
 0x19b   : > { %v3827_v43 = vpop.permute.xlu0 %1149 }
 0x19c   : > { %v3834_v46 = vpop.permute.xlu1 %1155 }
 0x19f   : > { %v901_v49 = vpop.permute.xlu0 %900 }
 0x1a0   : > { %v895_v53 = vpop.permute.xlu1 %894 }
 0x1a1   : > { %v906_v57 = vsel %vm904_vm7, %v895_v53, %v901_v49  ;;  %v909_v59 = vsel %vm904_vm7, %v901_v49, %v895_v53 }
 0x1a2   : > { %v926_v1 = vmul.f32 %v3847_v51, %v909_v59  ;;  %v927_v3 = vmul.f32 %v3850_v52, %v906_v57 }
 0x1a3   : > { %v1158_v4 = vpop.permute.xlu0 %1157 }
 0x1a4   : > { %v932_v8 = vadd.f32 %v926_v1, %v669_v61  ;;  %v933_v0 = vadd.f32 %v927_v3, %v670_v63  ;;  %v1152_v15 = vpop.permute.xlu1 %1151  ;;  %v2959_v63 = vld [vmem:[%s4134_s0 + $0x3] ss:$8 sm:$0x3] }
 0x1a5   : > { %v1163_v16 = vsel %vm1161_vm8, %v1152_v15, %v1158_v4  ;;  %v1166_v17 = vsel %vm1161_vm8, %v1158_v4, %v1152_v15  ;;  %v2723_v4 = vld [vmem:[%s4136_s2 + $0x10] sm:$0x3] }
 0x1a6   : > { %v1183_v18 = vmul.f32 %v3865_v6, %v1166_v17  ;;  %v1184_v19 = vmul.f32 %v3868_v7, %v1163_v16  ;;  %v2722_v16 = vld [vmem:[%s4136_s2 + $0x8] sm:$0xff]  ;;  %v671_v17 = vmul.f32 %v3840_v48, %v3819_v22 }
 0x1a7   : > { %v897_v32 = vpop.permute.xlu0 %896 }
 0x1a8   : > { %v3876_v20 = vadd.f32 %v1183_v18, %v932_v8  ;;  %v3878_v23 = vadd.f32 %v1184_v19, %v933_v0  ;;  %v903_v33 = vpop.permute.xlu1 %902  ;;  %v672_v18 = vmul.f32 %v3843_v50, %v3815_v21  ;;  %v1431_v19 = vrot.slane %v2959_v63, %v3825_v42 }
 0x1a9   : > { %v907_v57 = vsel %vm904_vm7, %v897_v32, %v903_v33  ;;  %v910_v59 = vsel %vm904_vm7, %v903_v33, %v897_v32 }
 0x1aa   : > { %v928_v8 = vmul.f32 %v3847_v51, %v910_v59  ;;  %v929_v0 = vmul.f32 %v3850_v52, %v907_v57 }
 0x1ab   : > { %v1154_v49 = vpop.permute.xlu0 %1153 }
 0x1ac   : > { %v1160_v53 = vpop.permute.xlu1 %1159  ;;  %v934_v21 = vadd.f32 %v928_v8, %v671_v17  ;;  %v1162_v17 = vsel %vm1161_vm8, %v3827_v43, %v3834_v46 }
 0x1ad   : > { %v1164_v1 = vsel %vm1161_vm8, %v1154_v49, %v1160_v53  ;;  %v1167_v3 = vsel %vm1161_vm8, %v1160_v53, %v1154_v49 }
 0x1b4   : > { %v2373_v24 = vpop.f32.mrb[32].mxu1 }
 0x1b5   : > { %v2375_v26 = vpop.f32.mrb[33].mxu1  ;;  %2396 = vrot.lane.b32.xlu0 %v2373_v24, %s3325_s18  ;;  %v1435_v24 = vrot.slane %v2959_v63, %v3832_v45 }
 0x1b6   : > { %v2377_v28 = vpop.f32.mrb[34].mxu1  ;;  %2402 = vrot.lane.b32.xlu1 %v2375_v26, %s3325_s18  ;;  %v1185_v26 = vmul.f32 %v3865_v6, %v1167_v3 }
 0x1b7   : > { %v2630_v25 = vpop.f32.mrb[40].mxu0  ;;  %v2379_v30 = vpop.f32.mrb[35].mxu1 }
 0x1b8   : > { %v2632_v27 = vpop.f32.mrb[41].mxu0 }
 0x1b9   : > { %v2634_v29 = vpop.f32.mrb[42].mxu0  ;;  %2653 = vrot.lane.b32.xlu0 %v2630_v25, %s3326_s19 }
 0x1ba   : > { %v2636_v31 = vpop.f32.mrb[43].mxu0  ;;  %2659 = vrot.lane.b32.xlu1 %v2632_v27, %s3326_s19  ;;  %v1186_v27 = vmul.f32 %v3868_v7, %v1164_v1 }
 0x1bc   : > { %v2383_v34 = vpop.f32.mrb[36].mxu1 }
 0x1bd   : > { %v2385_v36 = vpop.f32.mrb[37].mxu1  ;;  %2404 = vrot.lane.b32.xlu0 %v2379_v30, %s3325_s18 }
 0x1be   : > { %v2387_v38 = vpop.f32.mrb[38].mxu1  ;;  %2398 = vrot.lane.b32.xlu1 %v2377_v28, %s3325_s18 }
 0x1bf   : > { %v2640_v35 = vpop.f32.mrb[44].mxu0  ;;  %v2388_v44 = vpop.f32.mrb[39].mxu1 }
 0x1c0   : > { %v2642_v37 = vpop.f32.mrb[45].mxu0 }
 0x1c1   : > { %v2644_v39 = vpop.f32.mrb[46].mxu0  ;;  %2661 = vrot.lane.b32.xlu0 %v2636_v31, %s3326_s19  ;;  %v935_v31 = vadd.f32 %v929_v0, %v672_v18 }
 0x1c2   : > { %v2645_v47 = vpop.f32.mrb[47].mxu0  ;;  %2655 = vrot.lane.b32.xlu1 %v2634_v29, %s3326_s19 }
 0x1c5   : > { %2400 = vrot.lane.b32.xlu0 %v2383_v34, %s3325_s18 }
 0x1c6   : > { %2406 = vrot.lane.b32.xlu1 %v2385_v36, %s3325_s18  ;;  %v1191_v36 = vadd.f32 %v1185_v26, %v934_v21  ;;  %v3058_v21 = vld [vmem:[%s4134_s0 + $0x7] ss:$8 sm:$0x3]  ;;  %s4056_s18 = scalar_lea.vmem %s4143_s9, %s3231_s15 }
 0x1c7   : > { %v3880_v55 = vpop.permute.xlu0 %1406 }
 0x1c8   : > { %v1413_v61 = vpop.permute.xlu1 %1412 }
 0x1c9   : > { %2657 = vrot.lane.b32.xlu0 %v2640_v35, %s3326_s19 }
 0x1ca   : > { %2663 = vrot.lane.b32.xlu1 %v2642_v37, %s3326_s19  ;;  %v1192_v37 = vadd.f32 %v1186_v27, %v935_v31 }
 0x1cb   : > { %v1415_v15 = vpop.permute.xlu0 %1414 }
 0x1cc   : > { %v1409_v25 = vpop.permute.xlu1 %1408 }
 0x1cd   : > { %v1420_v28 = vsel %vm1418_vm9, %v1409_v25, %v1415_v15  ;;  %v1423_v29 = vsel %vm1418_vm9, %v1415_v15, %v1409_v25  ;;  %2736 = vperm.xlu0 %3249, %v2723_v4   ;;  %v649_v15 = vsel %vm648_vm6, %v3802_v12, %v3806_v14  ;;  %v1419_v25 = vsel %vm1418_vm9, %v3880_v55, %v1413_v61 }
 0x1ce   : > { %v1440_v22 = vmul.f32 %v1431_v19, %v1423_v29  ;;  %v1441_v30 = vmul.f32 %v1435_v24, %v1420_v28  ;;  %2731 = vperm.xlu1 %3250, %v2722_v16   ;;  %v652_v16 = vsel %vm648_vm6, %v3806_v14, %v3802_v12  ;;  %v1422_v12 = vsel %vm1418_vm9, %v1413_v61, %v3880_v55 }
 0x1cf   : > { %v1411_v32 = vpop.permute.xlu0 %1410  ;;  %v667_v26 = vmul.f32 %v3840_v48, %v652_v16  ;;  %v668_v27 = vmul.f32 %v3843_v50, %v649_v15  ;;  %v1438_v61 = vmul.f32 %v1431_v19, %v1422_v12  ;;  %v1439_v29 = vmul.f32 %v1435_v24, %v1419_v25  ;;  %v3033_v50 = vld [vmem:[%s4134_s0 + $0x6] ss:$8 sm:$0x3] }
 0x1d0   : > { %v1446_v33 = vadd.f32 %v1440_v22, %v3876_v20  ;;  %v1447_v34 = vadd.f32 %v1441_v30, %v3878_v23  ;;  %v1417_v35 = vpop.permute.xlu1 %1416 }
 0x1d1   : > { %v1421_v38 = vsel %vm1418_vm9, %v1411_v32, %v1417_v35  ;;  %v1424_v39 = vsel %vm1418_vm9, %v1417_v35, %v1411_v32 }
 0x1d2   : > { %v1442_v44 = vmul.f32 %v1431_v19, %v1424_v39  ;;  %v1443_v47 = vmul.f32 %v1435_v24, %v1421_v38  ;;  %v3921_v49 = vadd.f32 %v3786_v58, %v1446_v33  ;;  %v3924_v53 = vadd.f32 %v3788_v60, %v1447_v34 }
 0x1d3   : > { %v4004_v33 = vrot.slane %v3033_v50, %v3825_v42  ;;  %v4007_v34 = vrot.slane %v3033_v50, %v3832_v45 }
 0x1d4   : > { %v1448_v20 = vadd.f32 %v1442_v44, %v1191_v36  ;;  %v1449_v57 = vadd.f32 %v1443_v47, %v1192_v37  ;;  %v4017_v44 = vrot.slane %v3058_v21, %v3825_v42  ;;  %v4020_v47 = vrot.slane %v3058_v21, %v3832_v45 }
 0x1d6   : > { %v3927_v23 = vadd.f32 %v3792_v2, %v1448_v20  ;;  %v3930_v59 = vadd.f32 %v3794_v5, %v1449_v57  ;;  %v905_v2 = vsel %vm904_vm7, %v3821_v40, %v3823_v41  ;;  %v908_v5 = vsel %vm904_vm7, %v3823_v41, %v3821_v40  ;;  %v3083_v20 = vld [vmem:[%s4134_s0 + $0x10] ss:$8 sm:$0x3] }
 0x1d7   : > { %v1165_v40 = vsel %vm1161_vm8, %v3834_v46, %v3827_v43  ;;  %v924_v41 = vmul.f32 %v3847_v51, %v908_v5  ;;  %v925_v18 = vmul.f32 %v3850_v52, %v905_v2  ;;  %v1182_v46 = vmul.f32 %v3868_v7, %v1162_v17  ;;  %v3008_v51 = vld [vmem:[%s4134_s0 + $0x5] ss:$8 sm:$0x3] }
 0x1d8   : > { %v1181_v43 = vmul.f32 %v3865_v6, %v1165_v40  ;;  %v3985_v48 = vrot.slane %v3008_v51, %v3825_v42  ;;  %v3991_v22 = vrot.slane %v3008_v51, %v3832_v45  ;;  %v4035_v16 = vrot.slane %v3083_v20, %v3825_v42 }
 0x1d9   : > { %v930_v28 = vadd.f32 %v924_v41, %v667_v26  ;;  %v931_v55 = vadd.f32 %v925_v18, %v668_v27  ;;  %v4038_v17 = vrot.slane %v3083_v20, %v3832_v45 }
 0x1db   : > { %v1187_v6 = vadd.f32 %v1181_v43, %v930_v28  ;;  %v1188_v7 = vadd.f32 %v1182_v46, %v931_v55 }
 0x1dd   : > { %v1444_v31 = vadd.f32 %v1438_v61, %v1187_v6  ;;  %v1445_v32 = vadd.f32 %v1439_v29, %v1188_v7 }
 0x1f7   : > { %v1883_v63 = vpop.permute.xlu0 %1882 }
 0x1f8   : > { %v1889_v1 = vpop.permute.xlu1 %1888 }
 0x1f9   : > { %v1895_v30 = vsel %vm1894_vm10, %v1883_v63, %v1889_v1  ;;  %v1898_v19 = vsel %vm1894_vm10, %v1889_v1, %v1883_v63  ;;  %v1663_v63 = vadd.f32 %v3782_v54, %v1444_v31  ;;  %v1664_v1 = vadd.f32 %v3784_v56, %v1445_v32 }
 0x1fa   : > { %v1914_v38 = vmul.f32 %v3985_v48, %v1895_v30  ;;  %v1915_v39 = vmul.f32 %v3991_v22, %v1898_v19 }
 0x1fb   : > { %v2140_v3 = vpop.permute.xlu0 %2139 }
 0x1fc   : > { %v2146_v4 = vpop.permute.xlu1 %2145  ;;  %v1920_v54 = vadd.f32 %v1914_v38, %v1663_v63  ;;  %v1921_v40 = vadd.f32 %v1915_v39, %v1664_v1 }
 0x1fd   : > { %v2152_v36 = vsel %vm2151_vm11, %v2140_v3, %v2146_v4  ;;  %v2155_v37 = vsel %vm2151_vm11, %v2146_v4, %v2140_v3 }
 0x1fe   : > { %v2171_v3 = vmul.f32 %v4004_v33, %v2152_v36  ;;  %v2172_v4 = vmul.f32 %v4007_v34, %v2155_v37 }
 0x1ff   : > { %v3932_v8 = vpop.permute.xlu0 %1890 }
 0x200   : > { %v3934_v0 = vpop.permute.xlu1 %1884  ;;  %v2177_v25 = vadd.f32 %v2171_v3, %v1920_v54  ;;  %v2178_v12 = vadd.f32 %v2172_v4, %v1921_v40 }
 0x201   : > { %v1896_v39 = vsel %vm1894_vm10, %v3934_v0, %v3932_v8  ;;  %v1899_v20 = vsel %vm1894_vm10, %v3932_v8, %v3934_v0 }
 0x202   : > { %v1916_v0 = vmul.f32 %v3985_v48, %v1896_v39  ;;  %v1917_v3 = vmul.f32 %v3991_v22, %v1899_v20 }
 0x203   : > { %v3936_v58 = vpop.permute.xlu0 %2147 }
 0x204   : > { %v3938_v60 = vpop.permute.xlu1 %2141 }
 0x207   : > { %v3972_v14 = vpop.permute.xlu0 %1886 }
 0x208   : > { %v3981_v52 = vpop.permute.xlu1 %1892 }
 0x20b   : > { %v3998_v24 = vpop.permute.xlu0 %2143 }
 0x20c   : > { %v2150_v35 = vpop.permute.xlu1 %2149 }
 0x20d   : > { %v2154_v1 = vsel %vm2151_vm11, %v3998_v24, %v2150_v35  ;;  %v2157_v8 = vsel %vm2151_vm11, %v2150_v35, %v3998_v24 }
 0x20e   : > { %v2175_v54 = vmul.f32 %v4004_v33, %v2154_v1  ;;  %v2176_v24 = vmul.f32 %v4007_v34, %v2157_v8 }
 0x227   : > { %v2397_v57 = vpop.permute.xlu0 %2396 }
 0x228   : > { %v2403_v2 = vpop.permute.xlu1 %2402 }
 0x229   : > { %v2409_v5 = vsel %vm2408_vm12, %v2397_v57, %v2403_v2  ;;  %v2412_v15 = vsel %vm2408_vm12, %v2403_v2, %v2397_v57  ;;  %v2153_v57 = vsel %vm2151_vm11, %v3938_v60, %v3936_v58 }
 0x22a   : > { %v2428_v56 = vmul.f32 %v4017_v44, %v2409_v5  ;;  %v2429_v41 = vmul.f32 %v4020_v47, %v2412_v15 }
 0x22b   : > { %v2654_v18 = vpop.permute.xlu0 %2653 }
 0x22c   : > { %v2660_v26 = vpop.permute.xlu1 %2659  ;;  %v2434_v43 = vadd.f32 %v2428_v56, %v2177_v25  ;;  %v2435_v45 = vadd.f32 %v2429_v41, %v2178_v12 }
 0x22d   : > { %v2666_v27 = vsel %vm2665_vm13, %v2654_v18, %v2660_v26  ;;  %v2669_v42 = vsel %vm2665_vm13, %v2660_v26, %v2654_v18 }
 0x22e   : > { %v2685_v46 = vmul.f32 %v4035_v16, %v2666_v27  ;;  %v2686_v51 = vmul.f32 %v4038_v17, %v2669_v42 }
 0x22f   : > { %v2405_v28 = vpop.permute.xlu0 %2404 }
 0x230   : > { %v2691_v55 = vadd.f32 %v2685_v46, %v2434_v43  ;;  %v2692_v61 = vadd.f32 %v2686_v51, %v2435_v45  ;;  %v2399_v29 = vpop.permute.xlu1 %2398 }
 0x232   : > { %v2715_v50 = vmul.f32 %v3790_v62, %v2691_v55  ;;  %v2716_v6 = vmul.f32 %v3790_v62, %v2692_v61  ;;  %v1897_v62 = vsel %vm1894_vm10, %v3972_v14, %v3981_v52 }
 0x233   : > { %v2662_v7 = vpop.permute.xlu0 %2661 }
 0x234   : > { %v2739_v30 = vadd.f32 %v3798_v10, %v2715_v50  ;;  %v2740_v19 = vadd.f32 %v3798_v10, %v2716_v6  ;;  %v2656_v21 = vpop.permute.xlu1 %2655  ;;  %v1900_v10 = vsel %vm1894_vm10, %v3981_v52, %v3972_v14  ;;  %v2156_v14 = vsel %vm2151_vm11, %v3936_v58, %v3938_v60 }
 0x235   : > { %v1918_v52 = vmul.f32 %v3985_v48, %v1897_v62  ;;  %v1919_v63 = vmul.f32 %v3991_v22, %v1900_v10  ;;  %v2173_v58 = vmul.f32 %v4004_v33, %v2153_v57  ;;  %v2174_v60 = vmul.f32 %v4007_v34, %v2156_v14 }
 0x236   : > { %v2745_v31 = vmax.f32 %v2739_v30, 0.0  ;;  %v2746_v32 = vmax.f32 %v2740_v19, 0.0  ;;  %v2410_v48 = vsel %vm2408_vm12, %v2399_v29, %v2405_v28  ;;  %v2413_v22 = vsel %vm2408_vm12, %v2405_v28, %v2399_v29 }
 0x237   : > { %v2401_v36 = vpop.permute.xlu0 %2400  ;;  %v1924_v35 = vadd.f32 %v1918_v52, %v3927_v23  ;;  %v1925_v40 = vadd.f32 %v1919_v63, %v3930_v59  ;;  %v2667_v33 = vsel %vm2665_vm13, %v2656_v21, %v2662_v7  ;;  %v2670_v34 = vsel %vm2665_vm13, %v2662_v7, %v2656_v21 }
 0x238   : > { %v3092_v37 = vpack.c.bf16 %v2746_v32, %v2745_v31  ;;  %v2407_v38 = vpop.permute.xlu1 %2406  ;;  %v1922_v23 = vadd.f32 %v1916_v0, %v3921_v49  ;;  %v1923_v59 = vadd.f32 %v1917_v3, %v3924_v53  ;;  %v2430_v12 = vmul.f32 %v4017_v44, %v2410_v48 }
 0x239   : > { %v2411_v5 = vsel %vm2408_vm12, %v2401_v36, %v2407_v38  ;;  %v2414_v15 = vsel %vm2408_vm12, %v2407_v38, %v2401_v36  ;;  %v2431_v26 = vmul.f32 %v4020_v47, %v2413_v22  ;;  %v2181_v27 = vadd.f32 %v2175_v54, %v1924_v35 }
 0x23a   : > { %2771 = vst [vmem:[%s4056_s18] sm:$0xff] %v3092_v37  ;;  %v2432_v18 = vmul.f32 %v4017_v44, %v2411_v5  ;;  %v2433_v25 = vmul.f32 %v4020_v47, %v2414_v15  ;;  %v2182_v42 = vadd.f32 %v2176_v24, %v1925_v40  ;;  %v2179_v13 = vadd.f32 %v2173_v58, %v1922_v23 }
 0x23b   : > { %v2658_v4 = vpop.permute.xlu0 %2657  ;;  %v2180_v46 = vadd.f32 %v2174_v60, %v1923_v59  ;;  %v2687_v51 = vmul.f32 %v4035_v16, %v2667_v33  ;;  %v2688_v28 = vmul.f32 %v4038_v17, %v2670_v34 }
 0x23c   : > { %v2664_v2 = vpop.permute.xlu1 %2663  ;;  %v2438_v55 = vadd.f32 %v2432_v18, %v2181_v27  ;;  %v2439_v49 = vadd.f32 %v2433_v25, %v2182_v42  ;;  %v2436_v61 = vadd.f32 %v2430_v12, %v2179_v13 }
 0x23d   : > { %v2668_v56 = vsel %vm2665_vm13, %v2658_v4, %v2664_v2  ;;  %v2671_v41 = vsel %vm2665_vm13, %v2664_v2, %v2658_v4  ;;  %v2437_v53 = vadd.f32 %v2431_v26, %v2180_v46 }
 0x23e   : > { %v2689_v43 = vmul.f32 %v4035_v16, %v2668_v56  ;;  %v2690_v45 = vmul.f32 %v4038_v17, %v2671_v41  ;;  %v2693_v50 = vadd.f32 %v2687_v51, %v2436_v61 }
 0x23f   : > { %v2694_v47 = vadd.f32 %v2688_v28, %v2437_v53 }
 0x240   : > { %v2695_v29 = vadd.f32 %v2689_v43, %v2438_v55  ;;  %v2696_v44 = vadd.f32 %v2690_v45, %v2439_v49  ;;  %v2717_v19 = vmul.f32 %v3796_v9, %v2693_v50 }
 0x241   : > { %v2718_v16 = vmul.f32 %v3796_v9, %v2694_v47 }
 0x242   : > { %v2719_v6 = vmul.f32 %v3800_v11, %v2695_v29  ;;  %v2720_v7 = vmul.f32 %v3800_v11, %v2696_v44 }
 0x24c   : > { %v2737_v30 = vpop.permute.xlu0 %2736 }
 0x24d   : > { %v2743_v17 = vadd.f32 %v2737_v30, %v2719_v6  ;;  %v2744_v21 = vadd.f32 %v2737_v30, %v2720_v7  ;;  %v2732_v31 = vpop.permute.xlu1 %2731 }
 0x24e   : > { %v2741_v32 = vadd.f32 %v2732_v31, %v2717_v19  ;;  %v2742_v36 = vadd.f32 %v2732_v31, %v2718_v16 }
 0x24f   : > { %v2749_v37 = vmax.f32 %v2743_v17, 0.0  ;;  %v2750_v38 = vmax.f32 %v2744_v21, 0.0 }
 0x250   : > { %v2747_v62 = vmax.f32 %v2741_v32, 0.0  ;;  %v2748_v10 = vmax.f32 %v2742_v36, 0.0 }
 0x251   : > { %v3094_v39 = vpack.c.bf16 %v2750_v38, %v2749_v37 }
 0x252   : > { %v3093_v20 = vpack.c.bf16 %v2748_v10, %v2747_v62 }
 0x253   : > { %2773 = vst [vmem:[%s4056_s18 + $0x10] sm:$0x11] %v3094_v39 }
 0x254   : > { %2772 = vst [vmem:[%s4056_s18 + $0x8] sm:$0xff] %v3093_v20 }
 0x255 PF: > { %s19_s30 = sadd.s32 1, %s3316_s30  }
 0x256   : > { %p16_p4 = scmp.ge.s32.totalorder %s19_s30, 4  }
 0x258   :  { %18 = sbr.rel (!%p16_p4) target bundleno = 1 (0x1), region = 123 }

</bundles_post_ra>
